<compile_context>
chip_gen: v7x
topology: tpu7x:2x2x1
jax: 0.10.0
libtpu: 0.0.40
codegen_flags: <defaults>
</compile_context>

<pallas_src>
import jax
import jax.numpy as jnp
from jax.experimental import pallas as pl
from jax.experimental.pallas import tpu as pltpu

PI = 3.141592653589793


def _round_up(x, m):
    return ((x + m - 1) // m) * m


def _rotate_lookup_kernel(r_idx_ref, h_ref, t_ref, tab_ref, o_ref):
    # r_idx_ref: (TB, 1) int32     h_ref/t_ref: (TB, D) f32
    # tab_ref:   (2, R_pad, D) f32 (hi / lo split of the relation table)
    # o_ref:     (TB//128, 128) f32
    h = h_ref[...]
    t = t_ref[...]
    tb = h.shape[0]
    r_pad = tab_ref.shape[1]

    # One-hot relation gather on the (otherwise idle) MXU.  0/1 weights select
    # single rows; hi is bf16-exact and lo is a tiny residual, so the result
    # reconstructs the f32 relation row exactly for any matmul precision.
    lane_ids = jax.lax.broadcasted_iota(jnp.int32, (tb, r_pad), 1)
    one_hot = jnp.where(lane_ids == r_idx_ref[...], 1.0, 0.0).astype(jnp.float32)
    r = (jnp.dot(one_hot, tab_ref[0], preferred_element_type=jnp.float32)
         + jnp.dot(one_hot, tab_ref[1], preferred_element_type=jnp.float32)) * PI

    re = h * jnp.cos(r) - t
    im = h * jnp.sin(r)
    modulus = jnp.sqrt(re * re + im * im)            # (TB, D)

    rows, lanes = o_ref.shape
    o_ref[...] = -jnp.sum(modulus.reshape(rows, lanes, modulus.shape[-1]), axis=-1)


def _rotate_gathered_kernel(h_ref, r_ref, t_ref, o_ref):
    # Fallback for very large relation vocabularies: r is pre-gathered in XLA.
    h = h_ref[...]
    t = t_ref[...]
    r = r_ref[...] * PI
    re = h * jnp.cos(r) - t
    im = h * jnp.sin(r)
    modulus = jnp.sqrt(re * re + im * im)            # (TB, D)

    rows, lanes = o_ref.shape
    o_ref[...] = -jnp.sum(modulus.reshape(rows, lanes, modulus.shape[-1]), axis=-1)


def rotate_forward(ent, rel, h_idx, r_idx, t_idx, *, tile_b=2048,
                   max_lookup_relations=4096):
    """RotatE scores.  ent: (E, D) f32, rel: (R, D) f32, *_idx: (B,) int."""
    B = h_idx.shape[0]
    D = ent.shape[1]
    R = rel.shape[0]

    # Batch tile: multiple of 128 (lane-dense output rows).  If we need more
    # than one tile, force TB to a multiple of 1024 so the (TB//128, 128)
    # output block obeys the (8, 128) divisibility rule.
    TB = _round_up(min(tile_b, B), 128)
    if TB < _round_up(B, 128):
        TB = _round_up(TB, 1024)
    B_pad = _round_up(B, TB)
    num_tiles = B_pad // TB

    pad_b = B_pad - B
    h_idx_p = jnp.pad(h_idx.astype(jnp.int32), (0, pad_b))   # pad with 0: valid row
    r_idx_p = jnp.pad(r_idx.astype(jnp.int32), (0, pad_b))
    t_idx_p = jnp.pad(t_idx.astype(jnp.int32), (0, pad_b))

    ent_f32 = ent.astype(jnp.float32)
    h = jnp.take(ent_f32, h_idx_p, axis=0)                   # (B_pad, D), already padded
    t = jnp.take(ent_f32, t_idx_p, axis=0)

    slab_spec = pl.BlockSpec((TB, D), lambda i: (i, 0))
    out_spec = pl.BlockSpec((TB // 128, 128), lambda i: (i, 0))
    out_shape = jax.ShapeDtypeStruct((B_pad // 128, 128), jnp.float32)
    cparams = pltpu.CompilerParams(dimension_semantics=("parallel",))

    if R <= max_lookup_relations:
        # In-kernel relation lookup: stream only h, t, and the index column;
        # the tiny relation table is VMEM-resident (same block every step).
        R_pad = _round_up(R, 128)
        rel_f32 = rel.astype(jnp.float32)
        rel_hi = rel_f32.astype(jnp.bfloat16).astype(jnp.float32)
        rel_lo = rel_f32 - rel_hi
        rel_tab = jnp.stack([rel_hi, rel_lo], axis=0)         # (2, R, D)
        rel_tab = jnp.pad(rel_tab, ((0, 0), (0, R_pad - R), (0, 0)))
        r_idx2d = r_idx_p.reshape(B_pad, 1)

        out = pl.pallas_call(
            _rotate_lookup_kernel,
            out_shape=out_shape,
            grid_spec=pltpu.PrefetchScalarGridSpec(
                num_scalar_prefetch=0,
                grid=(num_tiles,),
                in_specs=[
                    pl.BlockSpec((TB, 1), lambda i: (i, 0)),          # r_idx
                    slab_spec,                                         # h
                    slab_spec,                                         # t
                    pl.BlockSpec((2, R_pad, D), lambda i: (0, 0, 0)),  # rel table
                ],
                out_specs=out_spec,
            ),
            compiler_params=cparams,
        )(r_idx2d, h, t, rel_tab)
    else:
        # TODO(synk): for huge relation vocabularies the row gather stays in
        # XLA glue; the kernel still streams only 3 unpadded slabs.
        r = jnp.take(rel.astype(jnp.float32), r_idx_p, axis=0)
        out = pl.pallas_call(
            _rotate_gathered_kernel,
            out_shape=out_shape,
            grid_spec=pltpu.PrefetchScalarGridSpec(
                num_scalar_prefetch=0,
                grid=(num_tiles,),
                in_specs=[slab_spec, slab_spec, slab_spec],
                out_specs=out_spec,
            ),
            compiler_params=cparams,
        )(h, r, t)

    return out.reshape(B_pad)[:B]


class RotatEModelPallas:
    """Deterministically initialized equivalent of the PyTorch RotatEModel."""

    def __init__(self, num_entities, num_relations, embedding_dim=64, key=None):
        if key is None:
            key = jax.random.PRNGKey(0)
        k_ent, k_rel = jax.random.split(key)
        # nn.Embedding default init: N(0, 1)
        self.ent = jax.random.normal(
            k_ent, (num_entities, embedding_dim), dtype=jnp.float32)
        self.rel = jax.random.normal(
            k_rel, (num_relations, embedding_dim), dtype=jnp.float32)

    def __call__(self, h_idx, r_idx, t_idx):
        return rotate_forward(self.ent, self.rel, h_idx, r_idx, t_idx)


def _reference(model, h_idx, r_idx, t_idx):
    # Pure-JAX reference mirroring the PyTorch forward.
    h = jnp.take(model.ent, h_idx, axis=0)
    r = jnp.take(model.rel, r_idx, axis=0) * PI
    t = jnp.take(model.ent, t_idx, axis=0)
    re = h * jnp.cos(r) - t
    im = h * jnp.sin(r)
    return -jnp.sum(jnp.sqrt(re * re + im * im), axis=-1)


if __name__ == "__main__":
    num_entities, num_relations, embedding_dim = 16, 4, 64
    batch = 8

    key = jax.random.PRNGKey(0)
    k_model, k_h, k_r, k_t = jax.random.split(key, 4)

    model = RotatEModelPallas(num_entities, num_relations, embedding_dim,
                              key=k_model)

    h_idx = jax.random.randint(k_h, (batch,), 0, num_entities, dtype=jnp.int32)
    r_idx = jax.random.randint(k_r, (batch,), 0, num_relations, dtype=jnp.int32)
    t_idx = jax.random.randint(k_t, (batch,), 0, num_entities, dtype=jnp.int32)

    score = model(h_idx, r_idx, t_idx)
    score = jax.block_until_ready(score)

    ref = _reference(model, h_idx, r_idx, t_idx)
    assert score.shape == (batch,)
    assert jnp.allclose(score, ref, rtol=1e-5, atol=1e-4), (score, ref)

    print("KERNEL_OK")
</pallas_src>

<mosaic_0001>
module attributes {stable_mosaic.version = 11 : i64} {
  func.func @_rotate_lookup_kernel(%arg0: i32, %arg1: memref<128x1xi32, #tpu.memory_space<vmem>>, %arg2: memref<128x64xf32, #tpu.memory_space<vmem>>, %arg3: memref<128x64xf32, #tpu.memory_space<vmem>>, %arg4: memref<2x128x64xf32, #tpu.memory_space<vmem>>, %arg5: memref<1x128xf32, #tpu.memory_space<vmem>>) attributes {dimension_semantics = [#tpu.dimension_semantics<parallel>], iteration_bounds = array<i64: 1>, scalar_prefetch = 0 : i64, scratch_operands = 0 : i64, tpu.core_type = #tpu.core_type<tc>, window_params = [{transform_indices = @transform_0, window_bounds = array<i64: 128, 1>}, {transform_indices = @transform_1, window_bounds = array<i64: 128, 64>}, {transform_indices = @transform_2, window_bounds = array<i64: 128, 64>}, {pipeline_mode = #tpu.pipeline_mode<synchronous>, transform_indices = @transform_3, window_bounds = array<i64: 2, 128, 64>}, {transform_indices = @transform_4, window_bounds = array<i64: 1, 128>}]} {
    %c0 = arith.constant 0 : index
    %c0_0 = arith.constant 0 : index
    %0 = vector.load %arg2[%c0, %c0_0] : memref<128x64xf32, #tpu.memory_space<vmem>>, vector<128x64xf32>
    %c0_1 = arith.constant 0 : index
    %c0_2 = arith.constant 0 : index
    %1 = vector.load %arg3[%c0_1, %c0_2] : memref<128x64xf32, #tpu.memory_space<vmem>>, vector<128x64xf32>
    %2 = tpu.iota {dimensions = array<i32: 1>} : vector<128x128xi32>
    %c0_3 = arith.constant 0 : index
    %c0_4 = arith.constant 0 : index
    %3 = vector.load %arg1[%c0_3, %c0_4] : memref<128x1xi32, #tpu.memory_space<vmem>>, vector<128x1xi32>
    %4 = vector.broadcast %3 : vector<128x1xi32> to vector<128x128xi32>
    %5 = arith.cmpi eq, %2, %4 : vector<128x128xi32>
    %cst = arith.constant 1.000000e+00 : f32
    %cst_5 = arith.constant 0.000000e+00 : f32
    %6 = vector.broadcast %cst : f32 to vector<128x128xf32>
    %7 = vector.broadcast %cst_5 : f32 to vector<128x128xf32>
    %8 = arith.select %5, %6, %7 : vector<128x128xi1>, vector<128x128xf32>
    %c0_6 = arith.constant 0 : index
    %c0_7 = arith.constant 0 : index
    %c0_8 = arith.constant 0 : index
    %9 = vector.load %arg4[%c0_6, %c0_7, %c0_8] : memref<2x128x64xf32, #tpu.memory_space<vmem>>, vector<1x128x64xf32>
    %10 = vector.shape_cast %9 : vector<1x128x64xf32> to vector<128x64xf32>
    %cst_9 = arith.constant dense<0.000000e+00> : vector<128x64xf32>
    %11 = tpu.matmul %8, %10, %cst_9 {dimension_numbers = #tpu.dot_dimension_numbers<[1], [0], [0], [1], [0, 0, 1, 1], [], []>} : vector<128x128xf32>, vector<128x64xf32>, vector<128x64xf32> -> vector<128x64xf32>
    %c1 = arith.constant 1 : index
    %c0_10 = arith.constant 0 : index
    %c0_11 = arith.constant 0 : index
    %12 = vector.load %arg4[%c1, %c0_10, %c0_11] : memref<2x128x64xf32, #tpu.memory_space<vmem>>, vector<1x128x64xf32>
    %13 = vector.shape_cast %12 : vector<1x128x64xf32> to vector<128x64xf32>
    %cst_12 = arith.constant dense<0.000000e+00> : vector<128x64xf32>
    %14 = tpu.matmul %8, %13, %cst_12 {dimension_numbers = #tpu.dot_dimension_numbers<[1], [0], [0], [1], [0, 0, 1, 1], [], []>} : vector<128x128xf32>, vector<128x64xf32>, vector<128x64xf32> -> vector<128x64xf32>
    %15 = arith.addf %11, %14 : vector<128x64xf32>
    %cst_13 = arith.constant 3.14159274 : f32
    %16 = vector.broadcast %cst_13 : f32 to vector<128x64xf32>
    %17 = arith.mulf %15, %16 : vector<128x64xf32>
    %18 = math.cos %17 : vector<128x64xf32>
    %19 = arith.mulf %0, %18 : vector<128x64xf32>
    %20 = arith.subf %19, %1 : vector<128x64xf32>
    %21 = math.sin %17 : vector<128x64xf32>
    %22 = arith.mulf %0, %21 : vector<128x64xf32>
    %23 = arith.mulf %20, %20 : vector<128x64xf32>
    %24 = arith.mulf %22, %22 : vector<128x64xf32>
    %25 = arith.addf %23, %24 : vector<128x64xf32>
    %26 = math.sqrt %25 : vector<128x64xf32>
    %27 = vector.shape_cast %26 : vector<128x64xf32> to vector<1x128x64xf32>
    %cst_14 = arith.constant dense<0.000000e+00> : vector<1x128xf32>
    %28 = vector.multi_reduction <add>, %27, %cst_14 [2] : vector<1x128x64xf32> to vector<1x128xf32>
    %cst_15 = arith.constant 0.000000e+00 : f32
    %29 = vector.broadcast %cst_15 : f32 to vector<1x128xf32>
    %30 = arith.subf %29, %28 : vector<1x128xf32>
    %c0_16 = arith.constant 0 : index
    %c0_17 = arith.constant 0 : index
    %31 = vector.load %arg5[%c0_16, %c0_17] : memref<1x128xf32, #tpu.memory_space<vmem>>, vector<1x128xf32>
    tpu.vector_store %arg5[%c0_16, %c0_17], %30 {strides = array<i32>} : memref<1x128xf32, #tpu.memory_space<vmem>>, vector<1x128xf32>,
    return
  }
  func.func @transform_0(%arg0: i32) -> (i32, i32) {
    %c0_i32 = arith.constant 0 : i32
    %c0_i32_0 = arith.constant 0 : i32
    return %arg0, %c0_i32 : i32, i32
  }
  func.func @transform_1(%arg0: i32) -> (i32, i32) {
    %c0_i32 = arith.constant 0 : i32
    %c0_i32_0 = arith.constant 0 : i32
    return %arg0, %c0_i32 : i32, i32
  }
  func.func @transform_2(%arg0: i32) -> (i32, i32) {
    %c0_i32 = arith.constant 0 : i32
    %c0_i32_0 = arith.constant 0 : i32
    return %arg0, %c0_i32 : i32, i32
  }
  func.func @transform_3(%arg0: i32) -> (i32, i32, i32) {
    %c0_i32 = arith.constant 0 : i32
    %c0_i32_0 = arith.constant 0 : i32
    %c0_i32_1 = arith.constant 0 : i32
    %c0_i32_2 = arith.constant 0 : i32
    return %c0_i32, %c0_i32_0, %c0_i32_1 : i32, i32, i32
  }
  func.func @transform_4(%arg0: i32) -> (i32, i32) {
    %c0_i32 = arith.constant 0 : i32
    %c0_i32_0 = arith.constant 0 : i32
    return %arg0, %c0_i32 : i32, i32
  }
}

</mosaic_0001>

<bundles_post_ra>
// kernel: tpu_custom_call.1
= control target key start
LH: loop header
LB: loop body
LE: loop exit
PB: predicated region body
PF: predicated region fallthrough
CT: control target
= control target key end

     0   :  { %v4840_v2 = vmov 0   ;;  %s7358_s0 = inlined_call_operand.vmem [shape: s32[128,1], index: 0, kind: input, shape index: {}]   ;;  %s7359_s1 = inlined_call_operand.vmem [shape: f32[128,64], index: 1, kind: input, shape index: {}]   ;;  %s7360_s2 = inlined_call_operand.vmem [shape: f32[128,64], index: 2, kind: input, shape index: {}]   ;;  %s7361_s3 = inlined_call_operand.vmem [shape: f32[2,128,64], index: 3, kind: input, shape index: {}]   ;;  %s7362_s4 = inlined_call_operand.hbm [shape: f32[1,128], index: 4, kind: output, shape index: {}]  }
   0x1   :  { %v54_v0 = vld [vmem:[%s7358_s0 + $0x10] sm:$0xff]  ;;  %v52_v1 = vld [vmem:[%s7358_s0] sm:$0xff]  ;;  %4719 = vset.pattern.permute.xlu1 %v4840_v2  ;;  %4718 = vset.pattern.permute.xlu0 %v4840_v2  ;;  %v55_v3 = vld [vmem:[%s7358_s0 + $0x18] sm:$0xff] }
   0x2   :  { %75 = vperm.xlu1 %4719, %v54_v0   ;;  %69 = vperm.xlu0 %4718, %v52_v1   ;;  %v53_v4 = vld [vmem:[%s7358_s0 + $0x8] sm:$0xff]  ;;  %v56_v6 = vld [vmem:[%s7358_s0 + $0x20] sm:$0xff]  ;;  %v4215_v12 = vld [vmem:[%s7361_s3 + $0x90] sm:$0xff] }
   0x3   :  { %v57_v5 = vld [vmem:[%s7358_s0 + $0x28] sm:$0xff]  ;;  %v4213_v7 = vld [vmem:[%s7361_s3 + $0x80] sm:$0xff]  ;;  %v4216_v14 = vld [vmem:[%s7361_s3 + $0x98] sm:$0xff] }
   0x4   :  { %v4214_v8 = vld [vmem:[%s7361_s3 + $0x88] sm:$0xff]  ;;  %v148_v10 = vld [vmem:[%s7361_s3] sm:$0xff]  ;;  %v150_v15 = vld [vmem:[%s7361_s3 + $0x10] sm:$0xff]  ;;  %v4569_v17 = vpack.c.bf16 %v4216_v14, %v4215_v12 }
   0x5   :  { %v4565_v9 = vpack.c.bf16 %v4214_v8, %v4213_v7  ;;  %v149_v11 = vld [vmem:[%s7361_s3 + $0x8] sm:$0xff]  ;;  %v151_v16 = vld [vmem:[%s7361_s3 + $0x18] sm:$0xff]  ;;  %v4217_v19 = vld [vmem:[%s7361_s3 + $0xa0] sm:$0xff] }
   0x6   :  { %78 = vperm.xlu1 %4719, %v55_v3   ;;  %72 = vperm.xlu0 %4718, %v53_v4   ;;  %v4597_v13 = vpack.c.bf16 %v149_v11, %v148_v10  ;;  %v4601_v18 = vpack.c.bf16 %v151_v16, %v150_v15  ;;  %v4218_v20 = vld [vmem:[%s7361_s3 + $0xa8] sm:$0xff]  ;;  %v152_v21 = vld [vmem:[%s7361_s3 + $0x20] sm:$0xff]  ;;  %v59_v23 = vld [vmem:[%s7358_s0 + $0x38] sm:$0xff] }
   0x7   :  { %4566 = vmatprep.subr.bf16.mxu1 %v4565_v9  ;;  %v153_v22 = vld [vmem:[%s7361_s3 + $0x28] sm:$0xff]  ;;  %v58_v24 = vld [vmem:[%s7358_s0 + $0x30] sm:$0xff]  ;;  %v4573_v25 = vpack.c.bf16 %v4218_v20, %v4217_v19  ;;  %v4220_v28 = vld [vmem:[%s7361_s3 + $0xb8] sm:$0xff] }
   0x8   :  { %4598 = vmatprep.subr.bf16.mxu0 %v4597_v13  ;;  %4568 = vmatpush3.bf16.msra.mxu1 %v4565_v9  ;;  %v4605_v26 = vpack.c.bf16 %v153_v22, %v152_v21  ;;  %v4219_v27 = vld [vmem:[%s7361_s3 + $0xb0] sm:$0xff]  ;;  %v155_v30 = vld [vmem:[%s7361_s3 + $0x38] sm:$0xff]  ;;  %v61_v31 = vld [vmem:[%s7358_s0 + $0x48] sm:$0xff] }
   0x9   :  { %4600 = vmatpush3.bf16.msra.mxu0 %v4597_v13  ;;  %4570 = vmatprep.subr.bf16.mxu1 %v4569_v17  ;;  %v154_v29 = vld [vmem:[%s7361_s3 + $0x30] sm:$0xff]  ;;  %v60_v32 = vld [vmem:[%s7358_s0 + $0x40] sm:$0xff]  ;;  %v4577_v33 = vpack.c.bf16 %v4220_v28, %v4219_v27  ;;  %v4222_v36 = vld [vmem:[%s7361_s3 + $0xc8] sm:$0xff] }
   0xa   :  { %84 = vperm.xlu1 %4719, %v57_v5   ;;  %81 = vperm.xlu0 %4718, %v56_v6   ;;  %v4609_v34 = vpack.c.bf16 %v155_v30, %v154_v29  ;;  %v4221_v35 = vld [vmem:[%s7361_s3 + $0xc0] sm:$0xff] }
   0xb   :  { %4602 = vmatprep.subr.bf16.mxu0 %v4601_v18 }
   0xc   :  { %4572 = vmatpush3.bf16.msra.mxu1 %v4569_v17 }
   0xd   :  { %4604 = vmatpush3.bf16.msra.mxu0 %v4601_v18  ;;  %4574 = vmatprep.subr.bf16.mxu1 %v4573_v25 }
   0xe   :  { %90 = vperm.xlu1 %4719, %v59_v23   ;;  %87 = vperm.xlu0 %4718, %v58_v24  }
   0xf   :  { %4606 = vmatprep.subr.bf16.mxu0 %v4605_v26 }
  0x10   :  { %9 = vsyncpa [#allocation3], 0  ;;  %4576 = vmatpush3.bf16.msra.mxu1 %v4573_v25  ;;  %v156_v37 = vld [vmem:[%s7361_s3 + $0x40] sm:$0xff]  ;;  %v157_v38 = vld [vmem:[%s7361_s3 + $0x48] sm:$0xff]  ;;  %v4581_v41 = vpack.c.bf16 %v4222_v36, %v4221_v35  ;;  %v7363_v1 = vlaneseq  ;;  %v4841_v5 = vmov 1.0  }
  0x11   :  { %v63_v39 = vld [vmem:[%s7358_s0 + $0x58] sm:$0xff]  ;;  %v62_v40 = vld [vmem:[%s7358_s0 + $0x50] sm:$0xff]  ;;  %4608 = vmatpush3.bf16.msra.mxu0 %v4605_v26  ;;  %4578 = vmatprep.subr.bf16.mxu1 %v4577_v33  ;;  %v4613_v42 = vpack.c.bf16 %v157_v38, %v156_v37  ;;  %v65_v47 = vld [vmem:[%s7358_s0 + $0x68] sm:$0xff] }
  0x12   :  { %96 = vperm.xlu1 %4719, %v61_v31   ;;  %93 = vperm.xlu0 %4718, %v60_v32   ;;  %v4223_v43 = vld [vmem:[%s7361_s3 + $0xd0] sm:$0xff]  ;;  %v4224_v44 = vld [vmem:[%s7361_s3 + $0xd8] sm:$0xff]  ;;  %v64_v48 = vld [vmem:[%s7358_s0 + $0x60] sm:$0xff]  ;;  %v5019_v2 = vand.u32 127, %v7363_v1 }
  0x13   :  { %4610 = vmatprep.subr.bf16.mxu0 %v4609_v34  ;;  %v158_v45 = vld [vmem:[%s7361_s3 + $0x50] sm:$0xff]  ;;  %v159_v46 = vld [vmem:[%s7361_s3 + $0x58] sm:$0xff]  ;;  %v4585_v49 = vpack.c.bf16 %v4224_v44, %v4223_v43  ;;  %v4225_v51 = vld [vmem:[%s7361_s3 + $0xe0] sm:$0xff] }
  0x14   :  { %4580 = vmatpush3.bf16.msra.mxu1 %v4577_v33  ;;  %v4617_v50 = vpack.c.bf16 %v159_v46, %v158_v45  ;;  %v4226_v52 = vld [vmem:[%s7361_s3 + $0xe8] sm:$0xff]  ;;  %v160_v53 = vld [vmem:[%s7361_s3 + $0x60] sm:$0xff]  ;;  %v67_v55 = vld [vmem:[%s7358_s0 + $0x78] sm:$0xff]  ;;  %7392 = vst [vmem:[#allocation5_spill] sm:$0xff] %v5019_v2 }
  0x15   :  { %4612 = vmatpush3.bf16.msra.mxu0 %v4609_v34  ;;  %4582 = vmatprep.subr.bf16.mxu1 %v4581_v41  ;;  %v161_v54 = vld [vmem:[%s7361_s3 + $0x68] sm:$0xff]  ;;  %v66_v56 = vld [vmem:[%s7358_s0 + $0x70] sm:$0xff]  ;;  %v4589_v57 = vpack.c.bf16 %v4226_v52, %v4225_v51  ;;  %v4228_v59 = vld [vmem:[%s7361_s3 + $0xf8] sm:$0xff] }
  0x16   :  { %102 = vperm.xlu1 %4719, %v63_v39   ;;  %99 = vperm.xlu0 %4718, %v62_v40   ;;  %v4227_v58 = vld [vmem:[%s7361_s3 + $0xf0] sm:$0xff]  ;;  %v4621_v60 = vpack.c.bf16 %v161_v54, %v160_v53  ;;  %v163_v62 = vld [vmem:[%s7361_s3 + $0x78] sm:$0xff] }
  0x17   :  { %4614 = vmatprep.subr.bf16.mxu0 %v4613_v42  ;;  %v162_v61 = vld [vmem:[%s7361_s3 + $0x70] sm:$0xff]  ;;  %v4593_v63 = vpack.c.bf16 %v4228_v59, %v4227_v58 }
  0x18   :  { %4584 = vmatpush3.bf16.msra.mxu1 %v4581_v41  ;;  %v4625_v0 = vpack.c.bf16 %v163_v62, %v162_v61 }
  0x19   :  { %4616 = vmatpush3.bf16.msra.mxu0 %v4613_v42  ;;  %4586 = vmatprep.subr.bf16.mxu1 %v4585_v49 }
  0x1a   :  { %108 = vperm.xlu1 %4719, %v65_v47   ;;  %105 = vperm.xlu0 %4718, %v64_v48  }
  0x1b   :  { %4618 = vmatprep.subr.bf16.mxu0 %v4617_v50 }
  0x1c   :  { %4588 = vmatpush3.bf16.msra.mxu1 %v4585_v49 }
  0x1d   :  { %4620 = vmatpush3.bf16.msra.mxu0 %v4617_v50  ;;  %4590 = vmatprep.subr.bf16.mxu1 %v4589_v57 }
  0x1e   :  { %114 = vperm.xlu1 %4719, %v67_v55   ;;  %111 = vperm.xlu0 %4718, %v66_v56  }
  0x1f   :  { %4622 = vmatprep.subr.bf16.mxu0 %v4621_v60 }
  0x20   :  { %4592 = vmatpush3.bf16.msra.mxu1 %v4589_v57 }
  0x21   :  { %4594 = vmatprep.subr.bf16.mxu1 %v4593_v63  ;;  %4624 = vmatpush3.bf16.msra.mxu0 %v4621_v60 }
  0x22   :  { %4626 = vmatprep.subr.bf16.mxu0 %v4625_v0 }
  0x24   :  { %4596 = vmatpush3.bf16.msra.mxu1 %v4593_v63 }
  0x25   :  { %4628 = vmatpush3.bf16.msra.mxu0 %v4625_v0 }
  0x81   :  { %v76_v3 = vpop.permute.xlu1 %75  ;;  %v70_v4 = vpop.permute.xlu0 %69 }
  0x82   :  { %vm116_vm0 = vcmp.eq.s32.totalorder %v5019_v2, %v70_v4  ;;  %vm118_vm1 = vcmp.eq.s32.totalorder %v5019_v2, %v76_v3  ;;  %v7376_v4 = vmov 683565275  }
  0x83   :  { %4485 = vmatprep.mubr.msk.f32.mxu1 %vm116_vm0, %v4841_v5  ;;  %4541 = vmatprep.mubr.msk.f32.mxu0 %vm116_vm0, %v4841_v5 }
  0x85   :  { %v79_v6 = vpop.permute.xlu1 %78  ;;  %v73_v7 = vpop.permute.xlu0 %72 }
  0x86   :  { %vm117_vm2 = vcmp.eq.s32.totalorder %v5019_v2, %v73_v7  ;;  %vm119_vm3 = vcmp.eq.s32.totalorder %v5019_v2, %v79_v6 }
  0x87   :  { %4486 = vmatmul.mubr.msk.f32.vlgmr.msra.gmra.mrb[0].mxu1 %vm117_vm2, %v4841_v5  ;;  %4542 = vmatmul.mubr.msk.f32.vlgmr.msra.gmra.mrb[0].mxu0 %vm117_vm2, %v4841_v5 }
  0x88   :  { %4488 = vmatprep.mubr.msk.f32.mxu1 %vm118_vm1, %v4841_v5  ;;  %4544 = vmatprep.mubr.msk.f32.mxu0 %vm118_vm1, %v4841_v5 }
  0x89   :  { %v85_v8 = vpop.permute.xlu1 %84  ;;  %v82_v9 = vpop.permute.xlu0 %81 }
  0x8a   :  { %vm120_vm4 = vcmp.eq.s32.totalorder %v5019_v2, %v82_v9  ;;  %vm121_vm5 = vcmp.eq.s32.totalorder %v5019_v2, %v85_v8  ;;  %v7373_v8 = vmov 2475754826  }
  0x8b   :  { %4489 = vmatmul.mubr.msk.f32.gmra.mrb[2].mxu1 %vm119_vm3, %v4841_v5  ;;  %4545 = vmatmul.mubr.msk.f32.gmra.mrb[2].mxu0 %vm119_vm3, %v4841_v5 }
  0x8c   :  { %4491 = vmatprep.mubr.msk.f32.mxu1 %vm120_vm4, %v4841_v5  ;;  %4547 = vmatprep.mubr.msk.f32.mxu0 %vm120_vm4, %v4841_v5 }
  0x8d   :  { %v91_v10 = vpop.permute.xlu1 %90  ;;  %v88_v11 = vpop.permute.xlu0 %87 }
  0x8e   :  { %vm122_vm6 = vcmp.eq.s32.totalorder %v5019_v2, %v88_v11  ;;  %vm123_vm7 = vcmp.eq.s32.totalorder %v5019_v2, %v91_v10  ;;  %v7385_v10 = vmov 2131351028  }
  0x8f   :  { %4492 = vmatmul.mubr.msk.f32.gmra.mrb[4].mxu1 %vm121_vm5, %v4841_v5  ;;  %4548 = vmatmul.mubr.msk.f32.gmra.mrb[4].mxu0 %vm121_vm5, %v4841_v5 }
  0x90   :  { %4494 = vmatprep.mubr.msk.f32.mxu1 %vm122_vm6, %v4841_v5  ;;  %4550 = vmatprep.mubr.msk.f32.mxu0 %vm122_vm6, %v4841_v5 }
  0x91   :  { %v97_v12 = vpop.permute.xlu1 %96  ;;  %v94_v13 = vpop.permute.xlu0 %93 }
  0x92   :  { %vm124_vm8 = vcmp.eq.s32.totalorder %v5019_v2, %v94_v13  ;;  %vm125_vm9 = vcmp.eq.s32.totalorder %v5019_v2, %v97_v12  ;;  %v7380_v12 = vmov 2102212464  }
  0x93   :  { %4495 = vmatmul.mubr.msk.f32.gmra.mrb[6].mxu1 %vm123_vm7, %v4841_v5  ;;  %4551 = vmatmul.mubr.msk.f32.gmra.mrb[6].mxu0 %vm123_vm7, %v4841_v5 }
  0x94   :  { %4497 = vmatprep.mubr.msk.f32.mxu1 %vm124_vm8, %v4841_v5  ;;  %4553 = vmatprep.mubr.msk.f32.mxu0 %vm124_vm8, %v4841_v5 }
  0x95   :  { %v103_v14 = vpop.permute.xlu1 %102  ;;  %v100_v15 = vpop.permute.xlu0 %99 }
  0x96   :  { %vm126_vm10 = vcmp.eq.s32.totalorder %v5019_v2, %v100_v15  ;;  %vm127_vm11 = vcmp.eq.s32.totalorder %v5019_v2, %v103_v14  ;;  %v7368_v14 = vmov 920167782  }
  0x97   :  { %4498 = vmatmul.mubr.msk.f32.gmra.mrb[8].mxu1 %vm125_vm9, %v4841_v5  ;;  %4554 = vmatmul.mubr.msk.f32.gmra.mrb[8].mxu0 %vm125_vm9, %v4841_v5 }
  0x98   :  { %4500 = vmatprep.mubr.msk.f32.mxu1 %vm126_vm10, %v4841_v5  ;;  %4556 = vmatprep.mubr.msk.f32.mxu0 %vm126_vm10, %v4841_v5 }
  0x99   :  { %v109_v16 = vpop.permute.xlu1 %108  ;;  %v106_v17 = vpop.permute.xlu0 %105 }
  0x9a   :  { %vm128_vm12 = vcmp.eq.s32.totalorder %v5019_v2, %v106_v17  ;;  %vm129_vm13 = vcmp.eq.s32.totalorder %v5019_v2, %v109_v16 }
  0x9b   :  { %4501 = vmatmul.mubr.msk.f32.gmra.mrb[10].mxu1 %vm127_vm11, %v4841_v5  ;;  %4557 = vmatmul.mubr.msk.f32.gmra.mrb[10].mxu0 %vm127_vm11, %v4841_v5 }
  0x9c   :  { %4503 = vmatprep.mubr.msk.f32.mxu1 %vm128_vm12, %v4841_v5  ;;  %4559 = vmatprep.mubr.msk.f32.mxu0 %vm128_vm12, %v4841_v5 }
  0x9d   :  { %v112_v18 = vpop.permute.xlu0 %111  ;;  %v115_v19 = vpop.permute.xlu1 %114 }
  0x9e   :  { %vm130_vm14 = vcmp.eq.s32.totalorder %v5019_v2, %v112_v18  ;;  %vm131_vm15 = vcmp.eq.s32.totalorder %v5019_v2, %v115_v19 }
  0x9f   :  { %4504 = vmatmul.mubr.msk.f32.gmra.mrb[12].mxu1 %vm129_vm13, %v4841_v5  ;;  %4560 = vmatmul.mubr.msk.f32.gmra.mrb[12].mxu0 %vm129_vm13, %v4841_v5 }
  0xa0   :  { %4506 = vmatprep.mubr.msk.f32.mxu1 %vm130_vm14, %v4841_v5  ;;  %4562 = vmatprep.mubr.msk.f32.mxu0 %vm130_vm14, %v4841_v5 }
  0xa3   :  { %4507 = vmatmul.mubr.msk.f32.gmra.mrb[14].mxu1 %vm131_vm15, %v4841_v5  ;;  %4563 = vmatmul.mubr.msk.f32.gmra.mrb[14].mxu0 %vm131_vm15, %v4841_v5 }
 0x15a   :  { %v4487_v20 = vpop.f32.mrb[0].mxu1  ;;  %v4543_v21 = vpop.f32.mrb[0].mxu0 }
 0x15b   :  { %v398_v22 = vadd.f32 %v4543_v21, %v4487_v20  ;;  %v247_v23 = vpop.f32.mrb[1].mxu1  ;;  %v392_v24 = vpop.f32.mrb[1].mxu0  ;;  %v7382_v21 = vmov 1326507024  }
 0x15c   :  { %v393_v25 = vadd.f32 %v392_v24, %v247_v23 }
 0x15d   :  { %v5037_v26 = vmul.f32 3.1415927, %v398_v22 }
 0x15e   :  { %v5039_v27 = vmul.f32 3.1415927, %v393_v25  ;;  %v4490_v28 = vpop.f32.mrb[2].mxu1  ;;  %v4546_v29 = vpop.f32.mrb[2].mxu0 }
 0x15f   :  { %v590_v30 = vand.u32 2147483647, %v5037_v26  ;;  %v593_v31 = vand.u32 2139095040, %v5037_v26  ;;  %v257_v32 = vpop.f32.mrb[3].mxu1  ;;  %v402_v33 = vpop.f32.mrb[3].mxu0  ;;  %v408_v37 = vadd.f32 %v4546_v29, %v4490_v28 }
 0x160   :  { %v487_v34 = vand.u32 2147483647, %v5039_v27  ;;  %v490_v35 = vand.u32 2139095040, %v5039_v27  ;;  %v5049_v41 = vadd.f32 %v402_v33, %v257_v32 }
 0x161   :  { %v594_v36 = vshrl.u32 %v593_v31, 23  ;;  %v597_v38 = vand.u32 8388607, %v590_v30  ;;  %v5051_v44 = vmul.f32 3.1415927, %v408_v37 }
 0x162   :  { %v491_v39 = vshrl.u32 %v490_v35, 23  ;;  %v494_v40 = vand.u32 8388607, %v487_v34  ;;  %v4493_v42 = vpop.f32.mrb[4].mxu1  ;;  %v4549_v45 = vpop.f32.mrb[4].mxu0 }
 0x163   :  { %v4265_v43 = vadd.s32 4294967169, %v594_v36  ;;  %v5053_v46 = vpop.f32.mrb[5].mxu1  ;;  %v5055_v48 = vadd.f32 %v4549_v45, %v4493_v42  ;;  %v5057_v49 = vpop.f32.mrb[5].mxu0  ;;  %v598_v51 = vor.u32 8388608, %v597_v38  ;;  %v799_v54 = vand.u32 2139095040, %v5051_v44 }
 0x164   :  { %v4261_v47 = vadd.s32 4294967169, %v491_v39  ;;  %v495_v52 = vor.u32 8388608, %v494_v40 }
 0x165   :  { %v600_v50 = vadd.s32 1, %v4265_v43  ;;  %v800_v58 = vshrl.u32 %v799_v54, 23  ;;  %v5064_v62 = vshll.u32 %v598_v51, 8 }
 0x166   :  { %v497_v53 = vadd.s32 1, %v4261_v47  ;;  %v5060_v55 = vpop.f32.mrb[6].mxu1  ;;  %v5062_v56 = vpop.f32.mrb[6].mxu0  ;;  %v5068_v0 = vshll.u32 %v495_v52, 8 }
 0x167   :  { %vm601_vm0 = vcmp.gt.s32.totalorder %v600_v50, 0  ;;  %v5071_v7 = vadd.s32 4294967169, %v800_v58 }
 0x168   :  { %v602_v57 = vsel %vm601_vm0, %v600_v50, 0  ;;  %vm498_vm1 = vcmp.gt.s32.totalorder %v497_v53, 0 }
 0x169   :  { %v603_v59 = vshrl.u32 %v602_v57, 5  ;;  %v604_v60 = vand.u32 31, %v602_v57  ;;  %v499_v61 = vsel %vm498_vm1, %v497_v53, 0 }
 0x16a   :  { %v5066_v63 = vshrl.u32 %v499_v61, 5  ;;  %v501_v6 = vand.u32 31, %v499_v61 }
 0x16b   :  { %v605_v3 = vsub.s32 32, %v604_v60  ;;  %v607_v5 = vshll.u32 %v7376_v4, %v604_v60  ;;  %v610_v9 = vshll.u32 %v7373_v8, %v604_v60  ;;  %v613_v11 = vshll.u32 %v7385_v10, %v604_v60 }
 0x16c   :  { %v616_v13 = vshll.u32 %v7380_v12, %v604_v60  ;;  %v619_v15 = vshll.u32 %v7368_v14, %v604_v60  ;;  %vm622_vm2 = vcmp.lt.s32.totalorder %v603_v59, 1  ;;  %vm623_vm3 = vcmp.lt.s32.totalorder %v603_v59, 2 }
 0x16d   :  { %v608_v16 = vshrl.u32 %v7373_v8, %v605_v3  ;;  %v611_v17 = vshrl.u32 %v7385_v10, %v605_v3  ;;  %v614_v18 = vshrl.u32 %v7380_v12, %v605_v3  ;;  %v606_v19 = vshrl.u32 %v7376_v4, %v605_v3 }
 0x16e   :  { %v617_v20 = vshrl.u32 %v7368_v14, %v605_v3  ;;  %v620_v22 = vshrl.u32 %v7382_v21, %v605_v3  ;;  %v502_v28 = vsub.s32 32, %v501_v6  ;;  %vm624_vm4 = vcmp.lt.s32.totalorder %v603_v59, 3 }
 0x16f   :  { %v609_v23 = vor.u32 %v608_v16, %v607_v5  ;;  %v612_v24 = vor.u32 %v611_v17, %v610_v9  ;;  %v615_v25 = vor.u32 %v614_v18, %v613_v11  ;;  %vm625_vm5 = vcmp.lt.s32.totalorder %v603_v59, 4 }
 0x170   :  { %v618_v29 = vor.u32 %v617_v20, %v616_v13  ;;  %v621_v31 = vor.u32 %v620_v22, %v619_v15  ;;  %v504_v40 = vshll.u32 %v7376_v4, %v501_v6  ;;  %v505_v45 = vshrl.u32 %v7373_v8, %v502_v28  ;;  %v5115_v22 = vpop.f32.mrb[7].mxu1 }
 0x171   :  { %v626_v32 = vsel %vm622_vm2, %v606_v19, %v609_v23  ;;  %v627_v33 = vsel %vm625_vm5, %v615_v25, 2102212464  ;;  %v630_v35 = vsel %vm622_vm2, %v609_v23, %v612_v24  ;;  %v634_v36 = vsel %vm622_vm2, %v612_v24, %v615_v25  ;;  %v5117_v23 = vpop.f32.mrb[7].mxu0 }
 0x172   :  { %v628_v37 = vsel %vm624_vm4, %v612_v24, %v627_v33  ;;  %v631_v38 = vsel %vm625_vm5, %v618_v29, 920167782  ;;  %v635_v39 = vsel %vm625_vm5, %v621_v31, 1326507024  ;;  %v507_v47 = vshll.u32 %v7373_v8, %v501_v6 }
 0x173   :  { %v632_v42 = vsel %vm624_vm4, %v615_v25, %v631_v38  ;;  %v636_v43 = vsel %vm624_vm4, %v618_v29, %v635_v39  ;;  %v629_v50 = vsel %vm623_vm3, %v626_v32, %v628_v37  ;;  %v508_v53 = vshrl.u32 %v7385_v10, %v502_v28 }
 0x174   :  { %v633_v51 = vsel %vm623_vm3, %v630_v35, %v632_v42  ;;  %v637_v52 = vsel %vm623_vm3, %v634_v36, %v636_v43  ;;  %v506_v61 = vor.u32 %v505_v45, %v504_v40  ;;  %v510_v5 = vshll.u32 %v7385_v10, %v501_v6 }
 0x175   :  { %v5094_v54 = vmul.u32.u64.low %v5064_v62, %v637_v52  ;;  %v5095_v57 = vmul.u32.u64.high %v5064_v62, %v637_v52, %v5094_v54  ;;  %v5098_v58 = vmul.u32.u64.low %v5064_v62, %v633_v51  ;;  %v5099_v60 = vmul.u32.u64.high %v5064_v62, %v633_v51, %v5098_v58 }
 0x176   :  { %v509_v3 = vor.u32 %v508_v53, %v507_v47  ;;  %v511_v9 = vshrl.u32 %v7380_v12, %v502_v28  ;;  %v503_v59 = vshrl.u32 %v7376_v4, %v502_v28  ;;  %v513_v11 = vshll.u32 %v7380_v12, %v501_v6 }
 0x177   :  { %v514_v13 = vshrl.u32 %v7368_v14, %v502_v28  ;;  %v517_v15 = vshrl.u32 %v7382_v21, %v502_v28  ;;  %v645_v16 = vmul.u32 %v5064_v62, %v629_v50  ;;  %v516_v18 = vshll.u32 %v7368_v14, %v501_v6 }
 0x178   :  { %v512_v17 = vor.u32 %v511_v9, %v510_v5  ;;  %vm519_vm6 = vcmp.lt.s32.totalorder %v5066_v63, 1  ;;  %vm647_vm7 = vc.u32 %v5095_v57, %v5098_v58  ;;  %v648_v19 = vadd.s32 1, %v5099_v60 }
 0x179   :  { %v515_v20 = vor.u32 %v514_v13, %v513_v11  ;;  %vm520_vm8 = vcmp.lt.s32.totalorder %v5066_v63, 2  ;;  %v518_v24 = vor.u32 %v517_v15, %v516_v18  ;;  %vm521_vm9 = vcmp.lt.s32.totalorder %v5066_v63, 3 }
 0x17a   :  { %vm522_vm10 = vcmp.lt.s32.totalorder %v5066_v63, 4  ;;  %v527_v62 = vsel %vm519_vm6, %v506_v61, %v509_v3  ;;  %v649_v6 = vsel %vm647_vm7, %v648_v19, %v5099_v60  ;;  %v531_v29 = vsel %vm519_vm6, %v509_v3, %v512_v17 }
 0x17b   :  { %v524_v25 = vsel %vm522_vm10, %v512_v17, 2102212464  ;;  %v528_v28 = vsel %vm522_vm10, %v515_v20, 920167782  ;;  %v650_v31 = vadd.s32 %v649_v6, %v645_v16  ;;  %v523_v32 = vsel %vm519_vm6, %v503_v59, %v506_v61 }
 0x17c   :  { %v529_v33 = vsel %vm521_vm9, %v512_v17, %v528_v28  ;;  %v532_v35 = vsel %vm522_vm10, %v518_v24, 1326507024  ;;  %v525_v36 = vsel %vm521_vm9, %v509_v3, %v524_v25  ;;  %v806_v39 = vadd.s32 1, %v5071_v7 }
 0x17d   :  { %v530_v37 = vsel %vm520_vm8, %v527_v62, %v529_v33  ;;  %v533_v38 = vsel %vm521_vm9, %v515_v20, %v532_v35  ;;  %v651_v40 = vadd.s32 536870912, %v650_v31  ;;  %v526_v52 = vsel %vm520_vm8, %v523_v32, %v525_v36 }
 0x17e   :  { %v534_v42 = vsel %vm520_vm8, %v531_v29, %v533_v38  ;;  %v5134_v43 = vmul.u32.u64.low %v5068_v0, %v530_v37  ;;  %v5135_v45 = vmul.u32.u64.high %v5068_v0, %v530_v37, %v5134_v43  ;;  %vm807_vm11 = vcmp.gt.s32.totalorder %v806_v39, 0 }
 0x17f   :  { %v5139_v47 = vmul.u32.u64.low %v5068_v0, %v534_v42  ;;  %v5140_v50 = vmul.u32.u64.high %v5068_v0, %v534_v42, %v5139_v47  ;;  %v5142_v51 = vshrl.u32 %v651_v40, 30  ;;  %v808_v7 = vsel %vm807_vm11, %v806_v39, 0 }
 0x180   :  { %v545_v54 = vadd.s32 1, %v5135_v45  ;;  %v796_v60 = vand.u32 2147483647, %v5051_v44  ;;  %v542_v3 = vmul.u32 %v5068_v0, %v526_v52  ;;  %v810_v9 = vand.u32 31, %v808_v7 }
 0x181   :  { %v653_v53 = vshll.u32 %v5142_v51, 30  ;;  %vm544_vm12 = vc.u32 %v5140_v50, %v5134_v43  ;;  %v5156_v16 = vmul.f32 3.1415927, %v5049_v41  ;;  %v5160_v62 = vshrl.u32 %v808_v7, 5 }
 0x182   :  { %v546_v5 = vsel %vm544_vm12, %v545_v54, %v5135_v45  ;;  %v803_v13 = vand.u32 8388607, %v796_v60  ;;  %v811_v15 = vsub.s32 32, %v810_v9  ;;  %v813_v41 = vshll.u32 %v7376_v4, %v810_v9 }
 0x183   :  { %v654_v61 = vsub.s32 %v650_v31, %v653_v53  ;;  %v547_v11 = vadd.s32 %v546_v5, %v542_v3  ;;  %v696_v0 = vand.u32 2139095040, %v5156_v16  ;;  %v822_v31 = vshll.u32 %v7380_v12, %v810_v9 }
 0x184   :  { %v804_v20 = vor.u32 8388608, %v803_v13  ;;  %v823_v24 = vshrl.u32 %v7368_v14, %v811_v15  ;;  %v814_v6 = vshrl.u32 %v7373_v8, %v811_v15  ;;  %v817_v25 = vshrl.u32 %v7385_v10, %v811_v15 }
 0x185   :  { %v656_v59 = vsub.s32 0, %v654_v61  ;;  %v548_v18 = vadd.s32 536870912, %v547_v11  ;;  %v820_v28 = vshrl.u32 %v7380_v12, %v811_v15  ;;  %v816_v33 = vshll.u32 %v7373_v8, %v810_v9 }
 0x186   :  { %v819_v35 = vshll.u32 %v7385_v10, %v810_v9  ;;  %v826_v36 = vshrl.u32 %v7382_v21, %v811_v15  ;;  %v646_v37 = vadd.s32 %v5098_v58, %v5095_v57  ;;  %v824_v40 = vor.u32 %v823_v24, %v822_v31 }
 0x187   :  { %v4266_v63 = vmin.u32 %v656_v59, %v654_v61  ;;  %v5165_v29 = vshrl.u32 %v548_v18, 30  ;;  %v815_v42 = vor.u32 %v814_v6, %v813_v41  ;;  %v818_v45 = vor.u32 %v817_v25, %v816_v33 }
 0x188   :  { %v821_v47 = vor.u32 %v820_v28, %v819_v35  ;;  %v825_v52 = vshll.u32 %v7368_v14, %v810_v9  ;;  %vm831_vm14 = vcmp.lt.s32.totalorder %v5160_v62, 4  ;;  %v844_v59 = vshll.u32 %v804_v20, 8 }
 0x189   :  { %v658_v17 = vclz %v4266_v63  ;;  %v550_v3 = vshll.u32 %v5165_v29, 30  ;;  %v697_v63 = vshrl.u32 %v696_v0, 23  ;;  %vm828_vm15 = vcmp.lt.s32.totalorder %v5160_v62, 1 }
 0x18a   :  { %v827_v5 = vor.u32 %v826_v36, %v825_v52  ;;  %v837_v58 = vsel %vm831_vm14, %v824_v40, 920167782  ;;  %vm830_vm0 = vcmp.lt.s32.totalorder %v5160_v62, 3  ;;  %v836_v9 = vsel %vm828_vm15, %v815_v42, %v818_v45 }
 0x18b   :  { %v4267_v19 = vadd.s32 4294967294, %v658_v17  ;;  %v676_v17 = vsub.s32 4, %v5142_v51  ;;  %v838_v20 = vsel %vm830_vm0, %v821_v47, %v837_v58  ;;  %v840_v24 = vsel %vm828_vm15, %v818_v45, %v821_v47 }
 0x18c   :  { %vm829_vm1 = vcmp.lt.s32.totalorder %v5160_v62, 2  ;;  %v841_v6 = vsel %vm831_vm14, %v827_v5, 1326507024  ;;  %v4269_v41 = vadd.s32 4294967169, %v697_v63  ;;  %vm592_vm2 = vcmp.lt.s32.totalorder %v5037_v26, 0 }
 0x18d   :  { %vm4268_vm13 = vcmp.lt.s32.totalorder %v4267_v19, 0  ;;  %v842_v28 = vsel %vm830_vm0, %v824_v40, %v841_v6  ;;  %vm591_vm3 = vcmp.le.f32.partialorder %v590_v30, 0.7853982  ;;  %vm682_vm6 = vweird.f32 %v5037_v26 }
 0x18e   :  { %v661_v32 = vsel %vm4268_vm13, 0, %v4267_v19  ;;  %v5185_v19 = vsub.s32 %v547_v11, %v550_v3  ;;  %v839_v11 = vsel %vm829_vm1, %v836_v9, %v838_v20  ;;  %v5228_v3 = vadd.f32 %v5062_v56, %v5060_v55 }
 0x18f   :  { %v662_v38 = vsub.s32 32, %v661_v32  ;;  %v666_v39 = vsub.s32 4294967266, %v661_v32  ;;  %v663_v7 = vshll.u32 %v654_v61, %v661_v32  ;;  %v812_v61 = vshrl.u32 %v7376_v4, %v811_v15 }
 0x190   :  { %v833_v15 = vsel %vm831_vm14, %v821_v47, 2102212464  ;;  %v843_v32 = vsel %vm829_vm1, %v840_v24, %v842_v28  ;;  %v553_v40 = vsub.s32 0, %v5185_v19  ;;  %v7365_v9 = vand.u32 2147483647, %v5156_v16 }
 0x191   :  { %v664_v53 = vshrl.u32 %v646_v37, %v662_v38  ;;  %v667_v54 = vadd.s32 127, %v666_v39  ;;  %v832_v31 = vsel %vm828_vm15, %v812_v61, %v815_v42  ;;  %v834_v35 = vsel %vm830_vm0, %v818_v45, %v833_v15  ;;  %v5209_v38 = vpop.f32.mrb[8].mxu1  ;;  %v5211_v39 = vpop.f32.mrb[8].mxu0 }
 0x192   :  { %v5206_v36 = vmul.u32.u64.low %v844_v59, %v843_v32  ;;  %v5207_v37 = vmul.u32.u64.high %v844_v59, %v843_v32, %v5206_v36  ;;  %v5215_v47 = vmul.u32.u64.low %v844_v59, %v839_v11  ;;  %v5216_v42 = vmul.u32.u64.high %v844_v59, %v839_v11, %v5215_v47 }
 0x193   :  { %v665_v13 = vor.u32 %v664_v53, %v663_v7  ;;  %v668_v57 = vshll.u32 %v667_v54, 23  ;;  %v677_v7 = vsel %vm592_vm2, %v676_v17, %v5142_v51  ;;  %v703_v53 = vadd.s32 1, %v4269_v41 }
 0x194   :  { %v835_v45 = vsel %vm829_vm1, %v832_v31, %v834_v35  ;;  %v5224_v54 = vadd.f32 %v5057_v49, %v5053_v46  ;;  %vm853_vm4 = vc.u32 %v5207_v37, %v5215_v47  ;;  %v679_v62 = vsel %vm591_vm3, 0, %v677_v7 }
 0x195   :  { %v669_v18 = vor.u32 4788187, %v668_v57  ;;  %v672_v0 = vcvt.s32.f32 %v665_v13  ;;  %vm704_vm5 = vcmp.gt.s32.totalorder %v703_v53, 0  ;;  %v4262_v63 = vmin.u32 %v553_v40, %v5185_v19 }
 0x196   :  { %v854_v46 = vadd.s32 1, %v5216_v42  ;;  %v851_v49 = vmul.u32 %v844_v59, %v835_v45  ;;  %v705_v56 = vsel %vm704_vm5, %v703_v53, 0  ;;  %v2364_v13 = vadd.s32 3, %v679_v62  ;;  %v19_v53 = vld [vmem:[%s7359_s1 + $0x8] sm:$0xff] }
 0x197   :  { %v670_v25 = vand.u32 2147483647, %v669_v18  ;;  %v555_v57 = vclz %v4262_v63  ;;  %v707_v17 = vand.u32 31, %v705_v56  ;;  %v683_v61 = vand.u32 3, %v679_v62 }
 0x198   :  { %v855_v55 = vsel %vm853_vm4, %v854_v46, %v5216_v42  ;;  %v2365_v18 = vand.u32 3, %v2364_v13  ;;  %v5247_v15 = vand.u32 8388607, %v7365_v9  ;;  %v5251_v41 = vshrl.u32 %v705_v56, 5  ;;  %v35_v56 = vld [vmem:[%s7360_s2 + $0x8] sm:$0xff] }
 0x199   :  { %v673_v33 = vmul.f32 %v672_v0, %v670_v25  ;;  %v856_v30 = vadd.s32 %v855_v55, %v851_v49  ;;  %v4263_v24 = vadd.s32 4294967294, %v555_v57  ;;  %v5243_v0 = vsub.s32 32, %v707_v17 }
 0x19a   :  { %vm684_vm7 = vcmp.lt.s32.totalorder %v683_v61, 2  ;;  %vm685_vm8 = vcmp.eq.s32.totalorder %v683_v61, 0  ;;  %vm688_vm9 = vcmp.eq.s32.totalorder %v683_v61, 2  ;;  %vm2366_vm10 = vcmp.lt.s32.totalorder %v2365_v18, 2 }
 0x19b   :  { %v674_v52 = vxor.u32 2147483648, %v673_v33  ;;  %v857_v58 = vadd.s32 536870912, %v856_v30  ;;  %vm2367_vm11 = vcmp.eq.s32.totalorder %v2365_v18, 0  ;;  %vm2370_vm12 = vcmp.eq.s32.totalorder %v2365_v18, 2 }
 0x19c   :  { %vm4264_vm13 = vcmp.lt.s32.totalorder %v4263_v24, 0  ;;  %v710_v31 = vshll.u32 %v7376_v4, %v707_v17  ;;  %v719_v35 = vshll.u32 %v7380_v12, %v707_v17  ;;  %v720_v36 = vshrl.u32 %v7368_v14, %v5243_v0 }
 0x19d   :  { %v675_v5 = vsel %vm592_vm2, %v674_v52, %v673_v33  ;;  %v5239_v20 = vshrl.u32 %v857_v58, 30  ;;  %v713_v33 = vshll.u32 %v7373_v8, %v707_v17  ;;  %v723_v7 = vshrl.u32 %v7382_v21, %v5243_v0 }
 0x19e   :  { %v678_v51 = vsel %vm591_vm3, %v5037_v26, %v675_v5  ;;  %v717_v62 = vshrl.u32 %v7380_v12, %v5243_v0  ;;  %v711_v49 = vshrl.u32 %v7373_v8, %v5243_v0  ;;  %v722_v55 = vshll.u32 %v7368_v14, %v707_v17 }
 0x19f   :  { %4720 = vcosq.f32 %v678_v51  ;;  %v859_v59 = vshll.u32 %v5239_v20, 30  ;;  %v716_v57 = vshll.u32 %v7385_v10, %v707_v17  ;;  %v721_v58 = vor.u32 %v720_v36, %v719_v35 }
 0x1a0   :  { %4722 = vsinq.f32 %v678_v51  ;;  %v714_v51 = vshrl.u32 %v7385_v10, %v5243_v0  ;;  %vm728_vm14 = vcmp.lt.s32.totalorder %v5251_v41, 4  ;;  %v5292_v26 = vmul.f32 3.1415927, %v5055_v48 }
 0x1a1   :  { %v5249_v25 = vsub.s32 %v856_v30, %v859_v59  ;;  %v701_v17 = vor.u32 8388608, %v5247_v15  ;;  %vm725_vm15 = vcmp.lt.s32.totalorder %v5251_v41, 1  ;;  %v734_v35 = vsel %vm728_vm14, %v721_v58, 920167782 }
 0x1a2   :  { %vm727_vm0 = vcmp.lt.s32.totalorder %v5251_v41, 3  ;;  %vm726_vm1 = vcmp.lt.s32.totalorder %v5251_v41, 2 }
 0x1a3   :  { %v862_v52 = vsub.s32 0, %v5249_v25 }
 0x1a5   :  { %v4274_v59 = vmin.u32 %v862_v52, %v5249_v25 }
 0x1a9   :  { %v4721_v6 = vpop.eup %4720 }
 0x1aa   :  { %v4723_v11 = vpop.eup %4722  ;;  %v689_v28 = vxor.u32 2147483648, %v4721_v6 }
 0x1ab   :  { %v686_v32 = vxor.u32 2147483648, %v4723_v11 }
 0x1ac   :  { %v690_v40 = vsel %vm688_vm9, %v689_v28, %v4723_v11  ;;  %v2372_v42 = vsel %vm2370_vm12, %v689_v28, %v4723_v11  ;;  %v5285_v11 = vpop.f32.mrb[9].mxu1  ;;  %v5287_v28 = vpop.f32.mrb[9].mxu0  ;;  %vm489_vm9 = vcmp.lt.s32.totalorder %v5039_v27, 0 }
 0x1ad   :  { %v687_v45 = vsel %vm685_vm8, %v4721_v6, %v686_v32  ;;  %v2369_v5 = vsel %vm2367_vm11, %v4721_v6, %v686_v32  ;;  %v724_v6 = vor.u32 %v723_v7, %v722_v55  ;;  %v558_v32 = vsel %vm4264_vm13, 0, %v4263_v24 }
 0x1ae   :  { %v691_v63 = vsel %vm684_vm7, %v687_v45, %v690_v40  ;;  %v2373_v46 = vsel %vm2366_vm10, %v2369_v5, %v2372_v42  ;;  %v715_v40 = vor.u32 %v714_v51, %v713_v33  ;;  %v718_v42 = vor.u32 %v717_v62, %v716_v57 }
 0x1af   :  { %v692_v13 = vsel %vm682_vm6, nan, %v691_v63  ;;  %v2374_v30 = vsel %vm682_vm6, nan, %v2373_v46  ;;  %v712_v5 = vor.u32 %v711_v49, %v710_v31  ;;  %v864_v7 = vclz %v4274_v59 }
 0x1b0   :  { %v2136_v61 = vmul.f32 %v692_v13, %v19_v53  ;;  %v3832_v18 = vmul.f32 %v2374_v30, %v19_v53  ;;  %v738_v24 = vsel %vm728_vm14, %v724_v6, 1326507024  ;;  %v563_v33 = vsub.s32 4294967266, %v558_v32 }
 0x1b1   :  { %v737_v48 = vsel %vm725_vm15, %v715_v40, %v718_v42  ;;  %v733_v15 = vsel %vm725_vm15, %v712_v5, %v715_v40  ;;  %v735_v53 = vsel %vm727_vm0, %v718_v42, %v734_v35  ;;  %v1005_v51 = vand.u32 2139095040, %v5292_v26 }
 0x1b2   :  { %v2152_v45 = vsub.f32 %v2136_v61, %v35_v56  ;;  %v3864_v52 = vmul.f32 %v3832_v18, %v3832_v18  ;;  %v739_v62 = vsel %vm727_vm0, %v721_v58, %v738_v24  ;;  %v4275_v63 = vadd.s32 4294967294, %v864_v7 }
 0x1b3   :  { %v730_v46 = vsel %vm728_vm14, %v718_v42, 2102212464  ;;  %v740_v49 = vsel %vm726_vm1, %v737_v48, %v739_v62  ;;  %v741_v55 = vshll.u32 %v701_v17, 8  ;;  %v559_v56 = vsub.s32 32, %v558_v32 }
 0x1b4   :  { %v3848_v36 = vmul.f32 %v2152_v45, %v2152_v45  ;;  %v709_v13 = vshrl.u32 %v7376_v4, %v5243_v0  ;;  %v736_v30 = vsel %vm726_vm1, %v733_v15, %v735_v53  ;;  %v564_v57 = vadd.s32 127, %v563_v33 }
 0x1b5   :  { %v5321_v61 = vmul.u32.u64.low %v741_v55, %v740_v49  ;;  %v5322_v18 = vmul.u32.u64.high %v741_v55, %v740_v49, %v5321_v61  ;;  %v1006_v58 = vshrl.u32 %v1005_v51, 23  ;;  %v543_v59 = vadd.s32 %v5134_v43, %v5140_v50 }
 0x1b6   :  { %v5303_v31 = vadd.f32 %v3864_v52, %v3848_v36  ;;  %v729_v6 = vsel %vm725_vm15, %v709_v13, %v712_v5  ;;  %v731_v42 = vsel %vm727_vm0, %v715_v40, %v730_v46  ;;  %vm4276_vm2 = vcmp.lt.s32.totalorder %v4275_v63, 0 }
 0x1b7   :  { %v5330_v45 = vmul.u32.u64.low %v741_v55, %v736_v30  ;;  %v5331_v0 = vmul.u32.u64.high %v741_v55, %v736_v30, %v5330_v45  ;;  %v4281_v17 = vadd.s32 4294967169, %v1006_v58  ;;  %v561_v35 = vshrl.u32 %v543_v59, %v559_v56 }
 0x1b8   :  { %7393 = vst [vmem:[#allocation6_spill] sm:$0xff] %v5303_v31  ;;  %v565_v36 = vshll.u32 %v564_v57, 23  ;;  %v732_v52 = vsel %vm726_vm1, %v729_v6, %v731_v42  ;;  %v560_v43 = vshll.u32 %v5185_v19, %v558_v32  ;;  %v5337_v50 = vsel %vm4276_vm2, 0, %v4275_v63 }
 0x1b9   :  { %v1012_v7 = vadd.s32 1, %v4281_v17  ;;  %vm750_vm3 = vc.u32 %v5322_v18, %v5330_v45  ;;  %v751_v40 = vadd.s32 1, %v5331_v0  ;;  %v748_v24 = vmul.u32 %v741_v55, %v732_v52 }
 0x1ba   :  { %v562_v5 = vor.u32 %v561_v35, %v560_v43  ;;  %v566_v48 = vor.u32 4788187, %v565_v36  ;;  %v872_v15 = vsub.s32 4294967266, %v5337_v50  ;;  %v7364_v19 = vand.u32 2147483647, %v5292_v26 }
 0x1bb   :  { %vm1013_vm4 = vcmp.gt.s32.totalorder %v1012_v7, 0  ;;  %v752_v41 = vsel %vm750_vm3, %v751_v40, %v5331_v0  ;;  %v852_v63 = vadd.s32 %v5215_v47, %v5207_v37  ;;  %v5348_v49 = vmul.f32 3.1415927, %v5224_v54 }
 0x1bc   :  { %v1014_v33 = vsel %vm1013_vm4, %v1012_v7, 0  ;;  %v753_v51 = vadd.s32 %v752_v41, %v748_v24  ;;  %v569_v62 = vcvt.s32.f32 %v562_v5  ;;  %v567_v55 = vand.u32 2147483647, %v566_v48 }
 0x1bd   :  { %v1016_v53 = vand.u32 31, %v1014_v33  ;;  %v868_v56 = vsub.s32 32, %v5337_v50  ;;  %v873_v13 = vadd.s32 127, %v872_v15  ;;  %v1009_v61 = vand.u32 8388607, %v7364_v19 }
 0x1be   :  { %v754_v46 = vadd.s32 536870912, %v753_v51  ;;  %v1015_v0 = vshrl.u32 %v1014_v33, 5  ;;  %v902_v35 = vand.u32 2139095040, %v5348_v49  ;;  %v570_v40 = vmul.f32 %v569_v62, %v567_v55 }
 0x1bf   :  { %v1017_v32 = vsub.s32 32, %v1016_v53  ;;  %v1022_v37 = vshll.u32 %v7373_v8, %v1016_v53  ;;  %v1025_v47 = vshll.u32 %v7385_v10, %v1016_v53  ;;  %v1031_v54 = vshll.u32 %v7368_v14, %v1016_v53 }
 0x1c0   :  { %v5352_v57 = vshrl.u32 %v754_v46, 30  ;;  %v1028_v17 = vshll.u32 %v7380_v12, %v1016_v53  ;;  %v870_v48 = vshrl.u32 %v852_v63, %v868_v56  ;;  %v874_v15 = vshll.u32 %v873_v13, 23 }
 0x1c1   :  { %v1023_v30 = vshrl.u32 %v7385_v10, %v1017_v32  ;;  %v1026_v58 = vshrl.u32 %v7380_v12, %v1017_v32  ;;  %v1029_v59 = vshrl.u32 %v7368_v14, %v1017_v32  ;;  %v1032_v6 = vshrl.u32 %v7382_v21, %v1017_v32 }
 0x1c2   :  { %v756_v42 = vshll.u32 %v5352_v57, 30  ;;  %v1020_v36 = vshrl.u32 %v7373_v8, %v1017_v32  ;;  %v1019_v41 = vshll.u32 %v7376_v4, %v1016_v53  ;;  %vm1034_vm5 = vcmp.lt.s32.totalorder %v1015_v0, 1 }
 0x1c3   :  { %v1024_v52 = vor.u32 %v1023_v30, %v1022_v37  ;;  %v1027_v7 = vor.u32 %v1026_v58, %v1025_v47  ;;  %v1033_v43 = vor.u32 %v1032_v6, %v1031_v54  ;;  %v1030_v24 = vor.u32 %v1029_v59, %v1028_v17 }
 0x1c4   :  { %v5366_v5 = vsub.s32 %v753_v51, %v756_v42  ;;  %vm1037_vm6 = vcmp.lt.s32.totalorder %v1015_v0, 4  ;;  %v903_v33 = vshrl.u32 %v902_v35, 23  ;;  %v1010_v1 = vor.u32 8388608, %v1009_v61 }
 0x1c5   :  { %v1021_v19 = vor.u32 %v1020_v36, %v1019_v41  ;;  %v1046_v9 = vsel %vm1034_vm5, %v1024_v52, %v1027_v7  ;;  %v1047_v30 = vsel %vm1037_vm6, %v1033_v43, 1326507024  ;;  %v571_v58 = vxor.u32 2147483648, %v570_v40  ;;  %v5390_v36 = vpop.f32.mrb[10].mxu0 }
 0x1c6   :  { %v759_v46 = vsub.s32 0, %v5366_v5  ;;  %vm1036_vm7 = vcmp.lt.s32.totalorder %v1015_v0, 3  ;;  %v1043_v51 = vsel %vm1037_vm6, %v1030_v24, 920167782  ;;  %v869_v62 = vshll.u32 %v5249_v25, %v5337_v50 }
 0x1c7   :  { %v875_v63 = vor.u32 4788187, %v874_v15  ;;  %vm1035_vm8 = vcmp.lt.s32.totalorder %v1015_v0, 2  ;;  %v1048_v53 = vsel %vm1036_vm7, %v1030_v24, %v1047_v30  ;;  %v4277_v13 = vadd.s32 4294967169, %v903_v33 }
 0x1c8   :  { %v4270_v55 = vmin.u32 %v759_v46, %v5366_v5  ;;  %v1049_v56 = vsel %vm1035_vm8, %v1046_v9, %v1048_v53  ;;  %v871_v61 = vor.u32 %v870_v48, %v869_v62  ;;  %v1042_v59 = vsel %vm1034_vm5, %v1021_v19, %v1024_v52  ;;  %v5388_v9 = vpop.f32.mrb[10].mxu1 }
 0x1c9   :  { %v1044_v37 = vsel %vm1036_vm7, %v1027_v7, %v1043_v51  ;;  %v1050_v47 = vshll.u32 %v1010_v1, 8  ;;  %v572_v25 = vsel %vm489_vm9, %v571_v58, %v570_v40  ;;  %v1039_v50 = vsel %vm1037_vm6, %v1027_v7, 2102212464 }
 0x1ca   :  { %v909_v54 = vadd.s32 1, %v4277_v13  ;;  %v876_v6 = vand.u32 2147483647, %v875_v63  ;;  %v1018_v42 = vshrl.u32 %v7376_v4, %v1017_v32  ;;  %vm5394_vm10 = vcmp.le.f32.partialorder %v487_v34, 0.7853982 }
 0x1cb   :  { %v5385_v17 = vmul.u32.u64.low %v1050_v47, %v1049_v56  ;;  %v5386_v35 = vmul.u32.u64.high %v1050_v47, %v1049_v56, %v5385_v17  ;;  %v761_v43 = vclz %v4270_v55  ;;  %v1045_v7 = vsel %vm1035_vm8, %v1042_v59, %v1044_v37 }
 0x1cc   :  { %vm910_vm11 = vcmp.gt.s32.totalorder %v909_v54, 0  ;;  %v878_v40 = vcvt.s32.f32 %v871_v61  ;;  %v1038_v32 = vsel %vm1034_vm5, %v1018_v42, %v1021_v19  ;;  %v1040_v24 = vsel %vm1036_vm7, %v1024_v52, %v1039_v50 }
 0x1cd   :  { %v911_v48 = vsel %vm910_vm11, %v909_v54, 0  ;;  %v575_v15 = vsel %vm5394_vm10, %v5039_v27, %v572_v25  ;;  %v5404_v46 = vmul.u32.u64.low %v1050_v47, %v1045_v7  ;;  %v5405_v34 = vmul.u32.u64.high %v1050_v47, %v1045_v7, %v5404_v46 }
 0x1ce   :  { %v879_v41 = vmul.f32 %v878_v40, %v876_v6  ;;  %v7367_v33 = vand.u32 2147483647, %v5348_v49  ;;  %v4271_v30 = vadd.s32 4294967294, %v761_v43  ;;  %v1041_v58 = vsel %vm1035_vm8, %v1038_v32, %v1040_v24 }
 0x1cf   :  { %v913_v51 = vand.u32 31, %v911_v48  ;;  %4724 = vcosq.f32 %v575_v15  ;;  %vm1059_vm12 = vc.u32 %v5386_v35, %v5404_v46  ;;  %vm798_vm13 = vcmp.lt.s32.totalorder %v5051_v44, 0 }
 0x1d0   :  { %v880_v52 = vxor.u32 2147483648, %v879_v41  ;;  %v1057_v62 = vmul.u32 %v1050_v47, %v1041_v58  ;;  %v1060_v63 = vadd.s32 1, %v5405_v34  ;;  %v906_v53 = vand.u32 8388607, %v7367_v33 }
 0x1d1   :  { %v914_v19 = vsub.s32 32, %v913_v51  ;;  %vm4272_vm14 = vcmp.lt.s32.totalorder %v4271_v30, 0  ;;  %v916_v55 = vshll.u32 %v7376_v4, %v913_v51  ;;  %v919_v56 = vshll.u32 %v7373_v8, %v913_v51 }
 0x1d2   :  { %v1061_v13 = vsel %vm1059_vm12, %v1060_v63, %v5405_v34  ;;  %v922_v59 = vshll.u32 %v7385_v10, %v913_v51  ;;  %vm5425_vm15 = vcmp.le.f32.partialorder %v796_v60, 0.7853982  ;;  %v912_v50 = vshrl.u32 %v911_v48, 5 }
 0x1d3   :  { %v917_v0 = vshrl.u32 %v7373_v8, %v914_v19  ;;  %v920_v61 = vshrl.u32 %v7385_v10, %v914_v19  ;;  %v923_v37 = vshrl.u32 %v7380_v12, %v914_v19  ;;  %v1062_v25 = vadd.s32 %v1061_v13, %v1057_v62 }
 0x1d4   :  { %v925_v54 = vshll.u32 %v7380_v12, %v913_v51  ;;  %v926_v6 = vshrl.u32 %v7368_v14, %v914_v19  ;;  %v5431_v42 = vsel %vm4272_vm14, 0, %v4271_v30  ;;  %v928_v24 = vshll.u32 %v7368_v14, %v913_v51 }
 0x1d5   :  { %v918_v17 = vor.u32 %v917_v0, %v916_v55  ;;  %v921_v43 = vor.u32 %v920_v61, %v919_v56  ;;  %v924_v7 = vor.u32 %v923_v37, %v922_v59  ;;  %v1063_v40 = vadd.s32 536870912, %v1062_v25 }
 0x1d6   :  { %v927_v32 = vor.u32 %v926_v6, %v925_v54  ;;  %v929_v60 = vshrl.u32 %v7382_v21, %v914_v19  ;;  %v573_v34 = vsub.s32 4, %v5165_v29  ;;  %4726 = vsinq.f32 %v575_v15 }
 0x1d7   :  { %v907_v58 = vor.u32 8388608, %v906_v53  ;;  %v5437_v48 = vmul.f32 3.1415927, %v5228_v3  ;;  %v5439_v62 = vshrl.u32 %v1063_v40, 30  ;;  %vm931_vm0 = vcmp.lt.s32.totalorder %v912_v50, 1 }
 0x1d8   :  { %v930_v30 = vor.u32 %v929_v60, %v928_v24  ;;  %vm934_vm1 = vcmp.lt.s32.totalorder %v912_v50, 4  ;;  %v769_v63 = vsub.s32 4294967266, %v5431_v42  ;;  %vm933_vm2 = vcmp.lt.s32.totalorder %v912_v50, 3 }
 0x1d9   :  { %v939_v55 = vsel %vm931_vm0, %v918_v17, %v921_v43  ;;  %v940_v51 = vsel %vm934_vm1, %v927_v32, 920167782  ;;  %v5443_v0 = vpop.eup %4724  ;;  %v881_v15 = vsel %vm798_vm13, %v880_v52, %v879_v41  ;;  %v1065_v53 = vshll.u32 %v5439_v62, 30 }
 0x1da   :  { %v941_v3 = vsel %vm933_vm2, %v924_v7, %v940_v51  ;;  %v943_v56 = vsel %vm931_vm0, %v921_v43, %v924_v7  ;;  %v574_v13 = vsel %vm489_vm9, %v573_v34, %v5165_v29  ;;  %vm932_vm3 = vcmp.lt.s32.totalorder %v912_v50, 2  ;;  %v5476_v51 = vpop.f32.mrb[11].mxu0 }
 0x1db   :  { %v936_v61 = vsel %vm934_vm1, %v924_v7, 2102212464  ;;  %v944_v59 = vsel %vm934_vm1, %v930_v30, 1326507024  ;;  %v5453_v37 = vsub.s32 %v1062_v25, %v1065_v53  ;;  %v915_v54 = vshrl.u32 %v7376_v4, %v914_v19 }
 0x1dc   :  { %v942_v6 = vsel %vm932_vm3, %v939_v55, %v941_v3  ;;  %v945_v41 = vsel %vm933_vm2, %v927_v32, %v944_v59  ;;  %v884_v52 = vsel %vm5425_vm15, %v5051_v44, %v881_v15  ;;  %v770_v40 = vadd.s32 127, %v769_v63  ;;  %v5474_v63 = vpop.f32.mrb[11].mxu1 }
 0x1dd   :  { %v946_v24 = vsel %vm932_vm3, %v943_v56, %v945_v41  ;;  %v947_v60 = vshll.u32 %v907_v58, 8  ;;  %v576_v29 = vsel %vm5394_vm10, 0, %v574_v13  ;;  %v1068_v25 = vsub.s32 0, %v5453_v37 }
 0x1de   :  { %v935_v7 = vsel %vm931_vm0, %v915_v54, %v918_v17  ;;  %v937_v19 = vsel %vm933_vm2, %v921_v43, %v936_v61  ;;  %v882_v1 = vsub.s32 4, %v5239_v20  ;;  %4728 = vcosq.f32 %v884_v52 }
 0x1df   :  { %v5467_v34 = vmul.u32.u64.low %v947_v60, %v946_v24  ;;  %v5468_v30 = vmul.u32.u64.high %v947_v60, %v946_v24, %v5467_v34  ;;  %v5470_v32 = vmul.u32.u64.low %v947_v60, %v942_v6  ;;  %v5471_v55 = vmul.u32.u64.high %v947_v60, %v942_v6, %v5470_v32 }
 0x1e0   :  { %v765_v58 = vsub.s32 32, %v5431_v42  ;;  %v4282_v17 = vmin.u32 %v1068_v25, %v5453_v37  ;;  %v4727_v15 = vpop.eup %4726  ;;  %4730 = vsinq.f32 %v884_v52  ;;  %v749_v43 = vadd.s32 %v5330_v45, %v5322_v18 }
 0x1e1   :  { %v771_v53 = vshll.u32 %v770_v40, 23  ;;  %v1211_v3 = vand.u32 2139095040, %v5437_v48  ;;  %v938_v13 = vsel %vm932_vm3, %v935_v7, %v937_v19  ;;  %v5487_v61 = vadd.f32 %v5117_v23, %v5115_v22 }
 0x1e2   :  { %v1070_v56 = vclz %v4282_v17  ;;  %v5491_v59 = vadd.f32 %v5211_v39, %v5209_v38  ;;  %v580_v54 = vand.u32 3, %v576_v29  ;;  %v2260_v6 = vadd.s32 3, %v576_v29 }
 0x1e3   :  { %v883_v18 = vsel %vm798_vm13, %v882_v1, %v5239_v20  ;;  %v767_v45 = vshrl.u32 %v749_v43, %v765_v58  ;;  %vm956_vm4 = vc.u32 %v5468_v30, %v5470_v32  ;;  %v957_v50 = vadd.s32 1, %v5471_v55 }
 0x1e4   :  { %v4283_v41 = vadd.s32 4294967294, %v1070_v56  ;;  %v954_v52 = vmul.u32 %v947_v60, %v938_v13  ;;  %v1212_v22 = vshrl.u32 %v1211_v3, 23  ;;  %v5501_v23 = vadd.f32 %v5287_v28, %v5285_v11 }
 0x1e5   :  { %v766_v38 = vshll.u32 %v5366_v5, %v5431_v42  ;;  %v772_v39 = vor.u32 4788187, %v771_v53  ;;  %v958_v40 = vsel %vm956_vm4, %v957_v50, %v5471_v55  ;;  %v5508_v20 = vadd.f32 %v5390_v36, %v5388_v9 }
 0x1e6   :  { %v583_v24 = vxor.u32 2147483648, %v4727_v15  ;;  %v586_v29 = vxor.u32 2147483648, %v5443_v0  ;;  %v959_v25 = vadd.s32 %v958_v40, %v954_v52  ;;  %v4289_v60 = vadd.s32 4294967169, %v1212_v22  ;;  %v5535_v52 = vld [vmem:[%s7359_s1] sm:$0xff] }
 0x1e7   :  { %v2261_v7 = vand.u32 3, %v2260_v6  ;;  %v768_v19 = vor.u32 %v767_v45, %v766_v38  ;;  %vm4284_vm5 = vcmp.lt.s32.totalorder %v4283_v41, 0  ;;  %vm582_vm6 = vcmp.eq.s32.totalorder %v580_v54, 0 }
 0x1e8   :  { %v960_v11 = vadd.s32 536870912, %v959_v25  ;;  %v1218_v28 = vadd.s32 1, %v4289_v60  ;;  %v5511_v34 = vpop.eup %4728  ;;  %vm585_vm7 = vcmp.eq.s32.totalorder %v580_v54, 2  ;;  %v885_v5 = vsel %vm5425_vm15, 0, %v883_v18 }
 0x1e9   :  { %v773_v42 = vand.u32 2147483647, %v772_v39  ;;  %vm581_vm8 = vcmp.lt.s32.totalorder %v580_v54, 2  ;;  %v584_v36 = vsel %vm582_vm6, %v5443_v0, %v583_v24  ;;  %v587_v55 = vsel %vm585_vm7, %v586_v29, %v4727_v15 }
 0x1ea   :  { %v5515_v9 = vpop.eup %4730  ;;  %v5518_v1 = vshrl.u32 %v960_v11, 30  ;;  %vm2266_vm9 = vcmp.eq.s32.totalorder %v2261_v7, 2  ;;  %v775_v58 = vcvt.s32.f32 %v768_v19  ;;  %v5520_v17 = vsel %vm4284_vm5, 0, %v4283_v41 }
 0x1eb   :  { %vm1219_vm10 = vcmp.gt.s32.totalorder %v1218_v28, 0  ;;  %vm2263_vm11 = vcmp.eq.s32.totalorder %v2261_v7, 0  ;;  %v2268_v43 = vsel %vm2266_vm9, %v586_v29, %v4727_v15  ;;  %v889_v53 = vand.u32 3, %v885_v5 }
 0x1ec   :  { %v962_v47 = vshll.u32 %v5518_v1, 30  ;;  %v588_v3 = vsel %vm581_vm8, %v584_v36, %v587_v55  ;;  %v2265_v56 = vsel %vm2263_vm11, %v5443_v0, %v583_v24  ;;  %v776_v13 = vmul.f32 %v775_v58, %v773_v42 }
 0x1ed   :  { %v779_v54 = vsub.s32 4, %v5352_v57  ;;  %v892_v6 = vxor.u32 2147483648, %v5515_v9  ;;  %v895_v18 = vxor.u32 2147483648, %v5511_v34  ;;  %v1078_v45 = vsub.s32 4294967266, %v5520_v17 }
 0x1ee   :  { %v1220_v50 = vsel %vm1219_vm10, %v1218_v28, 0  ;;  %vm579_vm12 = vweird.f32 %v5039_v27  ;;  %vm2262_vm13 = vcmp.lt.s32.totalorder %v2261_v7, 2  ;;  %v2572_v15 = vadd.s32 3, %v885_v5 }
 0x1ef   :  { %vm695_vm14 = vcmp.lt.s32.totalorder %v5156_v16, 0  ;;  %v2269_v41 = vsel %vm2262_vm13, %v2265_v56, %v2268_v43  ;;  %vm891_vm15 = vcmp.eq.s32.totalorder %v889_v53, 0  ;;  %vm894_vm0 = vcmp.eq.s32.totalorder %v889_v53, 2 }
 0x1f0   :  { %v5530_v0 = vsub.s32 %v959_v25, %v962_v47  ;;  %v589_v22 = vsel %vm579_vm12, nan, %v588_v3  ;;  %v777_v38 = vxor.u32 2147483648, %v776_v13  ;;  %v7366_v39 = vand.u32 2147483647, %v5437_v48 }
 0x1f1   :  { %v1222_v40 = vand.u32 31, %v1220_v50  ;;  %v893_v24 = vsel %vm891_vm15, %v5511_v34, %v892_v6  ;;  %v896_v29 = vsel %vm894_vm0, %v895_v18, %v5515_v9  ;;  %v780_v25 = vsel %vm695_vm14, %v779_v54, %v5352_v57 }
 0x1f2   :  { %v1079_v60 = vadd.s32 127, %v1078_v45  ;;  %vm890_vm1 = vcmp.lt.s32.totalorder %v889_v53, 2  ;;  %v7398_v7 = vand.u32 2147483647, %v5156_v16  ;;  %v5556_v28 = vmul.f32 %v589_v22, %v5535_v52 }
 0x1f3   :  { %v1223_v11 = vsub.s32 32, %v1222_v40  ;;  %v5560_v5 = vsel %vm579_vm12, nan, %v2269_v41  ;;  %v5562_v42 = vand.u32 3, %v2572_v15  ;;  %v965_v57 = vsub.s32 0, %v5530_v0 }
 0x1f4   :  { %vm5551_vm2 = vcmp.le.f32.partialorder %v7398_v7, 0.7853982  ;;  %v5565_v36 = vsel %vm890_vm1, %v893_v24, %v896_v29  ;;  %v778_v55 = vsel %vm695_vm14, %v777_v38, %v776_v13  ;;  %v1215_v43 = vand.u32 8388607, %v7366_v39 }
 0x1f5   :  { %v5571_v58 = vsel %vm5551_vm2, 0, %v780_v25  ;;  %v1074_v27 = vsub.s32 32, %v5520_v17  ;;  %v1080_v53 = vshll.u32 %v1079_v60, 23  ;;  %v5576_v47 = vshrl.u32 %v1220_v50, 5 }
 0x1f6   :  { %v1226_v3 = vshrl.u32 %v7373_v8, %v1223_v11  ;;  %v1225_v56 = vshll.u32 %v7376_v4, %v1222_v40  ;;  %v1228_v54 = vshll.u32 %v7373_v8, %v1222_v40  ;;  %v1229_v13 = vshrl.u32 %v7385_v10, %v1223_v11 }
 0x1f7   :  { %v1232_v45 = vshrl.u32 %v7380_v12, %v1223_v11  ;;  %v4278_v15 = vmin.u32 %v965_v57, %v5530_v0  ;;  %v1231_v41 = vshll.u32 %v7385_v10, %v1222_v40  ;;  %v1234_v22 = vshll.u32 %v7380_v12, %v1222_v40 }
 0x1f8   :  { %v1235_v38 = vshrl.u32 %v7368_v14, %v1223_v11  ;;  %v781_v50 = vsel %vm5551_vm2, %v5156_v16, %v778_v55  ;;  %v1058_v24 = vadd.s32 %v5404_v46, %v5386_v35  ;;  %v1227_v29 = vor.u32 %v1226_v3, %v1225_v56 }
 0x1f9   :  { %v1230_v25 = vor.u32 %v1229_v13, %v1228_v54  ;;  %vm2575_vm3 = vcmp.eq.s32.totalorder %v5562_v42, 0  ;;  %vm2578_vm4 = vcmp.eq.s32.totalorder %v5562_v42, 2  ;;  %v1216_v60 = vor.u32 8388608, %v1215_v43 }
 0x1fa   :  { %v1233_v7 = vor.u32 %v1232_v45, %v1231_v41  ;;  %v1236_v57 = vor.u32 %v1235_v38, %v1234_v22  ;;  %v5595_v39 = vmul.f32 3.1415927, %v5487_v61  ;;  %v1075_v33 = vshll.u32 %v5453_v37, %v5520_v17  ;;  %v5616_v45 = vpop.f32.mrb[12].mxu1 }
 0x1fb   :  { %v1076_v19 = vshrl.u32 %v1058_v24, %v1074_v27  ;;  %v1237_v55 = vshll.u32 %v7368_v14, %v1222_v40  ;;  %v1238_v35 = vshrl.u32 %v7382_v21, %v1223_v11  ;;  %vm888_vm5 = vweird.f32 %v5051_v44  ;;  %v34_v24 = vld [vmem:[%s7360_s2] sm:$0xff] }
 0x1fc   :  { %v1081_v46 = vor.u32 4788187, %v1080_v53  ;;  %v967_v3 = vclz %v4278_v15  ;;  %vm1240_vm6 = vcmp.lt.s32.totalorder %v5576_v47, 1  ;;  %vm1243_vm7 = vcmp.lt.s32.totalorder %v5576_v47, 4  ;;  %v5618_v15 = vpop.f32.mrb[12].mxu0 }
 0x1fd   :  { %vm2574_vm8 = vcmp.lt.s32.totalorder %v5562_v42, 2  ;;  %v1239_v61 = vor.u32 %v1238_v35, %v1237_v55  ;;  %vm1242_vm9 = vcmp.lt.s32.totalorder %v5576_v47, 3  ;;  %v1248_v37 = vsel %vm1240_vm6, %v1227_v29, %v1230_v25  ;;  %v37_v42 = vld [vmem:[%s7360_s2 + $0x18] sm:$0xff] }
 0x1fe   :  { %v1249_v17 = vsel %vm1243_vm7, %v1236_v57, 920167782  ;;  %v1224_v40 = vshrl.u32 %v7376_v4, %v1223_v11  ;;  %vm1241_vm10 = vcmp.lt.s32.totalorder %v5576_v47, 2  ;;  %v1245_v43 = vsel %vm1243_vm7, %v1233_v7, 2102212464 }
 0x1ff   :  { %v1250_v27 = vsel %vm1242_vm9, %v1233_v7, %v1249_v17  ;;  %v1252_v56 = vsel %vm1240_vm6, %v1230_v25, %v1233_v7  ;;  %v1253_v54 = vsel %vm1243_vm7, %v1239_v61, 1326507024  ;;  %v1256_v13 = vshll.u32 %v1216_v60, 8 }
 0x200   :  { %v1251_v53 = vsel %vm1241_vm10, %v1248_v37, %v1250_v27  ;;  %v1077_v41 = vor.u32 %v1076_v19, %v1075_v33  ;;  %v4279_v11 = vadd.s32 4294967294, %v967_v3  ;;  %v1244_v22 = vsel %vm1240_vm6, %v1224_v40, %v1227_v29 }
 0x201   :  { %v1254_v38 = vsel %vm1242_vm9, %v1236_v57, %v1253_v54  ;;  %v1246_v7 = vsel %vm1242_vm9, %v1230_v25, %v1245_v43  ;;  %v5631_v55 = vmul.u32.u64.low %v1256_v13, %v1251_v53  ;;  %v5632_v35 = vmul.u32.u64.high %v1256_v13, %v1251_v53, %v5631_v55 }
 0x202   :  { %v1255_v60 = vsel %vm1241_vm10, %v1252_v56, %v1254_v38  ;;  %4732 = vcosq.f32 %v781_v50  ;;  %v1082_v33 = vand.u32 2147483647, %v1081_v46  ;;  %v2577_v57 = vsel %vm2575_vm3, %v5511_v34, %v892_v6  ;;  %v21_v34 = vld [vmem:[%s7359_s1 + $0x18] sm:$0xff] }
 0x203   :  { %v5635_v29 = vmul.u32.u64.low %v1256_v13, %v1255_v60  ;;  %v5636_v19 = vmul.u32.u64.high %v1256_v13, %v1255_v60, %v5635_v29  ;;  %v2580_v25 = vsel %vm2578_vm4, %v895_v18, %v5515_v9  ;;  %4734 = vsinq.f32 %v781_v50 }
 0x204   :  { %v1108_v3 = vand.u32 2139095040, %v5595_v39  ;;  %v2151_v46 = vsub.f32 %v5556_v28, %v34_v24  ;;  %v1084_v61 = vcvt.s32.f32 %v1077_v41  ;;  %vm4280_vm11 = vcmp.lt.s32.totalorder %v4279_v11, 0 }
 0x205   :  { %v1247_v37 = vsel %vm1241_vm10, %v1244_v22, %v1246_v7  ;;  %v3831_v17 = vmul.f32 %v5560_v5, %v5535_v52  ;;  %v898_v9 = vsel %vm888_vm5, nan, %v5565_v36  ;;  %v1266_v6 = vadd.s32 1, %v5632_v35 }
 0x206   :  { %v1109_v18 = vshrl.u32 %v1108_v3, 23  ;;  %v2581_v28 = vsel %vm2574_vm8, %v2577_v57, %v2580_v25  ;;  %v2468_v47 = vadd.s32 3, %v5571_v58  ;;  %v1085_v50 = vmul.f32 %v1084_v61, %v1082_v33 }
 0x207   :  { %v1088_v40 = vsub.s32 4, %v5439_v62  ;;  %v5665_v52 = vsel %vm4280_vm11, 0, %v4279_v11  ;;  %v1263_v5 = vmul.u32 %v1256_v13, %v1247_v37  ;;  %vm1265_vm12 = vc.u32 %v5636_v19, %v5631_v55 }
 0x208   :  { %v4285_v43 = vadd.s32 4294967169, %v1109_v18  ;;  %v3847_v27 = vmul.f32 %v2151_v46, %v2151_v46  ;;  %v2138_v36 = vmul.f32 %v898_v9, %v21_v34  ;;  %vm1004_vm13 = vcmp.lt.s32.totalorder %v5292_v26, 0 }
 0x209   :  { %v1267_v53 = vsel %vm1265_vm12, %v1266_v6, %v5632_v35  ;;  %v2582_v56 = vsel %vm888_vm5, nan, %v2581_v28  ;;  %v5677_v54 = vand.u32 3, %v5571_v58  ;;  %v3863_v11 = vmul.f32 %v3831_v17, %v3831_v17 }
 0x20a   :  { %v1268_v13 = vadd.s32 %v1267_v53, %v1263_v5  ;;  %v1115_v41 = vadd.s32 1, %v4285_v43  ;;  %v5679_v22 = vand.u32 3, %v2468_v47  ;;  %v7401_v38 = vand.u32 2147483647, %v5292_v26 }
 0x20b   :  { %v975_v7 = vsub.s32 4294967266, %v5665_v52  ;;  %v1086_v60 = vxor.u32 2147483648, %v1085_v50  ;;  %v1089_v44 = vsel %vm1004_vm13, %v1088_v40, %v5439_v62  ;;  %v5691_v33 = vadd.f32 %v3863_v11, %v3847_v27 }
 0x20c   :  { %vm5683_vm14 = vcmp.le.f32.partialorder %v7401_v38, 0.7853982  ;;  %v1269_v58 = vadd.s32 536870912, %v1268_v13  ;;  %vm1116_vm15 = vcmp.gt.s32.totalorder %v1115_v41, 0  ;;  %v4733_v35 = vpop.eup %4732  ;;  %v2154_v29 = vsub.f32 %v2138_v36, %v37_v42 }
 0x20d   :  { %7404 = vst [vmem:[#allocation7_spill] sm:$0xff] %v5691_v33  ;;  %v3834_v57 = vmul.f32 %v2582_v56, %v21_v34  ;;  %v1117_v25 = vsel %vm1116_vm15, %v1115_v41, 0  ;;  %v4735_v3 = vpop.eup %4734  ;;  %vm788_vm0 = vcmp.eq.s32.totalorder %v5677_v54, 0  ;;  %vm791_vm1 = vcmp.eq.s32.totalorder %v5677_v54, 2 }
 0x20e   :  { %v5695_v46 = vshrl.u32 %v1269_v58, 30  ;;  %v1119_v61 = vand.u32 31, %v1117_v25  ;;  %vm2471_vm2 = vcmp.eq.s32.totalorder %v5679_v22, 0  ;;  %v1091_v62 = vsel %vm5683_vm14, 0, %v1089_v44 }
 0x20f   :  { %v971_v37 = vsub.s32 32, %v5665_v52  ;;  %v976_v17 = vadd.s32 127, %v975_v7  ;;  %v792_v9 = vxor.u32 2147483648, %v4733_v35  ;;  %vm2474_vm3 = vcmp.eq.s32.totalorder %v5679_v22, 2  ;;  %v5739_v7 = vpop.f32.mrb[13].mxu1 }
 0x210   :  { %v1087_v34 = vsel %vm1004_vm13, %v1086_v60, %v1085_v50  ;;  %v1271_v6 = vshll.u32 %v5695_v46, 30  ;;  %v5705_v18 = vmul.f32 %v2154_v29, %v2154_v29  ;;  %v5707_v28 = vmul.f32 %v3834_v57, %v3834_v57  ;;  %v5741_v60 = vpop.f32.mrb[13].mxu0 }
 0x211   :  { %v789_v47 = vxor.u32 2147483648, %v4735_v3  ;;  %v955_v40 = vadd.s32 %v5470_v32, %v5468_v30  ;;  %v5711_v5 = vand.u32 3, %v1091_v62  ;;  %v5713_v43 = vadd.s32 3, %v1091_v62 }
 0x212   :  { %v5715_v27 = vsub.s32 %v1268_v13, %v1271_v6  ;;  %v1120_v36 = vsub.s32 32, %v1119_v61  ;;  %vm787_vm4 = vcmp.lt.s32.totalorder %v5677_v54, 2  ;;  %vm2470_vm5 = vcmp.lt.s32.totalorder %v5679_v22, 2 }
 0x213   :  { %v1090_v50 = vsel %vm5683_vm14, %v5292_v26, %v1087_v34  ;;  %vm901_vm6 = vcmp.lt.s32.totalorder %v5348_v49, 0  ;;  %v973_v53 = vshrl.u32 %v955_v40, %v971_v37  ;;  %v977_v42 = vshll.u32 %v976_v17, 23 }
 0x214   :  { %v5724_v30 = vmul.f32 3.1415927, %v5491_v59  ;;  %v793_v32 = vsel %vm791_vm1, %v792_v9, %v4735_v3  ;;  %v2476_v56 = vsel %vm2474_vm3, %v792_v9, %v4735_v3  ;;  %v1274_v13 = vsub.s32 0, %v5715_v27 }
 0x215   :  { %v7370_v41 = vand.u32 2147483647, %v5595_v39  ;;  %v790_v11 = vsel %vm788_vm0, %v4733_v35, %v789_v47  ;;  %v2473_v38 = vsel %vm2471_vm2, %v4733_v35, %v789_v47  ;;  %v972_v59 = vshll.u32 %v5530_v0, %v5665_v52 }
 0x216   :  { %v985_v24 = vsub.s32 4, %v5518_v1  ;;  %4736 = vcosq.f32 %v1090_v50  ;;  %v4290_v44 = vmin.u32 %v1274_v13, %v5715_v27  ;;  %v1123_v58 = vshrl.u32 %v7373_v8, %v1120_v36 }
 0x217   :  { %v1126_v29 = vshrl.u32 %v7385_v10, %v1120_v36  ;;  %v974_v57 = vor.u32 %v973_v53, %v972_v59  ;;  %v978_v3 = vor.u32 4788187, %v977_v42  ;;  %v1129_v35 = vshrl.u32 %v7380_v12, %v1120_v36 }
 0x218   :  { %v1132_v62 = vshrl.u32 %v7368_v14, %v1120_v36  ;;  %v1276_v0 = vclz %v4290_v44  ;;  %v1112_v52 = vand.u32 8388607, %v7370_v41  ;;  %v1122_v37 = vshll.u32 %v7376_v4, %v1119_v61 }
 0x219   :  { %v1125_v17 = vshll.u32 %v7373_v8, %v1119_v61  ;;  %v1118_v9 = vshrl.u32 %v1117_v25, 5  ;;  %v1128_v34 = vshll.u32 %v7385_v10, %v1119_v61  ;;  %v1131_v6 = vshll.u32 %v7380_v12, %v1119_v61 }
 0x21a   :  { %v1135_v47 = vshrl.u32 %v7382_v21, %v1120_v36  ;;  %v4291_v40 = vadd.s32 4294967294, %v1276_v0  ;;  %v1124_v53 = vor.u32 %v1123_v58, %v1122_v37  ;;  %v1417_v13 = vand.u32 2139095040, %v5724_v30 }
 0x21b   :  { %v1127_v42 = vor.u32 %v1126_v29, %v1125_v17  ;;  %v979_v59 = vand.u32 2147483647, %v978_v3  ;;  %v1130_v44 = vor.u32 %v1129_v35, %v1128_v34  ;;  %v1133_v14 = vor.u32 %v1132_v62, %v1131_v6 }
 0x21c   :  { %v7405_v41 = vmov 920167782   ;;  %v794_v8 = vsel %vm787_vm4, %v790_v11, %v793_v32  ;;  %v2477_v25 = vsel %vm2470_vm5, %v2473_v38, %v2476_v56  ;;  %4738 = vsinq.f32 %v1090_v50 }
 0x21d   :  { %v1134_v2 = vshll.u32 %v7405_v41, %v1119_v61  ;;  %v986_v0 = vsel %vm901_vm6, %v985_v24, %v5518_v1  ;;  %vm785_vm7 = vweird.f32 %v5156_v16  ;;  %v7406_v58 = vand.u32 2147483647, %v5348_v49 }
 0x21e   :  { %v981_v61 = vcvt.s32.f32 %v974_v57  ;;  %v1113_v3 = vor.u32 8388608, %v1112_v52  ;;  %vm1137_vm9 = vcmp.lt.s32.totalorder %v1118_v9, 1  ;;  %vm4292_vm10 = vcmp.lt.s32.totalorder %v4291_v40, 0 }
 0x21f   :  { %vm5767_vm8 = vcmp.le.f32.partialorder %v7406_v58, 0.7853982  ;;  %v1136_v54 = vor.u32 %v1135_v47, %v1134_v2  ;;  %vm1140_vm11 = vcmp.lt.s32.totalorder %v1118_v9, 4  ;;  %v1145_v22 = vsel %vm1137_vm9, %v1124_v53, %v1127_v42 }
 0x220   :  { %v1418_v50 = vshrl.u32 %v1417_v13, 23  ;;  %v982_v32 = vmul.f32 %v981_v61, %v979_v59  ;;  %vm1139_vm12 = vcmp.lt.s32.totalorder %v1118_v9, 3  ;;  %v1142_v1 = vsel %vm1140_vm11, %v1130_v44, 2102212464  ;;  %v5772_v11 = vpop.eup %4736 }
 0x221   :  { %v1146_v56 = vsel %vm1140_vm11, %v1133_v14, 920167782  ;;  %v1121_v38 = vshrl.u32 %v7376_v4, %v1120_v36  ;;  %vm1138_vm13 = vcmp.lt.s32.totalorder %v1118_v9, 2  ;;  %v1149_v57 = vsel %vm1137_vm9, %v1127_v42, %v1130_v44 }
 0x222   :  { %v1147_v24 = vsel %vm1139_vm12, %v1130_v44, %v1146_v56  ;;  %v5776_v35 = vsel %vm4292_vm10, 0, %v4291_v40  ;;  %v1150_v62 = vsel %vm1140_vm11, %v1136_v54, 1326507024  ;;  %v1153_v52 = vshll.u32 %v1113_v3, 8 }
 0x223   :  { %v1148_v2 = vsel %vm1138_vm13, %v1145_v22, %v1147_v24  ;;  %v1141_v37 = vsel %vm1137_vm9, %v1121_v38, %v1124_v53  ;;  %v1143_v17 = vsel %vm1139_vm12, %v1127_v42, %v1142_v1  ;;  %v1151_v34 = vsel %vm1139_vm12, %v1133_v14, %v1150_v62 }
 0x224   :  { %v4297_v6 = vadd.s32 4294967169, %v1418_v50  ;;  %v983_v47 = vxor.u32 2147483648, %v982_v32  ;;  %v1152_v13 = vsel %vm1138_vm13, %v1149_v57, %v1151_v34  ;;  %v5787_v40 = vadd.f32 %v5707_v28, %v5705_v18  ;;  %v20_v18 = vld [vmem:[%s7359_s1 + $0x10] sm:$0xff] }
 0x225   :  { %v5781_v59 = vmul.u32.u64.low %v1153_v52, %v1148_v2  ;;  %v5782_v36 = vmul.u32.u64.high %v1153_v52, %v1148_v2, %v5781_v59  ;;  %vm1100_vm14 = vcmp.eq.s32.totalorder %v5711_v5, 2  ;;  %v5794_v53 = vand.u32 3, %v5713_v43 }
 0x226   :  { %7409 = vst [vmem:[#allocation8_spill] sm:$0xff] %v5787_v40  ;;  %v5790_v44 = vmul.u32.u64.low %v1153_v52, %v1152_v13  ;;  %v5791_v58 = vmul.u32.u64.high %v1153_v52, %v1152_v13, %v5790_v44  ;;  %v1284_v14 = vsub.s32 4294967266, %v5776_v35  ;;  %v1144_v42 = vsel %vm1138_vm13, %v1141_v37, %v1143_v17  ;;  %v5798_v3 = vpop.eup %4738 }
 0x227   :  { %v1424_v61 = vadd.s32 1, %v4297_v6  ;;  %v795_v28 = vsel %vm785_vm7, nan, %v794_v8  ;;  %v2478_v54 = vsel %vm785_vm7, nan, %v2477_v25  ;;  %v1101_v43 = vxor.u32 2147483648, %v5772_v11 }
 0x228   :  { %v5810_v22 = vsel %vm5767_vm8, 0, %v986_v0  ;;  %v984_v9 = vsel %vm901_vm6, %v983_v47, %v982_v32  ;;  %v1163_v50 = vadd.s32 1, %v5782_v36  ;;  %v7375_v1 = vand.u32 2147483647, %v5724_v30 }
 0x229   :  { %vm1425_vm15 = vcmp.gt.s32.totalorder %v1424_v61, 0  ;;  %v1160_v56 = vmul.u32 %v1153_v52, %v1144_v42  ;;  %vm1162_vm0 = vc.u32 %v5791_v58, %v5781_v59  ;;  %v5819_v16 = vmul.f32 3.1415927, %v5501_v23 }
 0x22a   :  { %v1426_v8 = vsel %vm1425_vm15, %v1424_v61, 0  ;;  %v5821_v25 = vmul.f32 %v795_v28, %v20_v18  ;;  %vm1097_vm1 = vcmp.eq.s32.totalorder %v5711_v5, 0  ;;  %vm2786_vm2 = vcmp.eq.s32.totalorder %v5794_v53, 2 }
 0x22b   :  { %v1285_v0 = vadd.s32 127, %v1284_v14  ;;  %v1164_v32 = vsel %vm1162_vm0, %v1163_v50, %v5782_v36  ;;  %v1428_v38 = vand.u32 31, %v1426_v8  ;;  %v5826_v24 = vmul.f32 %v2478_v54, %v20_v18 }
 0x22c   :  { %v1098_v57 = vxor.u32 2147483648, %v5798_v3  ;;  %v5830_v2 = vadd.s32 3, %v5810_v22  ;;  %v1165_v62 = vadd.s32 %v1164_v32, %v1160_v56  ;;  %v5835_v23 = vsel %vm1100_vm14, %v1101_v43, %v5798_v3 }
 0x22d   :  { %v987_v52 = vsel %vm5767_vm8, %v5348_v49, %v984_v9  ;;  %v1264_v37 = vadd.s32 %v5631_v55, %v5636_v19  ;;  %v5842_v17 = vsub.s32 32, %v1428_v38  ;;  %v1280_v34 = vsub.s32 32, %v5776_v35 }
 0x22e   :  { %v1166_v6 = vadd.s32 536870912, %v1165_v62  ;;  %v1421_v47 = vand.u32 8388607, %v7375_v1  ;;  %v1314_v13 = vand.u32 2139095040, %v5819_v16  ;;  %vm2783_vm3 = vcmp.eq.s32.totalorder %v5794_v53, 0 }
 0x22f   :  { %v1286_v36 = vshll.u32 %v1285_v0, 23  ;;  %v1431_v44 = vshll.u32 %v7376_v4, %v1428_v38  ;;  %v7410_v29 = vmov 2475754826   ;;  %v1435_v55 = vshrl.u32 %v7385_v10, %v5842_v17 }
 0x230   :  { %v1432_v14 = vshrl.u32 %v7410_v29, %v5842_v17  ;;  %v5854_v19 = vshrl.u32 %v1166_v6, 30  ;;  %v1434_v42 = vshll.u32 %v7410_v29, %v1428_v38  ;;  %v1438_v61 = vshrl.u32 %v7380_v12, %v5842_v17 }
 0x231   :  { %v1441_v18 = vshrl.u32 %v7405_v41, %v5842_v17  ;;  %v1437_v28 = vshll.u32 %v7385_v10, %v1428_v38  ;;  %v1440_v54 = vshll.u32 %v7380_v12, %v1428_v38  ;;  %v1443_v9 = vshll.u32 %v7405_v41, %v1428_v38 }
 0x232   :  { %v1444_v50 = vshrl.u32 %v7382_v21, %v5842_v17  ;;  %vm1096_vm4 = vcmp.lt.s32.totalorder %v5711_v5, 2  ;;  %v1168_v56 = vshll.u32 %v5854_v19, 30  ;;  %v5868_v0 = vshrl.u32 %v1426_v8, 5 }
 0x233   :  { %v1433_v32 = vor.u32 %v1432_v14, %v1431_v44  ;;  %v1315_v6 = vshrl.u32 %v1314_v13, 23  ;;  %v1436_v1 = vor.u32 %v1435_v55, %v1434_v42  ;;  %v1439_v4 = vor.u32 %v1438_v61, %v1437_v28 }
 0x234   :  { %v1442_v40 = vor.u32 %v1441_v18, %v1440_v54  ;;  %v1445_v33 = vor.u32 %v1444_v50, %v1443_v9  ;;  %v1099_v12 = vsel %vm1097_vm1, %v5772_v11, %v1098_v57  ;;  %v2788_v38 = vsel %vm2786_vm2, %v1101_v43, %v5798_v3  ;;  %v5885_v43 = vpop.f32.mrb[14].mxu1 }
 0x235   :  { %4740 = vcosq.f32 %v987_v52  ;;  %v5876_v21 = vsub.s32 %v1165_v62, %v1168_v56  ;;  %vm2782_vm5 = vcmp.lt.s32.totalorder %v5794_v53, 2  ;;  %v1281_v8 = vshll.u32 %v5715_v27, %v5776_v35  ;;  %v5887_v62 = vpop.f32.mrb[14].mxu0 }
 0x236   :  { %v1282_v13 = vshrl.u32 %v1264_v37, %v1280_v34  ;;  %v1287_v44 = vor.u32 4788187, %v1286_v36  ;;  %v1422_v14 = vor.u32 8388608, %v1421_v47  ;;  %vm1094_vm6 = vweird.f32 %v5292_v26  ;;  %v39_v26 = vld [vmem:[%s7360_s2 + $0x28] sm:$0xff] }
 0x237   :  { %v1171_v55 = vsub.s32 0, %v5876_v21  ;;  %vm1446_vm7 = vcmp.lt.s32.totalorder %v5868_v0, 1  ;;  %vm1449_vm8 = vcmp.lt.s32.totalorder %v5868_v0, 4  ;;  %v4293_v3 = vadd.s32 4294967169, %v1315_v6 }
 0x238   :  { %v1454_v42 = vsel %vm1446_vm7, %v1433_v32, %v1436_v1  ;;  %v1455_v27 = vsel %vm1449_vm8, %v1442_v40, 920167782  ;;  %v1458_v35 = vsel %vm1446_vm7, %v1436_v1, %v1439_v4  ;;  %v1459_v37 = vsel %vm1449_vm8, %v1445_v33, 1326507024 }
 0x239   :  { %v2785_v34 = vsel %vm2783_vm3, %v5772_v11, %v1098_v57  ;;  %4742 = vsinq.f32 %v987_v52  ;;  %v4286_v47 = vmin.u32 %v1171_v55, %v5876_v21  ;;  %vm1448_vm9 = vcmp.lt.s32.totalorder %v5868_v0, 3 }
 0x23a   :  { %v1283_v36 = vor.u32 %v1282_v13, %v1281_v8  ;;  %vm1447_vm10 = vcmp.lt.s32.totalorder %v5868_v0, 2  ;;  %v1456_v61 = vsel %vm1448_vm9, %v1439_v4, %v1455_v27  ;;  %v1460_v18 = vsel %vm1448_vm9, %v1442_v40, %v1459_v37 }
 0x23b   :  { %v1173_v28 = vclz %v4286_v47  ;;  %v1457_v33 = vsel %vm1447_vm10, %v1454_v42, %v1456_v61  ;;  %v1461_v11 = vsel %vm1447_vm10, %v1458_v35, %v1460_v18  ;;  %v1462_v57 = vshll.u32 %v1422_v14, 8  ;;  %v36_v14 = vld [vmem:[%s7360_s2 + $0x10] sm:$0xff] }
 0x23c   :  { %v1103_v52 = vsel %vm1096_vm4, %v1099_v12, %v5835_v23  ;;  %v1288_v54 = vand.u32 2147483647, %v1287_v44  ;;  %v1451_v9 = vsel %vm1449_vm8, %v1439_v4, 2102212464  ;;  %v1321_v50 = vadd.s32 1, %v4293_v3  ;;  %v23_v44 = vld [vmem:[%s7359_s1 + $0x28] sm:$0xff] }
 0x23d   :  { %v4287_v56 = vadd.s32 4294967294, %v1173_v28  ;;  %v7411_v40 = vmov 683565275   ;;  %v5918_v8 = vmul.u32.u64.low %v1462_v57, %v1461_v11  ;;  %v5919_v13 = vmul.u32.u64.high %v1462_v57, %v1461_v11, %v5918_v8 }
 0x23e   :  { %v1430_v6 = vshrl.u32 %v7411_v40, %v5842_v17  ;;  %v1290_v55 = vcvt.s32.f32 %v1283_v36  ;;  %v5924_v42 = vmul.u32.u64.low %v1462_v57, %v1457_v33  ;;  %v5925_v5 = vmul.u32.u64.high %v1462_v57, %v1457_v33, %v5924_v42 }
 0x23f   :  { %vm1322_vm11 = vcmp.gt.s32.totalorder %v1321_v50, 0  ;;  %v5928_v12 = vpop.eup %4740  ;;  %v2789_v4 = vsel %vm2782_vm5, %v2785_v34, %v2788_v38  ;;  %vm4288_vm12 = vcmp.lt.s32.totalorder %v4287_v56, 0  ;;  %v1452_v17 = vsel %vm1448_vm9, %v1436_v1, %v1451_v9 }
 0x240   :  { %v1450_v23 = vsel %vm1446_vm7, %v1430_v6, %v1433_v32  ;;  %v1104_v3 = vsel %vm1094_vm6, nan, %v1103_v52  ;;  %vm1210_vm13 = vcmp.lt.s32.totalorder %v5437_v48, 0  ;;  %v1291_v27 = vmul.f32 %v1290_v55, %v1288_v54 }
 0x241   :  { %v5942_v35 = vsel %vm4288_vm12, 0, %v4287_v56  ;;  %v2153_v53 = vsub.f32 %v5821_v25, %v36_v14  ;;  %v5947_v32 = vmul.f32 %v5826_v24, %v5826_v24  ;;  %v5950_v1 = vand.u32 3, %v5810_v22 }
 0x242   :  { %v1323_v38 = vsel %vm1322_vm11, %v1321_v50, 0  ;;  %v2790_v37 = vsel %vm1094_vm6, nan, %v2789_v4  ;;  %v5956_v34 = vand.u32 3, %v5830_v2  ;;  %v1181_v47 = vsub.s32 4294967266, %v5942_v35 }
 0x243   :  { %v1453_v25 = vsel %vm1447_vm10, %v1450_v23, %v1452_v17  ;;  %v4743_v36 = vpop.eup %4742  ;;  %v2140_v61 = vmul.f32 %v1104_v3, %v23_v44  ;;  %v998_v24 = vxor.u32 2147483648, %v5928_v12  ;;  %v1294_v22 = vsub.s32 4, %v5695_v46 }
 0x244   :  { %vm1471_vm14 = vc.u32 %v5919_v13, %v5924_v42  ;;  %v1292_v2 = vxor.u32 2147483648, %v1291_v27  ;;  %v1472_v18 = vadd.s32 1, %v5925_v5  ;;  %v7384_v28 = vand.u32 2147483647, %v5819_v16 }
 0x245   :  { %v1325_v0 = vand.u32 31, %v1323_v38  ;;  %v5970_v33 = vmul.f32 %v2153_v53, %v2153_v53  ;;  %vm997_vm15 = vcmp.eq.s32.totalorder %v5950_v1, 2  ;;  %v1182_v11 = vadd.s32 127, %v1181_v47 }
 0x246   :  { %v1469_v52 = vmul.u32 %v1462_v57, %v1453_v25  ;;  %v5973_v54 = vmul.f32 %v2790_v37, %v23_v44  ;;  %vm994_vm0 = vcmp.eq.s32.totalorder %v5950_v1, 0  ;;  %vm2682_vm1 = vcmp.eq.s32.totalorder %v5956_v34, 2  ;;  %v38_v57 = vld [vmem:[%s7360_s2 + $0x20] sm:$0xff] }
 0x247   :  { %v1177_v9 = vsub.s32 32, %v5942_v35  ;;  %v1473_v50 = vsel %vm1471_vm14, %v1472_v18, %v5925_v5  ;;  %v5979_v56 = vsub.s32 32, %v1325_v0  ;;  %v5981_v6 = vsub.f32 %v2140_v61, %v39_v26 }
 0x248   :  { %v995_v8 = vxor.u32 2147483648, %v4743_v36  ;;  %vm2679_vm2 = vcmp.eq.s32.totalorder %v5956_v34, 0  ;;  %v7412_v14 = vand.u32 2147483647, %v5437_v48  ;;  %v5993_v55 = vsel %vm1210_vm13, %v1294_v22, %v5695_v46 }
 0x249   :  { %v1474_v4 = vadd.s32 %v1473_v50, %v1469_v52  ;;  %v999_v5 = vsel %vm997_vm15, %v998_v24, %v4743_v36  ;;  %v1293_v23 = vsel %vm1210_vm13, %v1292_v2, %v1291_v27  ;;  %v1161_v17 = vadd.s32 %v5781_v59, %v5791_v58 }
 0x24a   :  { %vm5986_vm3 = vcmp.le.f32.partialorder %v7412_v14, 0.7853982  ;;  %v1318_v44 = vand.u32 8388607, %v7384_v28  ;;  %v1183_v3 = vshll.u32 %v1182_v11, 23  ;;  %v6001_v37 = vshrl.u32 %v1323_v38, 5 }
 0x24b   :  { %v1475_v53 = vadd.s32 536870912, %v1474_v4  ;;  %v1329_v47 = vshrl.u32 %v7410_v29, %v5979_v56  ;;  %vm993_vm4 = vcmp.lt.s32.totalorder %v5950_v1, 2  ;;  %v1178_v46 = vshll.u32 %v5876_v21, %v5942_v35 }
 0x24c   :  { %v1179_v25 = vshrl.u32 %v1161_v17, %v1177_v9  ;;  %v1332_v27 = vshrl.u32 %v7385_v10, %v5979_v56  ;;  %v7415_v59 = vmov 2102212464   ;;  %v1328_v38 = vshll.u32 %v7411_v40, %v1325_v0 }
 0x24d   :  { %v1335_v58 = vshrl.u32 %v7415_v59, %v5979_v56  ;;  %v6012_v61 = vshrl.u32 %v1475_v53, 30  ;;  %v1337_v22 = vshll.u32 %v7415_v59, %v1325_v0  ;;  %v1338_v26 = vshrl.u32 %v7405_v41, %v5979_v56 }
 0x24e   :  { %v1331_v2 = vshll.u32 %v7410_v29, %v1325_v0  ;;  %v1334_v21 = vshll.u32 %v7385_v10, %v1325_v0  ;;  %v1340_v35 = vshll.u32 %v7405_v41, %v1325_v0  ;;  %v7416_v18 = vmov 1326507024  }
 0x24f   :  { %v1341_v11 = vshrl.u32 %v7416_v18, %v5979_v56  ;;  %vm991_vm5 = vweird.f32 %v5348_v49  ;;  %v1184_v52 = vor.u32 4788187, %v1183_v3  ;;  %v1477_v9 = vshll.u32 %v6012_v61, 30 }
 0x250   :  { %v1330_v50 = vor.u32 %v1329_v47, %v1328_v38  ;;  %v1339_v14 = vor.u32 %v1338_v26, %v1337_v22  ;;  %v1333_v17 = vor.u32 %v1332_v27, %v1331_v2  ;;  %v1336_v53 = vor.u32 %v1335_v58, %v1334_v21 }
 0x251   :  { %v1342_v28 = vor.u32 %v1341_v11, %v1340_v35  ;;  %vm1346_vm6 = vcmp.lt.s32.totalorder %v6001_v37, 4  ;;  %v996_v10 = vsel %vm994_vm0, %v5928_v12, %v995_v8  ;;  %v2684_v0 = vsel %vm2682_vm1, %v998_v24, %v4743_v36 }
 0x252   :  { %v6031_v31 = vsub.s32 %v1474_v4, %v1477_v9  ;;  %v1352_v3 = vsel %vm1346_vm6, %v1339_v14, 920167782  ;;  %v2681_v47 = vsel %vm2679_vm2, %v5928_v12, %v995_v8  ;;  %v1296_v27 = vsel %vm5986_vm3, %v5437_v48, %v1293_v23 }
 0x253   :  { %v1180_v58 = vor.u32 %v1179_v25, %v1178_v46  ;;  %v1319_v38 = vor.u32 8388608, %v1318_v44  ;;  %v1185_v22 = vand.u32 2147483647, %v1184_v52  ;;  %vm1343_vm7 = vcmp.lt.s32.totalorder %v6001_v37, 1  ;;  %v6059_v46 = vpop.f32.mrb[15].mxu1  ;;  %v6061_v25 = vpop.f32.mrb[15].mxu0 }
 0x254   :  { %v1480_v26 = vsub.s32 0, %v6031_v31  ;;  %vm1345_vm8 = vcmp.lt.s32.totalorder %v6001_v37, 3  ;;  %vm2678_vm9 = vcmp.lt.s32.totalorder %v5956_v34, 2  ;;  %v1351_v36 = vsel %vm1343_vm7, %v1330_v50, %v1333_v17 }
 0x255   :  { %v1353_v12 = vsel %vm1345_vm8, %v1336_v53, %v1352_v3  ;;  %v1355_v24 = vsel %vm1343_vm7, %v1333_v17, %v1336_v53  ;;  %v1356_v8 = vsel %vm1346_vm6, %v1342_v28, 1326507024  ;;  %v1000_v4 = vsel %vm993_vm4, %v996_v10, %v999_v5 }
 0x256   :  { %4744 = vcosq.f32 %v1296_v27  ;;  %v4298_v23 = vmin.u32 %v1480_v26, %v6031_v31  ;;  %v6057_v44 = vmul.f32 3.1415927, %v5508_v20  ;;  %v1187_v2 = vcvt.s32.f32 %v1180_v58  ;;  %v22_v58 = vld [vmem:[%s7359_s1 + $0x20] sm:$0xff] }
 0x257   :  { %vm1344_vm10 = vcmp.lt.s32.totalorder %v6001_v37, 2  ;;  %v1348_v21 = vsel %vm1346_vm6, %v1336_v53, 2102212464  ;;  %v1357_v1 = vsel %vm1345_vm8, %v1339_v14, %v1356_v8  ;;  %v1359_v5 = vshll.u32 %v1319_v38, 8 }
 0x258   :  { %v1482_v10 = vclz %v4298_v23  ;;  %v1354_v28 = vsel %vm1344_vm10, %v1351_v36, %v1353_v12  ;;  %v1358_v20 = vsel %vm1344_vm10, %v1355_v24, %v1357_v1  ;;  %v1001_v35 = vsel %vm991_vm5, nan, %v1000_v4 }
 0x259   :  { %4746 = vsinq.f32 %v1296_v27  ;;  %vm1107_vm11 = vcmp.lt.s32.totalorder %v5595_v39, 0  ;;  %v1188_v11 = vmul.f32 %v1187_v2, %v1185_v22  ;;  %v1327_v52 = vshrl.u32 %v7411_v40, %v5979_v56 }
 0x25a   :  { %v4299_v9 = vadd.s32 4294967294, %v1482_v10  ;;  %v6077_v14 = vmul.u32.u64.low %v1359_v5, %v1358_v20  ;;  %v6078_v53 = vmul.u32.u64.high %v1359_v5, %v1358_v20, %v6077_v14  ;;  %v1623_v3 = vand.u32 2139095040, %v6057_v44 }
 0x25b   :  { %v1347_v38 = vsel %vm1343_vm7, %v1327_v52, %v1330_v50  ;;  %v1349_v27 = vsel %vm1345_vm8, %v1333_v17, %v1348_v21  ;;  %v6088_v22 = vmul.u32.u64.low %v1359_v5, %v1354_v28  ;;  %v6089_v26 = vmul.u32.u64.high %v1359_v5, %v1354_v28, %v6088_v22 }
 0x25c   :  { %vm4300_vm12 = vcmp.lt.s32.totalorder %v4299_v9, 0  ;;  %v1624_v56 = vshrl.u32 %v1623_v3, 23  ;;  %v6094_v36 = vadd.f32 %v5476_v51, %v5474_v63  ;;  %v6098_v12 = vadd.f32 %v5618_v15, %v5616_v45 }
 0x25d   :  { %v1297_v50 = vsel %vm5986_vm3, 0, %v5993_v55  ;;  %v6103_v24 = vsel %vm4300_vm12, 0, %v4299_v9  ;;  %v6107_v17 = vadd.f32 %v5741_v60, %v5739_v7  ;;  %v6111_v8 = vadd.f32 %v5887_v62, %v5885_v43 }
 0x25e   :  { %v2139_v63 = vmul.f32 %v1001_v35, %v22_v58  ;;  %v2685_v51 = vsel %vm2678_vm9, %v2681_v47, %v2684_v0  ;;  %v1191_v45 = vsub.s32 4, %v5854_v19  ;;  %v1350_v15 = vsel %vm1344_vm10, %v1347_v38, %v1349_v27 }
 0x25f   :  { %v1490_v7 = vsub.s32 4294967266, %v6103_v24  ;;  %vm1368_vm13 = vc.u32 %v6078_v53, %v6088_v22  ;;  %v1369_v60 = vadd.s32 1, %v6089_v26  ;;  %v4305_v43 = vadd.s32 4294967169, %v1624_v56 }
 0x260   :  { %v4745_v62 = vpop.eup %4744  ;;  %v3852_v34 = vmul.f32 %v5981_v6, %v5981_v6  ;;  %v6127_v55 = vand.u32 3, %v1297_v50  ;;  %v2988_v37 = vadd.s32 3, %v1297_v50  ;;  %v1189_v0 = vxor.u32 2147483648, %v1188_v11 }
 0x261   :  { %v2686_v47 = vsel %vm991_vm5, nan, %v2685_v51  ;;  %v1366_v4 = vmul.u32 %v1359_v5, %v1350_v15  ;;  %v1370_v23 = vsel %vm1368_vm13, %v1369_v60, %v6089_v26  ;;  %v1630_v2 = vadd.s32 1, %v4305_v43 }
 0x262   :  { %v3868_v21 = vmul.f32 %v5973_v54, %v5973_v54  ;;  %v2155_v1 = vsub.f32 %v2139_v63, %v38_v57  ;;  %v7417_v10 = vand.u32 2147483647, %v5595_v39  ;;  %v1192_v6 = vsel %vm1107_vm11, %v1191_v45, %v5854_v19 }
 0x263   :  { %v4747_v49 = vpop.eup %4746  ;;  %v6145_v20 = vadd.f32 %v5947_v32, %v5970_v33  ;;  %v1491_v5 = vadd.s32 127, %v1490_v7  ;;  %v1371_v35 = vadd.s32 %v1370_v23, %v1366_v4  ;;  %vm1631_vm15 = vcmp.gt.s32.totalorder %v1630_v2, 0 }
 0x264   :  { %vm6136_vm14 = vcmp.le.f32.partialorder %v7417_v10, 0.7853982  ;;  %v6147_v54 = vadd.f32 %v3868_v21, %v3852_v34  ;;  %v3835_v52 = vmul.f32 %v2686_v47, %v22_v58  ;;  %vm1303_vm0 = vcmp.eq.s32.totalorder %v6127_v55, 0 }
 0x265   :  { %v1190_v9 = vsel %vm1107_vm11, %v1189_v0, %v1188_v11  ;;  %v6152_v14 = vand.u32 3, %v2988_v37  ;;  %v1194_v19 = vsel %vm6136_vm14, 0, %v1192_v6  ;;  %v1372_v3 = vadd.s32 536870912, %v1371_v35 }
 0x266   :  { %7420 = vst [vmem:[#allocation9_spill] sm:$0xff] %v6147_v54  ;;  %v1632_v38 = vsel %vm1631_vm15, %v1630_v2, 0  ;;  %v3851_v32 = vmul.f32 %v2155_v1, %v2155_v1  ;;  %vm1306_vm1 = vcmp.eq.s32.totalorder %v6127_v55, 2  ;;  %v1486_v33 = vsub.s32 32, %v6103_v24 }
 0x267   :  { %v1620_v27 = vand.u32 2147483647, %v6057_v44  ;;  %v1193_v58 = vsel %vm6136_vm14, %v5595_v39, %v1190_v9  ;;  %v1492_v26 = vshll.u32 %v1491_v5, 23  ;;  %v6162_v11 = vshrl.u32 %v1372_v3, 30 }
 0x268   :  { %v1634_v56 = vand.u32 31, %v1632_v38  ;;  %v3867_v50 = vmul.f32 %v3835_v52, %v3835_v52  ;;  %v1307_v63 = vxor.u32 2147483648, %v4745_v62  ;;  %v2884_v51 = vadd.s32 3, %v1194_v19 }
 0x269   :  { %v1470_v45 = vadd.s32 %v5924_v42, %v5919_v13  ;;  %v1304_v15 = vxor.u32 2147483648, %v4747_v49  ;;  %vm2991_vm2 = vcmp.eq.s32.totalorder %v6152_v14, 0  ;;  %vm2994_vm3 = vcmp.eq.s32.totalorder %v6152_v14, 2 }
 0x26a   :  { %v1374_v57 = vshll.u32 %v6162_v11, 30  ;;  %v6169_v7 = vadd.f32 %v3867_v50, %v3851_v32  ;;  %4748 = vcosq.f32 %v1193_v58  ;;  %v6171_v43 = vsub.s32 32, %v1634_v56 }
 0x26b   :  { %v1488_v60 = vshrl.u32 %v1470_v45, %v1486_v33  ;;  %vm1302_vm4 = vcmp.lt.s32.totalorder %v6127_v55, 2  ;;  %vm2990_vm5 = vcmp.lt.s32.totalorder %v6152_v14, 2  ;;  %4750 = vsinq.f32 %v1193_v58 }
 0x26c   :  { %v1493_v34 = vor.u32 4788187, %v1492_v26  ;;  %v6175_v13 = vsub.s32 %v1371_v35, %v1374_v57  ;;  %v1627_v42 = vand.u32 8388607, %v1620_v27  ;;  %v1308_v37 = vsel %vm1306_vm1, %v1307_v63, %v4747_v49 }
 0x26d   :  { %v6181_v0 = vand.u32 3, %v1194_v19  ;;  %v6183_v47 = vand.u32 3, %v2884_v51  ;;  %v1487_v4 = vshll.u32 %v6031_v31, %v6103_v24  ;;  %v1305_v23 = vsel %vm1303_vm0, %v4745_v62, %v1304_v15 }
 0x26e   :  { %v2993_v2 = vsel %vm2991_vm2, %v4745_v62, %v1304_v15  ;;  %v2996_v21 = vsel %vm2994_vm3, %v1307_v63, %v4747_v49  ;;  %v1377_v1 = vsub.s32 0, %v6175_v13  ;;  %v1638_v28 = vshrl.u32 %v7410_v29, %v6171_v43 }
 0x26f   :  { %v1489_v10 = vor.u32 %v1488_v60, %v1487_v4  ;;  %v7421_v6 = vmov 2131351028   ;;  %v1644_v31 = vshrl.u32 %v7415_v59, %v6171_v43  ;;  %v1494_v24 = vand.u32 2147483647, %v1493_v34 }
 0x270   :  { %v1641_v5 = vshrl.u32 %v7421_v6, %v6171_v43  ;;  %v4294_v35 = vmin.u32 %v1377_v1, %v6175_v13  ;;  %v1628_v52 = vor.u32 8388608, %v1627_v42  ;;  %v6201_v62 = vshrl.u32 %v1632_v38, 5 }
 0x271   :  { %v1637_v49 = vshll.u32 %v7411_v40, %v1634_v56  ;;  %v1640_v9 = vshll.u32 %v7410_v29, %v1634_v56  ;;  %v1643_v19 = vshll.u32 %v7421_v6, %v1634_v56  ;;  %v1646_v3 = vshll.u32 %v7415_v59, %v1634_v56 }
 0x272   :  { %v1379_v32 = vclz %v4294_v35  ;;  %v1647_v33 = vshrl.u32 %v7405_v41, %v6171_v43  ;;  %v1649_v58 = vshll.u32 %v7405_v41, %v1634_v56  ;;  %v1650_v26 = vshrl.u32 %v7416_v18, %v6171_v43 }
 0x273   :  { %vm1300_vm6 = vweird.f32 %v5437_v48  ;;  %v1496_v38 = vcvt.s32.f32 %v1489_v10  ;;  %v1639_v50 = vor.u32 %v1638_v28, %v1637_v49  ;;  %v1642_v63 = vor.u32 %v1641_v5, %v1640_v9  ;;  %v41_v48 = vld [vmem:[%s7360_s2 + $0x38] sm:$0xff] }
 0x274   :  { %v1645_v51 = vor.u32 %v1644_v31, %v1643_v19  ;;  %vm1200_vm7 = vcmp.eq.s32.totalorder %v6181_v0, 0  ;;  %vm1203_vm8 = vcmp.eq.s32.totalorder %v6181_v0, 2  ;;  %v4295_v45 = vadd.s32 4294967294, %v1379_v32  ;;  %v4749_v56 = vpop.eup %4748 }
 0x275   :  { %v1648_v15 = vor.u32 %v1647_v33, %v1646_v3  ;;  %v1651_v57 = vor.u32 %v1650_v26, %v1649_v58  ;;  %v6216_v60 = vmul.f32 3.1415927, %v6094_v36  ;;  %v1309_v34 = vsel %vm1302_vm4, %v1305_v23, %v1308_v37  ;;  %v4751_v1 = vpop.eup %4750 }
 0x276   :  { %v2997_v42 = vsel %vm2990_vm5, %v2993_v2, %v2996_v21  ;;  %vm1416_vm9 = vcmp.lt.s32.totalorder %v5724_v30, 0  ;;  %v1497_v4 = vmul.f32 %v1496_v38, %v1494_v24  ;;  %vm1655_vm10 = vcmp.lt.s32.totalorder %v6201_v62, 4 }
 0x277   :  { %vm4296_vm11 = vcmp.lt.s32.totalorder %v4295_v45, 0  ;;  %vm1652_vm12 = vcmp.lt.s32.totalorder %v6201_v62, 1  ;;  %vm1654_vm13 = vcmp.lt.s32.totalorder %v6201_v62, 3  ;;  %v1661_v36 = vsel %vm1655_vm10, %v1648_v15, 920167782 }
 0x278   :  { %vm1199_vm14 = vcmp.lt.s32.totalorder %v6181_v0, 2  ;;  %v1660_v55 = vsel %vm1652_vm12, %v1639_v50, %v1642_v63  ;;  %v1662_v14 = vsel %vm1654_vm13, %v1645_v51, %v1661_v36  ;;  %v1664_v37 = vsel %vm1652_vm12, %v1642_v63, %v1645_v51 }
 0x279   :  { %v1665_v23 = vsel %vm1655_vm10, %v1651_v57, 1326507024  ;;  %v1204_v2 = vxor.u32 2147483648, %v4749_v56  ;;  %v7422_v21 = vand.u32 2147483647, %v5724_v30  ;;  %v6243_v28 = vsel %vm4296_vm11, 0, %v4295_v45 }
 0x27a   :  { %v1668_v5 = vshll.u32 %v1628_v52, 8  ;;  %v1520_v31 = vand.u32 2139095040, %v6216_v60  ;;  %v1201_v24 = vxor.u32 2147483648, %v4751_v1  ;;  %vm1653_vm0 = vcmp.lt.s32.totalorder %v6201_v62, 2 }
 0x27b   :  { %vm6239_vm15 = vcmp.le.f32.partialorder %v7422_v21, 0.7853982  ;;  %v1657_v35 = vsel %vm1655_vm10, %v1645_v51, 2102212464  ;;  %v1666_v49 = vsel %vm1654_vm13, %v1648_v15, %v1665_v23  ;;  %vm1197_vm1 = vweird.f32 %v5595_v39  ;;  %v25_v15 = vld [vmem:[%s7359_s1 + $0x38] sm:$0xff] }
 0x27c   :  { %v1500_v9 = vsub.s32 4, %v6012_v61  ;;  %v1636_v19 = vshrl.u32 %v7411_v40, %v6171_v43  ;;  %v1663_v52 = vsel %vm1653_vm0, %v1660_v55, %v1662_v14  ;;  %v1667_v3 = vsel %vm1653_vm0, %v1664_v37, %v1666_v49 }
 0x27d   :  { %v1498_v32 = vxor.u32 2147483648, %v1497_v4  ;;  %v1387_v33 = vsub.s32 4294967266, %v6243_v28  ;;  %v6260_v58 = vmul.u32.u64.low %v1668_v5, %v1667_v3  ;;  %v6261_v26 = vmul.u32.u64.high %v1668_v5, %v1667_v3, %v6260_v58 }
 0x27e   :  { %v1310_v38 = vsel %vm1300_vm6, nan, %v1309_v34  ;;  %v1656_v51 = vsel %vm1652_vm12, %v1636_v19, %v1639_v50  ;;  %v1658_v43 = vsel %vm1654_vm13, %v1642_v63, %v1657_v35  ;;  %v1521_v45 = vshrl.u32 %v1520_v31, 23 }
 0x27f   :  { %v1202_v57 = vsel %vm1200_vm7, %v4749_v56, %v1201_v24  ;;  %v1205_v36 = vsel %vm1203_vm8, %v1204_v2, %v4751_v1  ;;  %v6276_v55 = vmul.u32.u64.low %v1668_v5, %v1663_v52  ;;  %v6277_v14 = vmul.u32.u64.high %v1668_v5, %v1663_v52, %v6276_v55 }
 0x280   :  { %vm2886_vm2 = vcmp.lt.s32.totalorder %v6183_v47, 2  ;;  %vm2887_vm3 = vcmp.eq.s32.totalorder %v6183_v47, 0  ;;  %vm2890_vm4 = vcmp.eq.s32.totalorder %v6183_v47, 2  ;;  %v1501_v50 = vsel %vm1416_vm9, %v1500_v9, %v6012_v61  ;;  %v40_v47 = vld [vmem:[%s7360_s2 + $0x30] sm:$0xff] }
 0x281   :  { %v2998_v63 = vsel %vm1300_vm6, nan, %v2997_v42  ;;  %v1499_v34 = vsel %vm1416_vm9, %v1498_v32, %v1497_v4  ;;  %v1388_v37 = vadd.s32 127, %v1387_v33  ;;  %v1659_v23 = vsel %vm1653_vm0, %v1656_v51, %v1658_v43 }
 0x282   :  { %v2142_v21 = vmul.f32 %v1310_v38, %v25_v15  ;;  %v1206_v31 = vsel %vm1199_vm14, %v1202_v57, %v1205_v36  ;;  %vm1677_vm5 = vc.u32 %v6261_v26, %v6276_v55  ;;  %v4301_v35 = vadd.s32 4294967169, %v1521_v45 }
 0x283   :  { %v2892_v61 = vsel %vm2890_vm4, %v1204_v2, %v4751_v1  ;;  %v1503_v42 = vsel %vm6239_vm15, 0, %v1501_v50  ;;  %v1383_v4 = vsub.s32 32, %v6243_v28  ;;  %v1678_v62 = vadd.s32 1, %v6277_v14  ;;  %v24_v1 = vld [vmem:[%s7359_s1 + $0x30] sm:$0xff] }
 0x284   :  { %v2889_v0 = vsel %vm2887_vm3, %v4749_v56, %v1201_v24  ;;  %v1502_v49 = vsel %vm6239_vm15, %v5724_v30, %v1499_v34  ;;  %v1675_v9 = vmul.u32 %v1668_v5, %v1659_v23  ;;  %v1527_v19 = vadd.s32 1, %v4301_v35 }
 0x285   :  { %v1207_v2 = vsel %vm1197_vm1, nan, %v1206_v31  ;;  %v1367_v52 = vadd.s32 %v6088_v22, %v6078_v53  ;;  %v1389_v3 = vshll.u32 %v1388_v37, 23  ;;  %v1679_v32 = vsel %vm1677_vm5, %v1678_v62, %v6277_v14 }
 0x286   :  { %v2158_v56 = vsub.f32 %v2142_v21, %v41_v48  ;;  %v3838_v24 = vmul.f32 %v2998_v63, %v25_v15  ;;  %v1680_v33 = vadd.s32 %v1679_v32, %v1675_v9  ;;  %vm1528_vm6 = vcmp.gt.s32.totalorder %v1527_v19, 0 }
 0x287   :  { %v2893_v10 = vsel %vm2886_vm2, %v2889_v0, %v2892_v61  ;;  %4752 = vcosq.f32 %v1502_v49  ;;  %v1385_v5 = vshrl.u32 %v1367_v52, %v1383_v4  ;;  %v1529_v58 = vsel %vm1528_vm6, %v1527_v19, 0 }
 0x288   :  { %v2141_v38 = vmul.f32 %v1207_v2, %v24_v1  ;;  %4754 = vsinq.f32 %v1502_v49  ;;  %v3196_v51 = vadd.s32 3, %v1503_v42  ;;  %v1681_v43 = vadd.s32 536870912, %v1680_v33 }
 0x289   :  { %v1384_v53 = vshll.u32 %v6175_v13, %v6243_v28  ;;  %v1390_v22 = vor.u32 4788187, %v1389_v3  ;;  %v1397_v45 = vsub.s32 4, %v6162_v11  ;;  %v1531_v57 = vand.u32 31, %v1529_v58 }
 0x28a   :  { %v6321_v15 = vmul.f32 %v3838_v24, %v3838_v24  ;;  %v2894_v36 = vsel %vm1197_vm1, nan, %v2893_v10  ;;  %vm1313_vm7 = vcmp.lt.s32.totalorder %v5819_v16, 0  ;;  %v6329_v14 = vshrl.u32 %v1681_v43, 30 }
 0x28b   :  { %v6331_v50 = vmul.f32 %v2158_v56, %v2158_v56  ;;  %v7425_v13 = vand.u32 2147483647, %v5819_v16  ;;  %v1386_v63 = vor.u32 %v1385_v5, %v1384_v53  ;;  %v1517_v34 = vand.u32 2147483647, %v6216_v60 }
 0x28c   :  { %v6340_v37 = vsub.s32 32, %v1531_v57  ;;  %v6342_v23 = vand.u32 3, %v1503_v42  ;;  %v6344_v39 = vand.u32 3, %v3196_v51  ;;  %v1683_v21 = vshll.u32 %v6329_v14, 30 }
 0x28d   :  { %vm6335_vm8 = vcmp.le.f32.partialorder %v7425_v13, 0.7853982  ;;  %v6348_v31 = vmul.f32 3.1415927, %v6098_v12  ;;  %v2157_v35 = vsub.f32 %v2141_v38, %v40_v47  ;;  %v3837_v48 = vmul.f32 %v2894_v36, %v24_v1 }
 0x28e   :  { %v1391_v61 = vand.u32 2147483647, %v1390_v22  ;;  %v1398_v4 = vsel %vm1313_vm7, %v1397_v45, %v6162_v11  ;;  %v6353_v62 = vsub.s32 %v1680_v33, %v1683_v21  ;;  %v1538_v42 = vshrl.u32 %v7421_v6, %v6340_v37 }
 0x28f   :  { %v1541_v0 = vshrl.u32 %v7415_v59, %v6340_v37  ;;  %v1544_v49 = vshrl.u32 %v7405_v41, %v6340_v37  ;;  %v1393_v12 = vcvt.s32.f32 %v1386_v63  ;;  %v1524_v9 = vand.u32 8388607, %v1517_v34 }
 0x290   :  { %v6363_v19 = vshrl.u32 %v1529_v58, 5  ;;  %v1543_v1 = vshll.u32 %v7415_v59, %v1531_v57  ;;  %vm1512_vm9 = vcmp.eq.s32.totalorder %v6342_v23, 2  ;;  %v1686_v11 = vsub.s32 0, %v6353_v62 }
 0x291   :  { %v1535_v2 = vshrl.u32 %v7410_v29, %v6340_v37  ;;  %v1537_v52 = vshll.u32 %v7410_v29, %v1531_v57  ;;  %v1540_v3 = vshll.u32 %v7421_v6, %v1531_v57  ;;  %v6372_v32 = vpop.eup %4752  ;;  %v1394_v56 = vmul.f32 %v1393_v12, %v1391_v61 }
 0x292   :  { %v1545_v24 = vor.u32 %v1544_v49, %v1543_v1  ;;  %v1546_v33 = vshll.u32 %v7405_v41, %v1531_v57  ;;  %v1547_v10 = vshrl.u32 %v7416_v18, %v6340_v37  ;;  %v4755_v5 = vpop.eup %4754  ;;  %vm1509_vm10 = vcmp.eq.s32.totalorder %v6342_v23, 0 }
 0x293   :  { %v4306_v58 = vmin.u32 %v1686_v11, %v6353_v62  ;;  %v1534_v38 = vshll.u32 %v7411_v40, %v1531_v57  ;;  %v1539_v51 = vor.u32 %v1538_v42, %v1537_v52  ;;  %v1542_v43 = vor.u32 %v1541_v0, %v1540_v3 }
 0x294   :  { %v6380_v53 = vmul.f32 %v2157_v35, %v2157_v35  ;;  %v6382_v22 = vmul.f32 %v3837_v48, %v3837_v48  ;;  %v1548_v45 = vor.u32 %v1547_v10, %v1546_v33  ;;  %v1829_v47 = vand.u32 2139095040, %v6348_v31 }
 0x295   :  { %v6387_v36 = vsel %vm6335_vm8, 0, %v1398_v4  ;;  %v1688_v13 = vclz %v4306_v58  ;;  %v1536_v63 = vor.u32 %v1535_v2, %v1534_v38  ;;  %vm1552_vm11 = vcmp.lt.s32.totalorder %v6363_v19, 4 }
 0x296   :  { %v1510_v21 = vxor.u32 2147483648, %v4755_v5  ;;  %v1513_v57 = vxor.u32 2147483648, %v6372_v32  ;;  %vm1549_vm12 = vcmp.lt.s32.totalorder %v6363_v19, 1  ;;  %v1558_v35 = vsel %vm1552_vm11, %v1545_v24, 920167782 }
 0x297   :  { %vm1508_vm13 = vcmp.lt.s32.totalorder %v6342_v23, 2  ;;  %vm3199_vm14 = vcmp.eq.s32.totalorder %v6344_v39, 0  ;;  %vm3202_vm15 = vcmp.eq.s32.totalorder %v6344_v39, 2  ;;  %v1395_v48 = vxor.u32 2147483648, %v1394_v56 }
 0x298   :  { %v4307_v61 = vadd.s32 4294967294, %v1688_v13  ;;  %v1525_v4 = vor.u32 8388608, %v1524_v9  ;;  %v1561_v42 = vsel %vm1549_vm12, %v1539_v51, %v1542_v43  ;;  %vm1550_vm0 = vcmp.lt.s32.totalorder %v6363_v19, 2 }
 0x299   :  { %vm1551_vm1 = vcmp.lt.s32.totalorder %v6363_v19, 3  ;;  %v1562_v0 = vsel %vm1552_vm11, %v1548_v45, 1326507024  ;;  %v1830_v49 = vshrl.u32 %v1829_v47, 23  ;;  %v1557_v12 = vsel %vm1549_vm12, %v1536_v63, %v1539_v51 }
 0x29a   :  { %vm4308_vm2 = vcmp.lt.s32.totalorder %v4307_v61, 0  ;;  %v1559_v1 = vsel %vm1551_vm1, %v1542_v43, %v1558_v35  ;;  %v1563_v9 = vsel %vm1551_vm1, %v1545_v24, %v1562_v0  ;;  %v1514_v11 = vsel %vm1512_vm9, %v1513_v57, %v4755_v5 }
 0x29b   :  { %v1676_v2 = vadd.s32 %v6276_v55, %v6261_v26  ;;  %v1691_v52 = vsel %vm4308_vm2, 0, %v4307_v61  ;;  %v1564_v3 = vsel %vm1550_vm0, %v1561_v42, %v1563_v9  ;;  %vm3198_vm3 = vcmp.lt.s32.totalorder %v6344_v39, 2 }
 0x29c   :  { %v1396_v33 = vsel %vm1313_vm7, %v1395_v48, %v1394_v56  ;;  %v1692_v10 = vsub.s32 32, %v1691_v52  ;;  %v1554_v58 = vsel %vm1552_vm11, %v1542_v43, 2102212464  ;;  %v1565_v24 = vshll.u32 %v1525_v4, 8 }
 0x29d   :  { %vm1506_vm4 = vweird.f32 %v5724_v30  ;;  %v1511_v26 = vsel %vm1509_vm10, %v6372_v32, %v1510_v21  ;;  %v1696_v55 = vsub.s32 4294967266, %v1691_v52  ;;  %v1533_v38 = vshrl.u32 %v7411_v40, %v6340_v37 }
 0x29e   :  { %v1560_v45 = vsel %vm1550_vm0, %v1557_v12, %v1559_v1  ;;  %v1694_v47 = vshrl.u32 %v1676_v2, %v1692_v10  ;;  %v6428_v56 = vmul.u32.u64.low %v1565_v24, %v1564_v3  ;;  %v6429_v13 = vmul.u32.u64.high %v1565_v24, %v1564_v3, %v6428_v56 }
 0x29f   :  { %v4313_v35 = vadd.s32 4294967169, %v1830_v49  ;;  %v1399_v43 = vsel %vm6335_vm8, %v5819_v16, %v1396_v33  ;;  %v1697_v48 = vadd.s32 127, %v1696_v55  ;;  %v1553_v61 = vsel %vm1549_vm12, %v1533_v38, %v1536_v63 }
 0x2a0   :  { %v1555_v4 = vsel %vm1551_vm1, %v1539_v51, %v1554_v58  ;;  %v1693_v37 = vshll.u32 %v6353_v62, %v1691_v52  ;;  %v6439_v42 = vmul.u32.u64.low %v1565_v24, %v1560_v45  ;;  %v6440_v0 = vmul.u32.u64.high %v1565_v24, %v1560_v45, %v6439_v42 }
 0x2a1   :  { %v1836_v12 = vadd.s32 1, %v4313_v35  ;;  %v1515_v49 = vsel %vm1508_vm13, %v1511_v26, %v1514_v11  ;;  %v3201_v28 = vsel %vm3199_vm14, %v6372_v32, %v1510_v21  ;;  %v3204_v63 = vsel %vm3202_vm15, %v1513_v57, %v4755_v5 }
 0x2a2   :  { %v1698_v1 = vshll.u32 %v1697_v48, 23  ;;  %v1695_v9 = vor.u32 %v1694_v47, %v1693_v37  ;;  %v1556_v62 = vsel %vm1550_vm0, %v1553_v61, %v1555_v4  ;;  %v7389_v51 = vand.u32 2147483647, %v6348_v31  ;;  %v27_v61 = vld [vmem:[%s7359_s1 + $0x48] sm:$0xff] }
 0x2a3   :  { %vm1837_vm5 = vcmp.gt.s32.totalorder %v1836_v12, 0  ;;  %4756 = vcosq.f32 %v1399_v43  ;;  %vm1574_vm6 = vc.u32 %v6429_v13, %v6439_v42  ;;  %v6456_v32 = vand.u32 3, %v6387_v36 }
 0x2a4   :  { %v1699_v2 = vor.u32 4788187, %v1698_v1  ;;  %v1838_v23 = vsel %vm1837_vm5, %v1836_v12, 0  ;;  %4758 = vsinq.f32 %v1399_v43  ;;  %v1575_v5 = vadd.s32 1, %v6440_v0 }
 0x2a5   :  { %v1840_v21 = vand.u32 31, %v1838_v23  ;;  %v3205_v19 = vsel %vm3198_vm3, %v3201_v28, %v3204_v63  ;;  %v3092_v57 = vadd.s32 3, %v6387_v36  ;;  %v1572_v52 = vmul.u32 %v1565_v24, %v1556_v62 }
 0x2a6   :  { %v1700_v11 = vand.u32 2147483647, %v1699_v2  ;;  %v1516_v3 = vsel %vm1506_vm4, nan, %v1515_v49  ;;  %v1702_v33 = vcvt.s32.f32 %v1695_v9  ;;  %v1576_v10 = vsel %vm1574_vm6, %v1575_v5, %v6440_v0 }
 0x2a7   :  { %v6465_v58 = vsub.s32 32, %v1840_v21  ;;  %vm1622_vm7 = vcmp.lt.s32.totalorder %v6057_v44, 0  ;;  %v1577_v26 = vadd.s32 %v1576_v10, %v1572_v52  ;;  %v1833_v55 = vand.u32 8388607, %v7389_v51 }
 0x2a8   :  { %v1843_v39 = vshll.u32 %v7411_v40, %v1840_v21  ;;  %v1846_v36 = vshll.u32 %v7410_v29, %v1840_v21  ;;  %v1703_v38 = vmul.f32 %v1702_v33, %v1700_v11  ;;  %v6478_v35 = vshrl.u32 %v1838_v23, 5 }
 0x2a9   :  { %v1844_v24 = vshrl.u32 %v7410_v29, %v6465_v58  ;;  %v1847_v45 = vshrl.u32 %v7421_v6, %v6465_v58  ;;  %v1850_v47 = vshrl.u32 %v7415_v59, %v6465_v58  ;;  %v1578_v56 = vadd.s32 536870912, %v1577_v26 }
 0x2aa   :  { %v1852_v43 = vshll.u32 %v7415_v59, %v1840_v21  ;;  %v1853_v48 = vshrl.u32 %v7405_v41, %v6465_v58  ;;  %vm6488_vm8 = vcmp.le.f32.partialorder %v1620_v27, 0.7853982  ;;  %v1849_v12 = vshll.u32 %v7421_v6, %v1840_v21 }
 0x2ab   :  { %v1845_v37 = vor.u32 %v1844_v24, %v1843_v39  ;;  %v1848_v0 = vor.u32 %v1847_v45, %v1846_v36  ;;  %v1856_v49 = vshrl.u32 %v7416_v18, %v6465_v58  ;;  %v6495_v28 = vand.u32 3, %v3092_v57 }
 0x2ac   :  { %v6497_v63 = vshrl.u32 %v1578_v56, 30  ;;  %v1834_v1 = vor.u32 8388608, %v1833_v55  ;;  %v1854_v9 = vor.u32 %v1853_v48, %v1852_v43  ;;  %vm1409_vm9 = vcmp.eq.s32.totalorder %v6456_v32, 2 }
 0x2ad   :  { %v1704_v62 = vxor.u32 2147483648, %v1703_v38  ;;  %v1851_v27 = vor.u32 %v1850_v47, %v1849_v12  ;;  %v1855_v2 = vshll.u32 %v7405_v41, %v1840_v21  ;;  %v6502_v23 = vmul.f32 3.1415927, %v6107_v17  ;;  %v6504_v5 = vpop.eup %4756 }
 0x2ae   :  { %v2144_v11 = vmul.f32 %v1516_v3, %v27_v61  ;;  %v3206_v57 = vsel %vm1506_vm4, nan, %v3205_v19  ;;  %vm1406_vm10 = vcmp.eq.s32.totalorder %v6456_v32, 0  ;;  %v1580_v52 = vshll.u32 %v6497_v63, 30  ;;  %v6511_v33 = vpop.eup %4758 }
 0x2af   :  { %vm1858_vm11 = vcmp.lt.s32.totalorder %v6478_v35, 1  ;;  %v1706_v10 = vsub.s32 4, %v6329_v14  ;;  %v1857_v21 = vor.u32 %v1856_v49, %v1855_v2  ;;  %vm1861_vm12 = vcmp.lt.s32.totalorder %v6478_v35, 4 }
 0x2b0   :  { %v1866_v17 = vsel %vm1858_vm11, %v1845_v37, %v1848_v0  ;;  %v6517_v3 = vsub.s32 %v1577_v26, %v1580_v52  ;;  %vm1860_vm13 = vcmp.lt.s32.totalorder %v6478_v35, 3  ;;  %v1867_v30 = vsel %vm1861_vm12, %v1854_v9, 920167782 }
 0x2b1   :  { %v6522_v19 = vshll.u32 %v1834_v1, 8  ;;  %vm1405_vm14 = vcmp.lt.s32.totalorder %v6456_v32, 2  ;;  %v1705_v55 = vsel %vm1622_vm7, %v1704_v62, %v1703_v38  ;;  %vm1859_vm15 = vcmp.lt.s32.totalorder %v6478_v35, 2 }
 0x2b2   :  { %v1868_v39 = vsel %vm1860_vm13, %v1851_v27, %v1867_v30  ;;  %v1726_v26 = vand.u32 2139095040, %v6502_v23  ;;  %v1407_v36 = vxor.u32 2147483648, %v6511_v33  ;;  %v1410_v24 = vxor.u32 2147483648, %v6504_v5 }
 0x2b3   :  { %v1583_v45 = vsub.s32 0, %v6517_v3  ;;  %v1869_v47 = vsel %vm1859_vm15, %v1866_v17, %v1868_v39  ;;  %v1870_v56 = vsel %vm1858_vm11, %v1848_v0, %v1851_v27  ;;  %v1871_v38 = vsel %vm1861_vm12, %v1857_v21, 1326507024 }
 0x2b4   :  { %v6541_v43 = vmul.u32.u64.low %v6522_v19, %v1869_v47  ;;  %v6542_v48 = vmul.u32.u64.high %v6522_v19, %v1869_v47, %v6541_v43  ;;  %v3840_v12 = vmul.f32 %v3206_v57, %v27_v61  ;;  %vm1403_vm0 = vweird.f32 %v5819_v16 }
 0x2b5   :  { %v1708_v49 = vsel %vm6488_vm8, %v6057_v44, %v1705_v55  ;;  %v4302_v1 = vmin.u32 %v1583_v45, %v6517_v3  ;;  %v1863_v62 = vsel %vm1861_vm12, %v1851_v27, 2102212464  ;;  %v1707_v2 = vsel %vm1622_vm7, %v1706_v10, %v6329_v14  ;;  %v43_v14 = vld [vmem:[%s7360_s2 + $0x48] sm:$0xff] }
 0x2b6   :  { %v1842_v52 = vshrl.u32 %v7411_v40, %v6465_v58  ;;  %v1872_v61 = vsel %vm1860_vm13, %v1854_v9, %v1871_v38  ;;  %v1727_v57 = vshrl.u32 %v1726_v26, 23  ;;  %v1411_v21 = vsel %vm1409_vm9, %v1410_v24, %v6511_v33 }
 0x2b7   :  { %v1585_v17 = vclz %v4302_v1  ;;  %v1873_v30 = vsel %vm1859_vm15, %v1870_v56, %v1872_v61  ;;  %v6566_v27 = vadd.f32 %v6061_v25, %v6059_v46  ;;  %v1408_v58 = vsel %vm1406_vm10, %v6504_v5, %v1407_v36 }
 0x2b8   :  { %4760 = vcosq.f32 %v1708_v49  ;;  %v1862_v9 = vsel %vm1858_vm11, %v1842_v52, %v1845_v37  ;;  %v1864_v10 = vsel %vm1860_vm13, %v1848_v0, %v1863_v62  ;;  %v4309_v25 = vadd.s32 4294967169, %v1727_v57 }
 0x2b9   :  { %v4303_v55 = vadd.s32 4294967294, %v1585_v17  ;;  %v6579_v39 = vmul.u32.u64.low %v6522_v19, %v1873_v30  ;;  %v6580_v46 = vmul.u32.u64.high %v6522_v19, %v1873_v30, %v6579_v39  ;;  %vm3094_vm1 = vcmp.lt.s32.totalorder %v6495_v28, 2 }
 0x2ba   :  { %vm3095_vm2 = vcmp.eq.s32.totalorder %v6495_v28, 0  ;;  %vm3098_vm3 = vcmp.eq.s32.totalorder %v6495_v28, 2  ;;  %v1709_v26 = vsel %vm6488_vm8, 0, %v1707_v2  ;;  %v2160_v45 = vsub.f32 %v2144_v11, %v43_v14 }
 0x2bb   :  { %v1412_v37 = vsel %vm1405_vm14, %v1408_v58, %v1411_v21  ;;  %4762 = vsinq.f32 %v1708_v49  ;;  %vm1519_vm4 = vcmp.lt.s32.totalorder %v6216_v60, 0  ;;  %vm4304_vm5 = vcmp.lt.s32.totalorder %v4303_v55, 0 }
 0x2bc   :  { %v6590_v0 = vmul.f32 %v3840_v12, %v3840_v12  ;;  %v1588_v47 = vsel %vm4304_vm5, 0, %v4303_v55  ;;  %v1865_v56 = vsel %vm1859_vm15, %v1862_v9, %v1864_v10  ;;  %v1884_v38 = vadd.s32 1, %v6542_v48 }
 0x2bd   :  { %v3404_v1 = vadd.s32 3, %v1709_v26  ;;  %v1573_v4 = vadd.s32 %v6439_v42, %v6429_v13  ;;  %v1589_v11 = vsub.s32 32, %v1588_v47  ;;  %v1733_v62 = vadd.s32 1, %v4309_v25 }
 0x2be   :  { %v1413_v32 = vsel %vm1403_vm0, nan, %v1412_v37  ;;  %v3097_v12 = vsel %vm3095_vm2, %v6504_v5, %v1407_v36  ;;  %v3100_v35 = vsel %vm3098_vm3, %v1410_v24, %v6511_v33  ;;  %vm6607_vm6 = vcmp.le.f32.partialorder %v1517_v34, 0.7853982  ;;  %v6618_v5 = vld [vmem:[%s7359_s1 + $0x40] sm:$0xff] }
 0x2bf   :  { %v1593_v13 = vsub.s32 4294967266, %v1588_v47  ;;  %v1591_v42 = vshrl.u32 %v1573_v4, %v1589_v11  ;;  %v1881_v2 = vmul.u32 %v6522_v19, %v1865_v56  ;;  %vm1883_vm7 = vc.u32 %v6580_v46, %v6541_v43 }
 0x2c0   :  { %v7388_v52 = vand.u32 2147483647, %v6502_v23  ;;  %v1590_v33 = vshll.u32 %v6517_v3, %v1588_v47  ;;  %v1603_v36 = vsub.s32 4, %v6497_v63  ;;  %v1885_v24 = vsel %vm1883_vm7, %v1884_v38, %v6542_v48  ;;  %v42_v3 = vld [vmem:[%s7360_s2 + $0x40] sm:$0xff] }
 0x2c1   :  { %v1594_v34 = vadd.s32 127, %v1593_v13  ;;  %v6623_v61 = vmul.f32 %v2160_v45, %v2160_v45  ;;  %v6625_v19 = vand.u32 3, %v1709_v26  ;;  %v1886_v57 = vadd.s32 %v1885_v24, %v1881_v2 }
 0x2c2   :  { %vm1734_vm8 = vcmp.gt.s32.totalorder %v1733_v62, 0  ;;  %v6627_v21 = vpop.eup %4760  ;;  %v6629_v17 = vand.u32 3, %v3404_v1  ;;  %v1592_v30 = vor.u32 %v1591_v42, %v1590_v33  ;;  %v2143_v9 = vmul.f32 %v1413_v32, %v6618_v5 }
 0x2c3   :  { %v1595_v14 = vshll.u32 %v1594_v34, 23  ;;  %v1735_v58 = vsel %vm1734_vm8, %v1733_v62, 0  ;;  %v3101_v48 = vsel %vm3094_vm1, %v3097_v12, %v3100_v35  ;;  %v1887_v10 = vadd.s32 536870912, %v1886_v57 }
 0x2c4   :  { %v1737_v55 = vand.u32 31, %v1735_v58  ;;  %v1604_v25 = vsel %vm1519_vm4, %v1603_v36, %v6497_v63  ;;  %v1730_v26 = vand.u32 8388607, %v7388_v52  ;;  %v6643_v45 = vmul.f32 3.1415927, %v6111_v8 }
 0x2c5   :  { %v1596_v39 = vor.u32 4788187, %v1595_v14  ;;  %v6645_v37 = vpop.eup %4762  ;;  %vm1715_vm9 = vcmp.eq.s32.totalorder %v6625_v19, 0  ;;  %vm1718_vm10 = vcmp.eq.s32.totalorder %v6625_v19, 2  ;;  %v6649_v28 = vshrl.u32 %v1887_v10, 30 }
 0x2c6   :  { %v1738_v47 = vsub.s32 32, %v1737_v55  ;;  %v1719_v56 = vxor.u32 2147483648, %v6627_v21  ;;  %vm3410_vm11 = vcmp.eq.s32.totalorder %v6629_v17, 2  ;;  %v1599_v38 = vcvt.s32.f32 %v1592_v30 }
 0x2c7   :  { %v1597_v63 = vand.u32 2147483647, %v1596_v39  ;;  %v6653_v1 = vsub.f32 %v2143_v9, %v42_v3  ;;  %v6657_v8 = vsel %vm1403_vm0, nan, %v3101_v48  ;;  %v6661_v4 = vsel %vm6607_vm6, 0, %v1604_v25 }
 0x2c8   :  { %v1889_v11 = vshll.u32 %v6649_v28, 30  ;;  %v1716_v62 = vxor.u32 2147483648, %v6645_v37  ;;  %v1731_v12 = vor.u32 8388608, %v1730_v26  ;;  %v2035_v35 = vand.u32 2139095040, %v6643_v45 }
 0x2c9   :  { %v1600_v32 = vmul.f32 %v1599_v38, %v1597_v63  ;;  %v1741_v42 = vshrl.u32 %v7410_v29, %v1738_v47  ;;  %v1744_v16 = vshrl.u32 %v7421_v6, %v1738_v47  ;;  %v1750_v2 = vshrl.u32 %v7405_v41, %v1738_v47 }
 0x2ca   :  { %v6666_v13 = vsub.s32 %v1886_v57, %v1889_v11  ;;  %v6674_v33 = vsel %vm1718_vm10, %v1719_v56, %v6645_v37  ;;  %v6679_v34 = vsel %vm3410_vm11, %v1719_v56, %v6645_v37  ;;  %v1736_v36 = vshrl.u32 %v1735_v58, 5 }
 0x2cb   :  { %v1747_v24 = vshrl.u32 %v7415_v59, %v1738_v47  ;;  %v1740_v30 = vshll.u32 %v7411_v40, %v1737_v55  ;;  %v1743_v14 = vshll.u32 %v7410_v29, %v1737_v55  ;;  %v1749_v3 = vshll.u32 %v7415_v59, %v1737_v55 }
 0x2cc   :  { %v1892_v57 = vsub.s32 0, %v6666_v13  ;;  %v1601_v9 = vxor.u32 2147483648, %v1600_v32  ;;  %v1746_v48 = vshll.u32 %v7421_v6, %v1737_v55  ;;  %v1752_v10 = vshll.u32 %v7405_v41, %v1737_v55 }
 0x2cd   :  { %v1753_v39 = vshrl.u32 %v7416_v18, %v1738_v47  ;;  %v1742_v58 = vor.u32 %v1741_v42, %v1740_v30  ;;  %v1745_v26 = vor.u32 %v1744_v16, %v1743_v14  ;;  %v1751_v56 = vor.u32 %v1750_v2, %v1749_v3 }
 0x2ce   :  { %v4314_v25 = vmin.u32 %v1892_v57, %v6666_v13  ;;  %v1717_v63 = vsel %vm1715_vm9, %v6627_v21, %v1716_v62  ;;  %v1748_v38 = vor.u32 %v1747_v24, %v1746_v48  ;;  %v6695_v52 = vshll.u32 %v1731_v12, 8 }
 0x2cf   :  { %v1754_v11 = vor.u32 %v1753_v39, %v1752_v10  ;;  %v1882_v55 = vadd.s32 %v6541_v43, %v6580_v46  ;;  %v1739_v54 = vshrl.u32 %v7411_v40, %v1738_v47  ;;  %v2036_v57 = vshrl.u32 %v2035_v35, 23 }
 0x2d0   :  { %v1894_v51 = vclz %v4314_v25  ;;  %vm1714_vm12 = vcmp.lt.s32.totalorder %v6625_v19, 2  ;;  %vm3407_vm13 = vcmp.eq.s32.totalorder %v6629_v17, 0  ;;  %v1602_v42 = vsel %vm1519_vm4, %v1601_v9, %v1600_v32 }
 0x2d1   :  { %vm1755_vm14 = vcmp.lt.s32.totalorder %v1736_v36, 1  ;;  %vm1756_vm15 = vcmp.lt.s32.totalorder %v1736_v36, 2  ;;  %vm1758_vm0 = vcmp.lt.s32.totalorder %v1736_v36, 4  ;;  %vm1828_vm1 = vcmp.lt.s32.totalorder %v6348_v31, 0 }
 0x2d2   :  { %v4315_v12 = vadd.s32 4294967294, %v1894_v51  ;;  %vm1757_vm2 = vcmp.lt.s32.totalorder %v1736_v36, 3  ;;  %v1763_v43 = vsel %vm1755_vm14, %v1742_v58, %v1745_v26  ;;  %v1764_v46 = vsel %vm1758_vm0, %v1751_v56, 920167782 }
 0x2d3   :  { %v1760_v16 = vsel %vm1758_vm0, %v1748_v38, 2102212464  ;;  %v1765_v47 = vsel %vm1757_vm2, %v1748_v38, %v1764_v46  ;;  %v1767_v35 = vsel %vm1755_vm14, %v1745_v26, %v1748_v38  ;;  %v1768_v2 = vsel %vm1758_vm0, %v1754_v11, 1326507024 }
 0x2d4   :  { %vm1712_vm3 = vweird.f32 %v6057_v44  ;;  %vm3406_vm4 = vcmp.lt.s32.totalorder %v6629_v17, 2  ;;  %v1605_v32 = vsel %vm6607_vm6, %v6216_v60, %v1602_v42  ;;  %vm4316_vm5 = vcmp.lt.s32.totalorder %v4315_v12, 0 }
 0x2d5   :  { %v1766_v51 = vsel %vm1756_vm15, %v1763_v43, %v1765_v47  ;;  %v1769_v24 = vsel %vm1757_vm2, %v1751_v56, %v1768_v2  ;;  %v7432_v30 = vand.u32 2147483647, %v6348_v31  ;;  %v1897_v3 = vsel %vm4316_vm5, 0, %v4315_v12 }
 0x2d6   :  { %v1770_v9 = vsel %vm1756_vm15, %v1767_v35, %v1769_v24  ;;  %v6723_v48 = vmul.u32.u64.low %v6695_v52, %v1766_v51  ;;  %v6724_v10 = vmul.u32.u64.high %v6695_v52, %v1766_v51, %v6723_v48  ;;  %v1898_v49 = vsub.s32 32, %v1897_v3 }
 0x2d7   :  { %vm6717_vm7 = vcmp.le.f32.partialorder %v7432_v30, 0.7853982  ;;  %v1902_v39 = vsub.s32 4294967266, %v1897_v3  ;;  %v1759_v25 = vsel %vm1755_vm14, %v1739_v54, %v1742_v58  ;;  %v1761_v56 = vsel %vm1757_vm2, %v1745_v26, %v1760_v16 }
 0x2d8   :  { %v1912_v38 = vsub.s32 4, %v6649_v28  ;;  %v6731_v11 = vmul.u32.u64.low %v6695_v52, %v1770_v9  ;;  %v6732_v42 = vmul.u32.u64.high %v6695_v52, %v1770_v9, %v6731_v11  ;;  %v4321_v12 = vadd.s32 4294967169, %v2036_v57 }
 0x2d9   :  { %4764 = vcosq.f32 %v1605_v32  ;;  %v1899_v43 = vshll.u32 %v6666_v13, %v1897_v3  ;;  %v1900_v46 = vshrl.u32 %v1882_v55, %v1898_v49  ;;  %v1903_v47 = vadd.s32 127, %v1902_v39 }
 0x2da   :  { %4766 = vsinq.f32 %v1605_v32  ;;  %v1762_v35 = vsel %vm1756_vm15, %v1759_v25, %v1761_v56  ;;  %v1781_v2 = vadd.s32 1, %v6724_v10  ;;  %v2042_v54 = vadd.s32 1, %v4321_v12  ;;  %v45_v25 = vld [vmem:[%s7360_s2 + $0x58] sm:$0xff] }
 0x2db   :  { %v1721_v58 = vsel %vm1714_vm12, %v1717_v63, %v6674_v33  ;;  %v3409_v26 = vsel %vm3407_vm13, %v6627_v21, %v1716_v62  ;;  %v1901_v57 = vor.u32 %v1900_v46, %v1899_v43  ;;  %v1904_v13 = vshll.u32 %v1903_v47, 23  ;;  %v29_v62 = vld [vmem:[%s7359_s1 + $0x58] sm:$0xff] }
 0x2dc   :  { %v3300_v55 = vadd.s32 3, %v6661_v4  ;;  %v1913_v36 = vsel %vm1828_vm1, %v1912_v38, %v6649_v28  ;;  %vm1780_vm6 = vc.u32 %v6732_v42, %v6723_v48  ;;  %vm2043_vm8 = vcmp.gt.s32.totalorder %v2042_v54, 0 }
 0x2dd   :  { %v3839_v19 = vmul.f32 %v6657_v8, %v6618_v5  ;;  %v1905_v37 = vor.u32 4788187, %v1904_v13  ;;  %v1778_v33 = vmul.u32 %v6695_v52, %v1762_v35  ;;  %v2032_v21 = vand.u32 2147483647, %v6643_v45 }
 0x2de   :  { %v1722_v63 = vsel %vm1712_vm3, nan, %v1721_v58  ;;  %v3413_v28 = vsel %vm3406_vm4, %v3409_v26, %v6679_v34  ;;  %v1782_v16 = vsel %vm1780_vm6, %v1781_v2, %v6724_v10  ;;  %v2044_v32 = vsel %vm2043_vm8, %v2042_v54, 0 }
 0x2df   :  { %v1906_v5 = vand.u32 2147483647, %v1905_v37  ;;  %v1908_v8 = vcvt.s32.f32 %v1901_v57  ;;  %v1915_v52 = vsel %vm6717_vm7, 0, %v1913_v36  ;;  %v1783_v51 = vadd.s32 %v1782_v16, %v1778_v33 }
 0x2e0   :  { %v3855_v24 = vmul.f32 %v6653_v1, %v6653_v1  ;;  %v6769_v30 = vand.u32 3, %v6661_v4  ;;  %v6771_v3 = vand.u32 3, %v3300_v55  ;;  %v2046_v9 = vand.u32 31, %v2044_v32 }
 0x2e1   :  { %v2146_v17 = vmul.f32 %v1722_v63, %v29_v62  ;;  %v3414_v34 = vsel %vm1712_vm3, nan, %v3413_v28  ;;  %v1909_v10 = vmul.f32 %v1908_v8, %v1906_v5  ;;  %v1784_v49 = vadd.s32 536870912, %v1783_v51 }
 0x2e2   :  { %v3871_v39 = vmul.f32 %v3839_v19, %v3839_v19  ;;  %v3612_v56 = vadd.s32 3, %v1915_v52  ;;  %v2039_v1 = vand.u32 8388607, %v2032_v21  ;;  %v6780_v4 = vsub.s32 32, %v2046_v9 }
 0x2e3   :  { %v4765_v38 = vpop.eup %4764  ;;  %v6784_v11 = vadd.f32 %v6321_v15, %v6331_v50  ;;  %v6788_v44 = vadd.f32 %v6382_v22, %v6380_v53  ;;  %v1910_v12 = vxor.u32 2147483648, %v1909_v10  ;;  %v6790_v43 = vshrl.u32 %v1784_v49, 30 }
 0x2e4   :  { %v4767_v46 = vpop.eup %4766  ;;  %v6794_v47 = vadd.f32 %v6590_v0, %v6623_v61  ;;  %v6796_v35 = vadd.f32 %v3871_v39, %v3855_v24  ;;  %v6798_v2 = vmul.f32 %v3414_v34, %v29_v62  ;;  %vm1615_vm9 = vcmp.eq.s32.totalorder %v6769_v30, 2 }
 0x2e5   :  { %v6801_v15 = vsub.f32 %v2146_v17, %v45_v25  ;;  %vm1612_vm10 = vcmp.eq.s32.totalorder %v6769_v30, 0  ;;  %vm3306_vm11 = vcmp.eq.s32.totalorder %v6771_v3, 2  ;;  %v1911_v50 = vsel %vm1828_vm1, %v1910_v12, %v1909_v10  ;;  %v7435_v25 = vld [vmem:[#allocation6_spill] sm:$0xff] }
 0x2e6   :  { %v6807_v53 = vand.u32 3, %v1915_v52  ;;  %v1786_v22 = vshll.u32 %v6790_v43, 30  ;;  %v1616_v0 = vxor.u32 2147483648, %v4765_v38  ;;  %v6810_v61 = vand.u32 3, %v3612_v56 }
 0x2e7   :  { %v2040_v54 = vor.u32 8388608, %v2039_v1  ;;  %v2053_v58 = vshrl.u32 %v7421_v6, %v6780_v4  ;;  %v1613_v26 = vxor.u32 2147483648, %v4767_v46  ;;  %vm3303_vm12 = vcmp.eq.s32.totalorder %v6771_v3, 0 }
 0x2e8   :  { %v1914_v57 = vsel %vm6717_vm7, %v6348_v31, %v1911_v50  ;;  %v6818_v13 = vsub.s32 %v1783_v51, %v1786_v22  ;;  %v2056_v55 = vshrl.u32 %v7415_v59, %v6780_v4  ;;  %v6822_v36 = vshrl.u32 %v2044_v32, 5 }
 0x2e9   :  { %v2050_v19 = vshrl.u32 %v7410_v29, %v6780_v4  ;;  %v2052_v37 = vshll.u32 %v7410_v29, %v2046_v9  ;;  %v2059_v33 = vshrl.u32 %v7405_v41, %v6780_v4  ;;  %vm1611_vm13 = vcmp.lt.s32.totalorder %v6769_v30, 2 }
 0x2ea   :  { %v1789_v14 = vsub.s32 0, %v6818_v13  ;;  %v2049_v62 = vshll.u32 %v7411_v40, %v2046_v9  ;;  %v2055_v63 = vshll.u32 %v7421_v6, %v2046_v9  ;;  %v2058_v28 = vshll.u32 %v7415_v59, %v2046_v9 }
 0x2eb   :  { %4768 = vcosq.f32 %v1914_v57  ;;  %v2054_v16 = vor.u32 %v2053_v58, %v2052_v37  ;;  %v2061_v32 = vshll.u32 %v7405_v41, %v2046_v9  ;;  %v2062_v5 = vshrl.u32 %v7416_v18, %v6780_v4 }
 0x2ec   :  { %4770 = vsinq.f32 %v1914_v57  ;;  %v4310_v8 = vmin.u32 %v1789_v14, %v6818_v13  ;;  %v2057_v52 = vor.u32 %v2056_v55, %v2055_v63  ;;  %v2060_v51 = vor.u32 %v2059_v33, %v2058_v28 }
 0x2ed   :  { %v2051_v24 = vor.u32 %v2050_v19, %v2049_v62  ;;  %v2063_v17 = vor.u32 %v2062_v5, %v2061_v32  ;;  %v6838_v34 = vshll.u32 %v2040_v54, 8  ;;  %v6841_v10 = vmul.f32 3.1415927, %v6566_v27 }
 0x2ee   :  { %vm1609_vm14 = vweird.f32 %v6216_v60  ;;  %v1617_v9 = vsel %vm1615_vm9, %v1616_v0, %v4767_v46  ;;  %vm3302_vm15 = vcmp.lt.s32.totalorder %v6771_v3, 2  ;;  %v1779_v49 = vadd.s32 %v6723_v48, %v6732_v42 }
 0x2ef   :  { %v1791_v39 = vclz %v4310_v8  ;;  %4772 = vrsqrt.f32 %v7435_v25  ;;  %v1614_v56 = vsel %vm1612_vm10, %v4765_v38, %v1613_v26  ;;  %v3308_v27 = vsel %vm3306_vm11, %v1616_v0, %v4767_v46 }
 0x2f0   :  { %vm1725_vm0 = vcmp.lt.s32.totalorder %v6502_v23, 0  ;;  %vm2064_vm1 = vcmp.lt.s32.totalorder %v6822_v36, 1  ;;  %vm2067_vm2 = vcmp.lt.s32.totalorder %v6822_v36, 4  ;;  %vm2066_vm3 = vcmp.lt.s32.totalorder %v6822_v36, 3 }
 0x2f1   :  { %v4311_v1 = vadd.s32 4294967294, %v1791_v39  ;;  %v2073_v12 = vsel %vm2067_vm2, %v2060_v51, 920167782  ;;  %v2076_v48 = vsel %vm2064_vm1, %v2054_v16, %v2057_v52  ;;  %v3305_v42 = vsel %vm3303_vm12, %v4765_v38, %v1613_v26 }
 0x2f2   :  { %v2072_v50 = vsel %vm2064_vm1, %v2051_v24, %v2054_v16  ;;  %v2074_v46 = vsel %vm2066_vm3, %v2057_v52, %v2073_v12  ;;  %v2077_v22 = vsel %vm2067_vm2, %v2063_v17, 1326507024  ;;  %v7436_v0 = vand.u32 2147483647, %v6502_v23 }
 0x2f3   :  { %vm4312_vm5 = vcmp.lt.s32.totalorder %v4311_v1, 0  ;;  %vm2065_vm7 = vcmp.lt.s32.totalorder %v6822_v36, 2  ;;  %v2069_v58 = vsel %vm2067_vm2, %v2057_v52, 2102212464  ;;  %v2078_v38 = vsel %vm2066_vm3, %v2060_v51, %v2077_v22 }
 0x2f4   :  { %vm6868_vm4 = vcmp.le.f32.partialorder %v7436_v0, 0.7853982  ;;  %v1618_v26 = vsel %vm1611_vm13, %v1614_v56, %v1617_v9  ;;  %v1794_v57 = vsel %vm4312_vm5, 0, %v4311_v1  ;;  %v2048_v55 = vshrl.u32 %v7411_v40, %v6780_v4 }
 0x2f5   :  { %v2079_v19 = vsel %vm2065_vm7, %v2076_v48, %v2078_v38  ;;  %vm1921_vm6 = vcmp.eq.s32.totalorder %v6807_v53, 0  ;;  %vm1924_vm8 = vcmp.eq.s32.totalorder %v6807_v53, 2  ;;  %v1795_v37 = vsub.s32 32, %v1794_v57  ;;  %v4769_v30 = vpop.eup %4768 }
 0x2f6   :  { %v1799_v33 = vsub.s32 4294967266, %v1794_v57  ;;  %v1809_v14 = vsub.s32 4, %v6790_v43  ;;  %v2075_v62 = vsel %vm2065_vm7, %v2072_v50, %v2074_v46  ;;  %v2068_v63 = vsel %vm2064_vm1, %v2048_v55, %v2051_v24  ;;  %v4771_v5 = vpop.eup %4770 }
 0x2f7   :  { %v2070_v4 = vsel %vm2066_vm3, %v2054_v16, %v2069_v58  ;;  %v6891_v28 = vmul.u32.u64.low %v6838_v34, %v2079_v19  ;;  %v6892_v32 = vmul.u32.u64.high %v6838_v34, %v2079_v19, %v6891_v28  ;;  %vm3615_vm9 = vcmp.eq.s32.totalorder %v6810_v61, 0 }
 0x2f8   :  { %v1796_v8 = vshll.u32 %v6818_v13, %v1794_v57  ;;  %v1797_v52 = vshrl.u32 %v1779_v49, %v1795_v37  ;;  %v1800_v51 = vadd.s32 127, %v1799_v33  ;;  %v1932_v17 = vand.u32 2139095040, %v6841_v10  ;;  %v6909_v13 = vld [vmem:[%s7359_s1 + $0x50] sm:$0xff] }
 0x2f9   :  { %v1619_v9 = vsel %vm1609_vm14, nan, %v1618_v26  ;;  %v3309_v24 = vsel %vm3302_vm15, %v3305_v42, %v3308_v27  ;;  %v6902_v16 = vmul.u32.u64.low %v6838_v34, %v2075_v62  ;;  %v6903_v39 = vmul.u32.u64.high %v6838_v34, %v2075_v62, %v6902_v16  ;;  %v4773_v56 = vpop.eup %4772 }
 0x2fa   :  { %vm1920_vm10 = vcmp.lt.s32.totalorder %v6807_v53, 2  ;;  %v1798_v49 = vor.u32 %v1797_v52, %v1796_v8  ;;  %v1801_v1 = vshll.u32 %v1800_v51, 23  ;;  %v1810_v3 = vsel %vm1725_vm0, %v1809_v14, %v6790_v43 }
 0x2fb   :  { %v2071_v27 = vsel %vm2065_vm7, %v2068_v63, %v2070_v4  ;;  %v1922_v12 = vxor.u32 2147483648, %v4771_v5  ;;  %v1925_v48 = vxor.u32 2147483648, %v4769_v30  ;;  %vm3618_vm11 = vcmp.eq.s32.totalorder %v6810_v61, 2 }
 0x2fc   :  { %v1929_v42 = vand.u32 2147483647, %v6841_v10  ;;  %v3310_v50 = vsel %vm1609_vm14, nan, %v3309_v24  ;;  %vm3614_vm12 = vcmp.lt.s32.totalorder %v6810_v61, 2  ;;  %v1802_v46 = vor.u32 4788187, %v1801_v1 }
 0x2fd   :  { %vm2089_vm13 = vc.u32 %v6892_v32, %v6902_v16  ;;  %v1933_v22 = vshrl.u32 %v1932_v17, 23  ;;  %v2145_v43 = vmul.f32 %v1619_v9, %v6909_v13  ;;  %vm1918_vm15 = vweird.f32 %v6348_v31  ;;  %v47_v31 = vld [vmem:[%s7360_s2 + $0x68] sm:$0xff] }
 0x2fe   :  { %v1812_v36 = vsel %vm6868_vm4, 0, %v1810_v3  ;;  %v2087_v0 = vmul.u32 %v6838_v34, %v2071_v27  ;;  %v2090_v58 = vadd.s32 1, %v6903_v39  ;;  %v1803_v60 = vand.u32 2147483647, %v1802_v46  ;;  %v6964_v27 = vld [vmem:[%s7359_s1 + $0x68] sm:$0xff] }
 0x2ff   :  { %v1805_v38 = vcvt.s32.f32 %v1798_v49  ;;  %v4317_v26 = vadd.s32 4294967169, %v1933_v22  ;;  %v3903_v57 = vmul.f32 %v4773_v56, %v7435_v25  ;;  %v1923_v55 = vsel %vm1921_vm6, %v4769_v30, %v1922_v12 }
 0x300   :  { %v1926_v19 = vsel %vm1924_vm8, %v1925_v48, %v4771_v5  ;;  %v3620_v37 = vsel %vm3618_vm11, %v1925_v48, %v4771_v5  ;;  %v2091_v33 = vsel %vm2089_vm13, %v2090_v58, %v6903_v39  ;;  %vm3904_vm14 = vcmp.eq.f32.partialorder %v7435_v25, inf }
 0x301   :  { %v1806_v14 = vmul.f32 %v1805_v38, %v1803_v60  ;;  %v2092_v34 = vadd.s32 %v2091_v33, %v2087_v0  ;;  %v1939_v62 = vadd.s32 1, %v4317_v26  ;;  %v3617_v63 = vsel %vm3615_vm9, %v4769_v30, %v1922_v12  ;;  %v7439_v26 = vld [vmem:[#allocation7_spill] sm:$0xff] }
 0x302   :  { %v3905_v4 = vsel %vm3904_vm14, %v7435_v25, %v3903_v57  ;;  %vm3906_vm1 = vcmp.eq.f32.partialorder %v7435_v25, 0.0  ;;  %v3907_v28 = vand.u32 2147483648, %v7435_v25  ;;  %vm4007_vm3 = vcmask 523264   ;;  %v44_v25 = vld [vmem:[%s7360_s2 + $0x50] sm:$0xff] }
 0x303   :  { %v1807_v8 = vxor.u32 2147483648, %v1806_v14  ;;  %v2093_v52 = vadd.s32 536870912, %v2092_v34  ;;  %vm1940_vm2 = vcmp.gt.s32.totalorder %v1939_v62, 0  ;;  %v1927_v5 = vsel %vm1920_vm10, %v1923_v55, %v1926_v19 }
 0x304   :  { %v6946_v51 = vand.u32 3, %v1812_v36  ;;  %v1941_v17 = vsel %vm1940_vm2, %v1939_v62, 0  ;;  %v3908_v9 = vsel %vm3906_vm1, %v3907_v28, %v3905_v4  ;;  %v3508_v24 = vadd.s32 3, %v1812_v36 }
 0x305   :  { %v1808_v30 = vsel %vm1725_vm0, %v1807_v8, %v1806_v14  ;;  %v2094_v39 = vshrl.u32 %v2093_v52, 30  ;;  %v1943_v56 = vand.u32 31, %v1941_v17  ;;  %v3621_v49 = vsel %vm3614_vm12, %v3617_v63, %v3620_v37  ;;  %v7440_v14 = vld [vmem:[#allocation8_spill] sm:$0xff] }
 0x306   :  { %v1811_v53 = vsel %vm6868_vm4, %v6502_v23, %v1808_v30  ;;  %v1936_v1 = vand.u32 8388607, %v1929_v42  ;;  %v4011_v3 = vsel %vm4007_vm3, %v3908_v9, 0.0  ;;  %v1928_v12 = vsel %vm1918_vm15, nan, %v1927_v5 }
 0x307   :  { %4774 = vcosq.f32 %v1811_v53  ;;  %v2095_v61 = vshll.u32 %v2094_v39, 30  ;;  %v1944_v48 = vsub.s32 32, %v1943_v56  ;;  %4012 = vadd.xlane.f32.xlu1 %v4011_v3  ;;  %v6970_v54 = vmul.f32 %v6801_v15, %v6801_v15 }
 0x308   :  { %v6974_v46 = vmul.f32 %v6798_v2, %v6798_v2  ;;  %4776 = vsinq.f32 %v1811_v53  ;;  %vm7391_vm0 = vcmp.lt.s32.totalorder %v6643_v45, 0  ;;  %v6977_v22 = vsub.f32 %v2145_v43, %v44_v25 }
 0x309   :  { %v6980_v36 = vmul.f32 %v3310_v50, %v6909_v13  ;;  %v6982_v0 = vand.u32 3, %v3508_v24  ;;  %v6984_v58 = vsub.s32 %v2092_v34, %v2095_v61  ;;  %v2148_v60 = vmul.f32 %v1928_v12, %v6964_v27 }
 0x30a   :  { %v6989_v15 = vsel %vm1918_vm15, nan, %v3621_v49  ;;  %v6993_v2 = vadd.s32 %v6902_v16, %v6892_v32  ;;  %v1937_v38 = vor.u32 8388608, %v1936_v1  ;;  %vm1821_vm4 = vcmp.eq.s32.totalorder %v6946_v51, 2 }
 0x30b   :  { %v2098_v13 = vsub.s32 0, %v6984_v58  ;;  %v2118_v50 = vsub.s32 4, %v2094_v39  ;;  %v1947_v43 = vshrl.u32 %v7410_v29, %v1944_v48  ;;  %4778 = vrsqrt.f32 %v7439_v26 }
 0x30c   :  { %vm1818_vm5 = vcmp.eq.s32.totalorder %v6946_v51, 0  ;;  %v1950_v57 = vshrl.u32 %v7421_v6, %v1944_v48  ;;  %v1953_v32 = vshrl.u32 %v7415_v59, %v1944_v48  ;;  %v1955_v16 = vshll.u32 %v7415_v59, %v1943_v56 }
 0x30d   :  { %v1956_v55 = vshrl.u32 %v7405_v41, %v1944_v48  ;;  %vm1817_vm7 = vcmp.lt.s32.totalorder %v6946_v51, 2  ;;  %vm3514_vm6 = vcmp.eq.s32.totalorder %v6982_v0, 2  ;;  %v4322_v19 = vmin.u32 %v2098_v13, %v6984_v58 }
 0x30e   :  { %v7010_v37 = vshrl.u32 %v1941_v17, 5  ;;  %v1946_v33 = vshll.u32 %v7411_v40, %v1943_v56  ;;  %4780 = vrsqrt.f32 %v7440_v14  ;;  %vm3511_vm8 = vcmp.eq.s32.totalorder %v6982_v0, 0 }
 0x30f   :  { %v1949_v34 = vshll.u32 %v7410_v29, %v1943_v56  ;;  %v1952_v59 = vshll.u32 %v7421_v6, %v1943_v56  ;;  %v1957_v62 = vor.u32 %v1956_v55, %v1955_v16  ;;  %v1959_v63 = vshrl.u32 %v7416_v18, %v1944_v48 }
 0x310   :  { %v7018_v4 = vsub.f32 %v2148_v60, %v47_v31  ;;  %v2100_v28 = vclz %v4322_v19  ;;  %v1948_v8 = vor.u32 %v1947_v43, %v1946_v33  ;;  %v7020_v52 = vshll.u32 %v1937_v38, 8 }
 0x311   :  { %vm1815_vm9 = vweird.f32 %v6502_v23  ;;  %v2119_v5 = vsel %vm7391_vm0, %v2118_v50, %v2094_v39  ;;  %v1951_v17 = vor.u32 %v1950_v57, %v1949_v34  ;;  %v1954_v9 = vor.u32 %v1953_v32, %v1952_v59  ;;  %v4775_v30 = vpop.eup %4774 }
 0x312   :  { %v1958_v29 = vshll.u32 %v7405_v41, %v1943_v56  ;;  %vm3510_vm10 = vcmp.lt.s32.totalorder %v6982_v0, 2  ;;  %v4323_v6 = vadd.s32 4294967294, %v2100_v28  ;;  %v1945_v18 = vshrl.u32 %v7411_v40, %v1944_v48  ;;  %v4777_v24 = vpop.eup %4776 }
 0x313   :  { %vm1961_vm11 = vcmp.lt.s32.totalorder %v7010_v37, 1  ;;  %vm1964_vm12 = vcmp.lt.s32.totalorder %v7010_v37, 4  ;;  %v1822_v25 = vxor.u32 2147483648, %v4775_v30  ;;  %vm7032_vm13 = vcmp.le.f32.partialorder %v2032_v21, 0.7853982 }
 0x314   :  { %v1960_v49 = vor.u32 %v1959_v63, %v1958_v29  ;;  %vm1962_vm15 = vcmp.lt.s32.totalorder %v7010_v37, 2  ;;  %v1970_v41 = vsel %vm1964_vm12, %v1957_v62, 920167782  ;;  %v1819_v56 = vxor.u32 2147483648, %v4777_v24  ;;  %v30_v63 = vld [vmem:[%s7359_s1 + $0x60] sm:$0xff] }
 0x315   :  { %vm4324_vm14 = vcmp.lt.s32.totalorder %v4323_v6, 0  ;;  %vm1963_vm1 = vcmp.lt.s32.totalorder %v7010_v37, 3  ;;  %v1965_v40 = vsel %vm1961_vm11, %v1945_v18, %v1948_v8  ;;  %vm3897_vm2 = vcmp.eq.f32.partialorder %v7439_v26, inf  ;;  %v4779_v12 = vpop.eup %4778 }
 0x316   :  { %v1823_v21 = vsel %vm1821_vm4, %v1822_v25, %v4777_v24  ;;  %v2103_v53 = vsel %vm4324_vm14, 0, %v4323_v6  ;;  %v1966_v1 = vsel %vm1964_vm12, %v1954_v9, 2102212464  ;;  %v1969_v3 = vsel %vm1961_vm11, %v1948_v8, %v1951_v17 }
 0x317   :  { %vm3899_vm0 = vcmp.eq.f32.partialorder %v7439_v26, 0.0  ;;  %v1820_v61 = vsel %vm1818_vm5, %v4775_v30, %v1819_v56  ;;  %v2104_v48 = vsub.s32 32, %v2103_v53  ;;  %v1971_v60 = vsel %vm1963_vm1, %v1954_v9, %v1970_v41 }
 0x318   :  { %v1973_v38 = vsel %vm1961_vm11, %v1951_v17, %v1954_v9  ;;  %v1824_v13 = vsel %vm1817_vm7, %v1820_v61, %v1823_v21  ;;  %v3516_v50 = vsel %vm3514_vm6, %v1822_v25, %v4777_v24  ;;  %v2108_v43 = vsub.s32 4294967266, %v2103_v53  ;;  %v4781_v57 = vpop.eup %4780 }
 0x319   :  { %v1974_v31 = vsel %vm1964_vm12, %v1960_v49, 1326507024  ;;  %v3513_v32 = vsel %vm3511_vm8, %v4775_v30, %v1819_v56  ;;  %v2105_v16 = vshll.u32 %v6984_v58, %v2103_v53  ;;  %v2106_v55 = vshrl.u32 %v6993_v2, %v2104_v48  ;;  %v46_v56 = vld [vmem:[%s7360_s2 + $0x60] sm:$0xff] }
 0x31a   :  { %v1975_v19 = vsel %vm1963_vm1, %v1957_v62, %v1974_v31  ;;  %v2109_v51 = vadd.s32 127, %v2108_v43  ;;  %v1967_v33 = vsel %vm1963_vm1, %v1951_v17, %v1966_v1  ;;  %v1972_v34 = vsel %vm1962_vm15, %v1969_v3, %v1971_v60 }
 0x31b   :  { %v1976_v59 = vsel %vm1962_vm15, %v1973_v38, %v1975_v19  ;;  %v1825_v58 = vsel %vm1815_vm9, nan, %v1824_v13  ;;  %v2107_v2 = vor.u32 %v2106_v55, %v2105_v16  ;;  %v3517_v8 = vsel %vm3510_vm10, %v3513_v32, %v3516_v50  ;;  %v7444_v55 = vld [vmem:[#allocation9_spill] sm:$0xff] }
 0x31c   :  { %v7080_v62 = vmul.u32.u64.low %v7020_v52, %v1976_v59  ;;  %v7081_v28 = vmul.u32.u64.high %v7020_v52, %v1976_v59, %v7080_v62  ;;  %v2110_v17 = vshll.u32 %v2109_v51, 23  ;;  %v3896_v9 = vmul.f32 %v4779_v12, %v7439_v26 }
 0x31d   :  { %v3900_v29 = vand.u32 2147483648, %v7439_v26  ;;  %v2121_v30 = vsel %vm7032_vm13, 0, %v2119_v5  ;;  %v7090_v6 = vmul.u32.u64.low %v7020_v52, %v1972_v34  ;;  %v7091_v18 = vmul.u32.u64.high %v7020_v52, %v1972_v34, %v7090_v6 }
 0x31e   :  { %v3917_v24 = vmul.f32 %v4781_v57, %v7440_v14  ;;  %v2147_v25 = vmul.f32 %v1825_v58, %v30_v63  ;;  %v2111_v49 = vor.u32 4788187, %v2110_v17  ;;  %v1968_v0 = vsel %vm1962_vm15, %v1965_v40, %v1967_v33 }
 0x31f   :  { %v3898_v41 = vsel %vm3897_vm2, %v7439_v26, %v3896_v9  ;;  %v3518_v5 = vsel %vm1815_vm9, nan, %v3517_v8  ;;  %v2114_v21 = vcvt.s32.f32 %v2107_v2  ;;  %vm3918_vm4 = vcmp.eq.f32.partialorder %v7440_v14, inf }
 0x320   :  { %v3901_v53 = vsel %vm3899_vm0, %v3900_v29, %v3898_v41  ;;  %v2112_v1 = vand.u32 2147483647, %v2111_v49  ;;  %vm1986_vm5 = vc.u32 %v7081_v28, %v7090_v6  ;;  %v3919_v40 = vsel %vm3918_vm4, %v7440_v14, %v3917_v24 }
 0x321   :  { %v4008_v37 = vsel %vm4007_vm3, %v3901_v53, 0.0  ;;  %v1984_v3 = vmul.u32 %v7020_v52, %v1968_v0  ;;  %v1987_v12 = vadd.s32 1, %v7091_v18  ;;  %v3921_v23 = vand.u32 2147483648, %v7440_v14 }
 0x322   :  { %4009 = vadd.xlane.f32.xlu0 %v4008_v37  ;;  %4782 = vrsqrt.f32 %v6169_v7  ;;  %v2163_v26 = vsub.f32 %v2147_v25, %v46_v56  ;;  %v2115_v61 = vmul.f32 %v2114_v21, %v2112_v1  ;;  %vm3920_vm0 = vcmp.eq.f32.partialorder %v7440_v14, 0.0 }
 0x323   :  { %4784 = vrsqrt.f32 %v6145_v20  ;;  %v3844_v48 = vmul.f32 %v6989_v15, %v6964_v27  ;;  %v3820_v60 = vadd.s32 3, %v2121_v30  ;;  %v1988_v38 = vsel %vm1986_vm5, %v1987_v12, %v7091_v18 }
 0x324   :  { %v3922_v52 = vsel %vm3920_vm0, %v3921_v23, %v3919_v40  ;;  %v3843_v13 = vmul.f32 %v3518_v5, %v30_v63  ;;  %v2116_v50 = vxor.u32 2147483648, %v2115_v61  ;;  %v1989_v43 = vadd.s32 %v1988_v38, %v1984_v3 }
 0x325   :  { %v4017_v31 = vsel %vm4007_vm3, %v3922_v52, 0.0  ;;  %v3857_v57 = vmul.f32 %v6977_v22, %v6977_v22  ;;  %v3873_v14 = vmul.f32 %v6980_v36, %v6980_v36  ;;  %v3860_v32 = vmul.f32 %v7018_v4, %v7018_v4 }
 0x326   :  { %4018 = vadd.xlane.f32.xlu0 %v4017_v31  ;;  %4786 = vrsqrt.f32 %v6788_v44  ;;  %v3859_v27 = vmul.f32 %v2163_v26, %v2163_v26  ;;  %vm7443_vm7 = vcmp.lt.s32.totalorder %v6643_v45, 0  ;;  %v1990_v16 = vadd.s32 536870912, %v1989_v43 }
 0x327   :  { %v2117_v15 = vsel %vm7443_vm7, %v2116_v50, %v2115_v61  ;;  %4788 = vrsqrt.f32 %v7444_v55  ;;  %v3876_v19 = vmul.f32 %v3844_v48, %v3844_v48  ;;  %v7133_v51 = vand.u32 3, %v2121_v30 }
 0x328   :  { %v2120_v22 = vsel %vm7032_vm13, %v6643_v45, %v2117_v15  ;;  %4790 = vrsqrt.f32 %v6796_v35  ;;  %v3875_v36 = vmul.f32 %v3843_v13, %v3843_v13  ;;  %v7136_v4 = vand.u32 3, %v3820_v60 }
 0x329   :  { %4792 = vcosq.f32 %v2120_v22  ;;  %v7138_v33 = vshrl.u32 %v1990_v16, 30  ;;  %v7142_v34 = vadd.f32 %v6974_v46, %v6970_v54  ;;  %v7144_v59 = vadd.f32 %v3873_v14, %v3857_v57  ;;  %v33_v14 = vld [vmem:[%s7359_s1 + $0x78] sm:$0xff] }
 0x32a   :  { %v7146_v63 = vadd.f32 %v3876_v19, %v3860_v32  ;;  %4794 = vsinq.f32 %v2120_v22  ;;  %v7148_v39 = vadd.f32 %v3875_v36, %v3859_v27  ;;  %v7151_v58 = vadd.s32 %v7090_v6, %v7081_v28  ;;  %v49_v36 = vld [vmem:[%s7360_s2 + $0x78] sm:$0xff] }
 0x32b   :  { %v1992_v2 = vshll.u32 %v7138_v33, 30  ;;  %vm3925_vm6 = vcmp.eq.f32.partialorder %v6169_v7, inf  ;;  %vm3927_vm8 = vcmp.eq.f32.partialorder %v6169_v7, 0.0  ;;  %v3928_v54 = vand.u32 2147483648, %v6169_v7 }
 0x32c   :  { %v4783_v62 = vpop.eup %4782  ;;  %vm3911_vm9 = vcmp.eq.f32.partialorder %v6145_v20, inf  ;;  %vm3913_vm10 = vcmp.eq.f32.partialorder %v6145_v20, 0.0  ;;  %vm2130_vm11 = vcmp.eq.s32.totalorder %v7133_v51, 2  ;;  %vm3826_vm12 = vcmp.eq.s32.totalorder %v7136_v4, 2 }
 0x32d   :  { %v4785_v46 = vpop.eup %4784  ;;  %v7161_v28 = vsub.s32 %v1989_v43, %v1992_v2  ;;  %v3924_v8 = vmul.f32 %v4783_v62, %v6169_v7  ;;  %v3914_v17 = vand.u32 2147483648, %v6145_v20  ;;  %4796 = vrsqrt.f32 %v6784_v11 }
 0x32e   :  { %vm2127_vm13 = vcmp.eq.s32.totalorder %v7133_v51, 0  ;;  %vm3823_vm15 = vcmp.eq.s32.totalorder %v7136_v4, 0  ;;  %v3910_v9 = vmul.f32 %v4785_v46, %v6145_v20  ;;  %vm3939_vm14 = vcmp.eq.f32.partialorder %v6788_v44, inf }
 0x32f   :  { %vm3941_vm1 = vcmp.eq.f32.partialorder %v6788_v44, 0.0  ;;  %4798 = vrsqrt.f32 %v7144_v59  ;;  %vm2126_vm2 = vcmp.lt.s32.totalorder %v7133_v51, 2  ;;  %vm3822_vm4 = vcmp.lt.s32.totalorder %v7136_v4, 2 }
 0x330   :  { %v1995_v29 = vsub.s32 0, %v7161_v28  ;;  %v3926_v30 = vsel %vm3925_vm6, %v6169_v7, %v3924_v8  ;;  %v3942_v6 = vand.u32 2147483648, %v6788_v44  ;;  %vm3932_vm5 = vcmp.eq.f32.partialorder %v7444_v55, inf  ;;  %v4787_v18 = vpop.eup %4786 }
 0x331   :  { %vm2124_vm0 = vweird.f32 %v6643_v45  ;;  %v3929_v24 = vsel %vm3927_vm8, %v3928_v54, %v3926_v30  ;;  %v3912_v25 = vsel %vm3911_vm9, %v6145_v20, %v3910_v9  ;;  %vm3934_vm7 = vcmp.eq.f32.partialorder %v7444_v55, 0.0  ;;  %v4789_v49 = vpop.eup %4788 }
 0x332   :  { %4800 = vrsqrt.f32 %v6794_v47  ;;  %v4318_v0 = vmin.u32 %v1995_v29, %v7161_v28  ;;  %v3935_v41 = vand.u32 2147483648, %v7444_v55  ;;  %v3956_v56 = vand.u32 2147483648, %v6796_v35  ;;  %v4791_v5 = vpop.eup %4790 }
 0x333   :  { %v4020_v7 = vsel %vm4007_vm3, %v3929_v24, 0.0  ;;  %v3915_v21 = vsel %vm3913_vm10, %v3914_v17, %v3912_v25  ;;  %v3938_v53 = vmul.f32 %v4787_v18, %v6788_v44  ;;  %v3949_v1 = vand.u32 2147483648, %v6784_v11  ;;  %v4793_v37 = vpop.eup %4792 }
 0x334   :  { %v1997_v40 = vclz %v4318_v0  ;;  %4021 = vadd.xlane.f32.xlu1 %v4020_v7  ;;  %v4014_v3 = vsel %vm4007_vm3, %v3915_v21, 0.0  ;;  %v3931_v12 = vmul.f32 %v4789_v49, %v7444_v55  ;;  %4802 = vrsqrt.f32 %v7148_v39  ;;  %v4795_v23 = vpop.eup %4794 }
 0x335   :  { %v2131_v26 = vxor.u32 2147483648, %v4793_v37  ;;  %4015 = vadd.xlane.f32.xlu0 %v4014_v3  ;;  %v3952_v20 = vmul.f32 %v4791_v5, %v6796_v35  ;;  %vm3946_vm9 = vcmp.eq.f32.partialorder %v6784_v11, inf  ;;  %vm3967_vm10 = vcmp.eq.f32.partialorder %v7144_v59, inf }
 0x336   :  { %v3970_v61 = vand.u32 2147483648, %v7144_v59  ;;  %v2128_v48 = vxor.u32 2147483648, %v4795_v23  ;;  %v4319_v60 = vadd.s32 4294967294, %v1997_v40  ;;  %v3940_v38 = vsel %vm3939_vm14, %v6788_v44, %v3938_v53 }
 0x337   :  { %v3933_v52 = vsel %vm3932_vm5, %v7444_v55, %v3931_v12  ;;  %vm3948_vm8 = vcmp.eq.f32.partialorder %v6784_v11, 0.0  ;;  %vm3969_vm6 = vcmp.eq.f32.partialorder %v7144_v59, 0.0  ;;  %v2132_v13 = vsel %vm2130_vm11, %v2131_v26, %v4795_v23  ;;  %v4797_v57 = vpop.eup %4796 }
 0x338   :  { %v3828_v50 = vsel %vm3826_vm12, %v2131_v26, %v4795_v23  ;;  %v3943_v43 = vsel %vm3941_vm1, %v3942_v6, %v3940_v38  ;;  %v3936_v31 = vsel %vm3934_vm7, %v3935_v41, %v3933_v52  ;;  %vm3960_vm14 = vcmp.eq.f32.partialorder %v6794_v47, inf }
 0x339   :  { %v2129_v32 = vsel %vm2127_vm13, %v4793_v37, %v2128_v48  ;;  %v3825_v27 = vsel %vm3823_vm15, %v4793_v37, %v2128_v48  ;;  %vm4320_vm11 = vcmp.lt.s32.totalorder %v4319_v60, 0  ;;  %v4026_v44 = vsel %vm4007_vm3, %v3943_v43, 0.0  ;;  %v4799_v15 = vpop.eup %4798 }
 0x33a   :  { %vm3962_vm12 = vcmp.eq.f32.partialorder %v6794_v47, 0.0  ;;  %v2133_v16 = vsel %vm2126_vm2, %v2129_v32, %v2132_v13  ;;  %v3829_v55 = vsel %vm3822_vm4, %v3825_v27, %v3828_v50  ;;  %v2000_v19 = vsel %vm4320_vm11, 0, %v4319_v60  ;;  %4027 = vadd.xlane.f32.xlu1 %v4026_v44 }
 0x33b   :  { %v4023_v22 = vsel %vm4007_vm3, %v3936_v31, 0.0  ;;  %v2134_v2 = vsel %vm2124_vm0, nan, %v2133_v16  ;;  %v3830_v62 = vsel %vm2124_vm0, nan, %v3829_v55  ;;  %v2001_v54 = vsub.s32 32, %v2000_v19 }
 0x33c   :  { %v2002_v51 = vshll.u32 %v7161_v28, %v2000_v19  ;;  %4024 = vadd.xlane.f32.xlu0 %v4023_v22  ;;  %v4801_v4 = vpop.eup %4800  ;;  %v2150_v46 = vmul.f32 %v2134_v2, %v33_v14  ;;  %v3846_v8 = vmul.f32 %v3830_v62, %v33_v14  ;;  %v2005_v17 = vsub.s32 4294967266, %v2000_v19 }
 0x33d   :  { %vm7445_vm13 = vcmp.eq.f32.partialorder %v6796_v35, inf  ;;  %v2003_v29 = vshrl.u32 %v7151_v58, %v2001_v54  ;;  %vm7446_vm15 = vcmp.eq.f32.partialorder %v6796_v35, 0.0  ;;  %v3945_v45 = vmul.f32 %v4797_v57, %v6784_v11 }
 0x33e   :  { %v3954_v9 = vsel %vm7445_vm13, %v6796_v35, %v3952_v20  ;;  %v3966_v6 = vmul.f32 %v4799_v15, %v7144_v59  ;;  %v2166_v18 = vsub.f32 %v2150_v46, %v49_v36  ;;  %v2006_v28 = vadd.s32 127, %v2005_v17  ;;  %v4803_v49 = vpop.eup %4802 }
 0x33f   :  { %v3957_v30 = vsel %vm7446_vm15, %v3956_v56, %v3954_v9  ;;  %v3963_v25 = vand.u32 2147483648, %v6794_v47  ;;  %v2004_v0 = vor.u32 %v2003_v29, %v2002_v51  ;;  %v3947_v58 = vsel %vm3946_vm9, %v6784_v11, %v3945_v45  ;;  %v32_v45 = vld [vmem:[%s7359_s1 + $0x70] sm:$0xff]  ;;  %s4848_s1 = smov [#allocation2]  }
 0x340   :  { %v4032_v24 = vsel %vm4007_vm3, %v3957_v30, 0.0  ;;  %v3968_v35 = vsel %vm3967_vm10, %v7144_v59, %v3966_v6  ;;  %v3959_v41 = vmul.f32 %v4801_v4, %v6794_v47  ;;  %v3862_v56 = vmul.f32 %v2166_v18, %v2166_v18 }
 0x341   :  { %4033 = vadd.xlane.f32.xlu1 %v4032_v24  ;;  %v2007_v5 = vshll.u32 %v2006_v28, 23  ;;  %v3950_v7 = vsel %vm3948_vm8, %v3949_v1, %v3947_v58  ;;  %v3971_v21 = vsel %vm3969_vm6, %v3970_v61, %v3968_v35  ;;  %v3878_v53 = vmul.f32 %v3846_v8, %v3846_v8 }
 0x342   :  { %v4029_v37 = vsel %vm4007_vm3, %v3950_v7, 0.0  ;;  %v4038_v40 = vsel %vm4007_vm3, %v3971_v21, 0.0  ;;  %v3961_v3 = vsel %vm3960_vm14, %v6794_v47, %v3959_v41  ;;  %v3980_v11 = vmul.f32 %v4803_v49, %v7148_v39  ;;  %v48_v49 = vld [vmem:[%s7360_s2 + $0x70] sm:$0xff]  ;;  %s4205_s2 = sshll.u32 %s4848_s1, 4  ;;  %s4206_s2 = int_to_ptr.vmem [resolvable:$true] %s4205_s2 }
 0x343   :  { %v2008_v12 = vor.u32 4788187, %v2007_v5  ;;  %4030 = vadd.xlane.f32.xlu0 %v4029_v37  ;;  %v3964_v23 = vsel %vm3962_vm12, %v3963_v25, %v3961_v3  ;;  %v3894_v1 = vadd.f32 %v3878_v53, %v3862_v56  ;;  %v2011_v26 = vcvt.s32.f32 %v2004_v0  ;;  %s4816_s13 = scalar_lea.vmem %s4206_s2, 16  ;;  %s4820_s14 = scalar_lea.vmem %s4206_s2, 32 }
 0x344   :  { %vm3981_vm1 = vcmp.eq.f32.partialorder %v7148_v39, inf  ;;  %v3984_v59 = vand.u32 2147483648, %v7148_v39  ;;  %vm3983_vm2 = vcmp.eq.f32.partialorder %v7148_v39, 0.0  ;;  %4804 = vrsqrt.f32 %v7142_v34  ;;  %p4817_p0 = scmp.ne.s32.totalorder %s4206_s2, %s4816_s13  ;;  %p4821_p1 = scmp.lt.s32.totalorder %s4206_s2, %s4206_s2 }
 0x345   :  { %4039 = vadd.xlane.f32.xlu1 %v4038_v40  ;;  %v2009_v20 = vand.u32 2147483647, %v2008_v12  ;;  %v3982_v61 = vsel %vm3981_vm1, %v7148_v39, %v3980_v11  ;;  %v4035_v48 = vsel %vm4007_vm3, %v3964_v23, 0.0  ;;  %4806 = vrsqrt.f32 %v7146_v63  ;;  %p4822_p2 = scmp.lt.s32.totalorder %s4820_s14, %s4816_s13 }
 0x346   :  { %v3985_v47 = vsel %vm3983_vm2, %v3984_v59, %v3982_v61  ;;  %v2015_v38 = vsub.s32 4, %v7138_v33  ;;  %4808 = vrsqrt.f32 %v3894_v1  ;;  %vm1931_vm4 = vcmp.lt.s32.totalorder %v6841_v10, 0  ;;  %v7448_v61 = vld [vmem:[#allocation5_spill] sm:$0xff] }
 0x347   :  { %v2012_v60 = vmul.f32 %v2011_v26, %v2009_v20  ;;  %4036 = vadd.xlane.f32.xlu0 %v4035_v48  ;;  %v4044_v52 = vsel %vm4007_vm3, %v3985_v47, 0.0  ;;  %vm1930_vm5 = vcmp.le.f32.partialorder %v1929_v42, 0.7853982  ;;  %vm3974_vm0 = vcmp.eq.f32.partialorder %v7142_v34, inf  ;;  %p4823_p3 = por %p4822_p2, %p4821_p1 }
 0x348   :  { %v2016_v50 = vsel %vm1931_vm4, %v2015_v38, %v7138_v33  ;;  %v3977_v44 = vand.u32 2147483648, %v7142_v34  ;;  %vm3976_vm7 = vcmp.eq.f32.partialorder %v7142_v34, 0.0  ;;  %vm3988_vm6 = vcmp.eq.f32.partialorder %v7146_v63, inf }
 0x349   :  { %4045 = vadd.xlane.f32.xlu1 %v4044_v52  ;;  %v2013_v13 = vxor.u32 2147483648, %v2012_v60  ;;  %v2018_v31 = vsel %vm1930_vm5, 0, %v2016_v50  ;;  %v3991_v19 = vand.u32 2147483648, %v7146_v63  ;;  %vm3990_vm8 = vcmp.eq.f32.partialorder %v7146_v63, 0.0  ;;  %p4824_p4 = pnand %p4823_p3, %p4817_p0 }
 0x34a   :  { %v3716_v27 = vadd.s32 3, %v2018_v31  ;;  %v2022_v2 = vand.u32 3, %v2018_v31  ;;  %vm4002_vm9 = vcmp.eq.f32.partialorder %v3894_v1, inf  ;;  %vm4004_vm10 = vcmp.eq.f32.partialorder %v3894_v1, 0.0 }
 0x34b   :  { %v2014_v39 = vsel %vm1931_vm4, %v2013_v13, %v2012_v60  ;;  %vm2021_vm2 = vweird.f32 %v6841_v10  ;;  %v7447_v59 = vlaneseq  ;;  %v4092_v48 = vadd.s32 4294967288, %v7448_v61 }
 0x34c   :  { %v2017_v43 = vsel %vm1930_vm5, %v6841_v10, %v2014_v39  ;;  %v3717_v62 = vand.u32 3, %v3716_v27  ;;  %vm2027_vm14 = vcmp.eq.s32.totalorder %v2022_v2, 2  ;;  %vm2024_vm12 = vcmp.eq.s32.totalorder %v2022_v2, 0 }
 0x34d   :  { %4810 = vcosq.f32 %v2017_v43  ;;  %vm2023_vm15 = vcmp.lt.s32.totalorder %v2022_v2, 2  ;;  %v7311_v20 = vshrl.u32 %v7447_v59, 7  ;;  %v4099_v47 = vadd.s32 4294967280, %v7448_v61 }
 0x34e   :  { %4812 = vsinq.f32 %v2017_v43  ;;  %v4805_v57 = vpop.eup %4804  ;;  %vm3722_vm11 = vcmp.eq.s32.totalorder %v3717_v62, 2  ;;  %vm3719_vm13 = vcmp.eq.s32.totalorder %v3717_v62, 0  ;;  %vm3718_vm1 = vcmp.lt.s32.totalorder %v3717_v62, 2 }
 0x34f   :  { %v4807_v14 = vpop.eup %4806  ;;  %v3973_v32 = vmul.f32 %v4805_v57, %v7142_v34  ;;  %v4095_v52 = vsub.s32 %v4092_v48, %v7311_v20  ;;  %v4090_v39 = vsub.s32 %v7448_v61, %v7311_v20  ;;  %v4102_v43 = vsub.s32 %v4099_v47, %v7311_v20 }
 0x350   :  { %v3987_v15 = vmul.f32 %v4807_v14, %v7146_v63  ;;  %v4809_v42 = vpop.eup %4808  ;;  %v4106_v57 = vadd.s32 4294967272, %v7448_v61  ;;  %v4127_v62 = vadd.s32 4294967248, %v7448_v61 }
 0x351   :  { %v3975_v16 = vsel %vm3974_vm0, %v7142_v34, %v3973_v32  ;;  %v4001_v22 = vmul.f32 %v4809_v42, %v3894_v1  ;;  %v4005_v34 = vand.u32 2147483648, %v3894_v1  ;;  %vm4104_vm0 = vcmask 195712  }
 0x352   :  { %v3978_v33 = vsel %vm3976_vm7, %v3977_v44, %v3975_v16  ;;  %v3989_v55 = vsel %vm3988_vm6, %v7146_v63, %v3987_v15  ;;  %v4113_v44 = vadd.s32 4294967264, %v7448_v61  ;;  %v4109_v16 = vsub.s32 %v4106_v57, %v7311_v20 }
 0x353   :  { %v4041_v36 = vsel %vm4007_vm3, %v3978_v33, 0.0  ;;  %v3992_v54 = vsel %vm3990_vm8, %v3991_v19, %v3989_v55  ;;  %v4003_v51 = vsel %vm4002_vm9, %v3894_v1, %v4001_v22  ;;  %v4120_v55 = vadd.s32 4294967256, %v7448_v61 }
 0x354   :  { %4042 = vadd.xlane.f32.xlu0 %v4041_v36  ;;  %v4047_v17 = vsel %vm4007_vm3, %v3992_v54, 0.0  ;;  %v4006_v29 = vsel %vm4004_vm10, %v4005_v34, %v4003_v51  ;;  %v4116_v22 = vsub.s32 %v4113_v44, %v7311_v20  ;;  %vm4111_vm7 = vcmask 261312  }
 0x355   :  { %v4053_v25 = vsel %vm4007_vm3, %v4006_v29, 0.0  ;;  %vm4118_vm6 = vcmask 326912   ;;  %vm4125_vm8 = vcmask 392512   ;;  %vm4132_vm9 = vcmask 458112  }
 0x356   :  { %vm4139_vm10 = vcmask 523712   ;;  %v4190_v57 = vadd.s32 4294967176, %v7448_v61 }
 0x357   :  { %v4811_v4 = vpop.eup %4810 }
 0x358   :  { %v4813_v46 = vpop.eup %4812  ;;  %v2028_v8 = vxor.u32 2147483648, %v4811_v4  ;;  %4048 = vadd.xlane.f32.xlu0 %v4047_v17 }
 0x359   :  { %v2025_v9 = vxor.u32 2147483648, %v4813_v46 }
 0x35a   :  { %v2029_v63 = vsel %vm2027_vm14, %v2028_v8, %v4813_v46  ;;  %v3724_v30 = vsel %vm3722_vm11, %v2028_v8, %v4813_v46  ;;  %v4134_v8 = vadd.s32 4294967240, %v7448_v61  ;;  %vm4146_vm14 = vcmask 589312  }
 0x35b   :  { %v2026_v6 = vsel %vm2024_vm12, %v4811_v4, %v2025_v9  ;;  %v3721_v18 = vsel %vm3719_vm13, %v4811_v4, %v2025_v9  ;;  %v4123_v4 = vsub.s32 %v4120_v55, %v7311_v20  ;;  %v4141_v9 = vadd.s32 4294967232, %v7448_v61 }
 0x35c   :  { %v2030_v28 = vsel %vm2023_vm15, %v2026_v6, %v2029_v63  ;;  %v3725_v24 = vsel %vm3718_vm1, %v3721_v18, %v3724_v30  ;;  %4054 = vadd.xlane.f32.xlu0 %v4053_v25  ;;  %v4130_v63 = vsub.s32 %v4127_v62, %v7311_v20  ;;  %v4137_v18 = vsub.s32 %v4134_v8, %v7311_v20 }
 0x35d   :  { %v2031_v0 = vsel %vm2021_vm2, nan, %v2030_v28  ;;  %v3726_v58 = vsel %vm2021_vm2, nan, %v3725_v24  ;;  %vm4153_vm11 = vcmask 654912   ;;  %vm4160_vm12 = vcmask 720512  }
 0x35e   :  { %v2149_v35 = vmul.f32 %v2031_v0, %v32_v45  ;;  %v3845_v41 = vmul.f32 %v3726_v58, %v32_v45  ;;  %v4148_v45 = vadd.s32 4294967224, %v7448_v61  ;;  %v4155_v0 = vadd.s32 4294967216, %v7448_v61 }
 0x35f   :  { %vm4167_vm13 = vcmask 786112   ;;  %vm4174_vm15 = vcmask 851712   ;;  %vm4181_vm1 = vcmask 917312   ;;  %vm4188_vm2 = vcmask 982912  }
 0x360   :  { %v2165_v56 = vsub.f32 %v2149_v35, %v48_v49  ;;  %v3877_v7 = vmul.f32 %v3845_v41, %v3845_v41  ;;  %v4144_v49 = vsub.s32 %v4141_v9, %v7311_v20 }
 0x362   :  { %v3861_v5 = vmul.f32 %v2165_v56, %v2165_v56  ;;  %v4151_v56 = vsub.s32 %v4148_v45, %v7311_v20 }
 0x364   :  { %v3893_v21 = vadd.f32 %v3877_v7, %v3861_v5 }
 0x366   :  { %4814 = vrsqrt.f32 %v3893_v21  ;;  %vm3995_vm4 = vcmp.eq.f32.partialorder %v3893_v21, inf  ;;  %v3998_v37 = vand.u32 2147483648, %v3893_v21  ;;  %vm3997_vm5 = vcmp.eq.f32.partialorder %v3893_v21, 0.0 }
 0x370   :  { %v4815_v53 = vpop.eup %4814 }
 0x371   :  { %v3994_v10 = vmul.f32 %v4815_v53, %v3893_v21  ;;  %v4162_v53 = vadd.s32 4294967208, %v7448_v61 }
 0x373   :  { %v3996_v40 = vsel %vm3995_vm4, %v3893_v21, %v3994_v10  ;;  %v4158_v10 = vsub.s32 %v4155_v0, %v7311_v20  ;;  %v4165_v48 = vsub.s32 %v4162_v53, %v7311_v20  ;;  %vm4195_vm4 = vcmask 1048512  }
 0x374   :  { %v3999_v3 = vsel %vm3997_vm5, %v3998_v37, %v3996_v40  ;;  %v4169_v37 = vadd.s32 4294967200, %v7448_v61 }
 0x375   :  { %v4050_v12 = vsel %vm4007_vm3, %v3999_v3, 0.0  ;;  %vm4097_vm3 = vcmask 130112  }
 0x376   :  { %4051 = vadd.xlane.f32.xlu1 %v4050_v12 }
 0x394   :  { %v4013_v26 = vpop.xlane.xlu1 %4012 }
 0x395   :  { %v4057_v13 = vsub.f32 0.0, %v4013_v26 }
 0x397   :  { %v4096_v32 = vrot.slane %v4057_v13, %v4095_v52 }
 0x3af   :  { %v4010_v23 = vpop.xlane.xlu0 %4009 }
 0x3b0   :  { %v4056_v50 = vsub.f32 0.0, %v4010_v23  ;;  %v4176_v23 = vadd.s32 4294967192, %v7448_v61 }
 0x3b2   :  { %v4091_v27 = vrot.slane %v4056_v50, %v4090_v39  ;;  %v4179_v39 = vsub.s32 %v4176_v23, %v7311_v20 }
 0x3b3   :  { %v4019_v11 = vpop.xlane.xlu0 %4018 }
 0x3b4   :  { %v4059_v33 = vsub.f32 0.0, %v4019_v11  ;;  %v4098_v19 = vsel %vm4097_vm3, %v4096_v32, %v4091_v27 }
 0x3b6   :  { %v4110_v51 = vrot.slane %v4059_v33, %v4109_v16  ;;  %v4193_v16 = vsub.s32 %v4190_v57, %v7311_v20 }
 0x3c1   :  { %v4022_v38 = vpop.xlane.xlu1 %4021 }
 0x3c2   :  { %v4016_v1 = vpop.xlane.xlu0 %4015  ;;  %v4060_v36 = vsub.f32 0.0, %v4022_v38 }
 0x3c3   :  { %v4058_v31 = vsub.f32 0.0, %v4016_v1 }
 0x3c4   :  { %v4117_v29 = vrot.slane %v4060_v36, %v4116_v22 }
 0x3c5   :  { %v4103_v42 = vrot.slane %v4058_v31, %v4102_v43 }
 0x3c7   :  { %v4028_v15 = vpop.xlane.xlu1 %4027  ;;  %v4105_v2 = vsel %vm4104_vm0, %v4103_v42, %v4098_v19 }
 0x3c8   :  { %v4112_v17 = vsel %vm4111_vm7, %v4110_v51, %v4105_v2  ;;  %v4062_v30 = vsub.f32 0.0, %v4028_v15 }
 0x3c9   :  { %v4025_v60 = vpop.xlane.xlu0 %4024  ;;  %v4119_v24 = vsel %vm4118_vm6, %v4117_v29, %v4112_v17 }
 0x3ca   :  { %v4061_v34 = vsub.f32 0.0, %v4025_v60  ;;  %v4131_v35 = vrot.slane %v4062_v30, %v4130_v63  ;;  %v4172_v60 = vsub.s32 %v4169_v37, %v7311_v20 }
 0x3cc   :  { %v4124_v6 = vrot.slane %v4061_v34, %v4123_v4 }
 0x3ce   :  { %v4034_v46 = vpop.xlane.xlu1 %4033  ;;  %v4126_v5 = vsel %vm4125_vm8, %v4124_v6, %v4119_v24 }
 0x3cf   :  { %v4064_v41 = vsub.f32 0.0, %v4034_v46  ;;  %v4133_v3 = vsel %vm4132_vm9, %v4131_v35, %v4126_v5 }
 0x3d0   :  { %v4031_v14 = vpop.xlane.xlu0 %4030 }
 0x3d1   :  { %v4063_v28 = vsub.f32 0.0, %v4031_v14  ;;  %v4145_v40 = vrot.slane %v4064_v41, %v4144_v49  ;;  %v4183_v14 = vadd.s32 4294967184, %v7448_v61 }
 0x3d2   :  { %v4040_v58 = vpop.xlane.xlu1 %4039 }
 0x3d3   :  { %v4138_v7 = vrot.slane %v4063_v28, %v4137_v18  ;;  %v4066_v12 = vsub.f32 0.0, %v4040_v58  ;;  %v4186_v55 = vsub.s32 %v4183_v14, %v7311_v20 }
 0x3d4   :  { %v4037_v54 = vpop.xlane.xlu0 %4036 }
 0x3d5   :  { %v4065_v21 = vsub.f32 0.0, %v4037_v54  ;;  %v4140_v1 = vsel %vm4139_vm10, %v4138_v7, %v4133_v3  ;;  %v4159_v38 = vrot.slane %v4066_v12, %v4158_v10 }
 0x3d6   :  { %v4046_v59 = vpop.xlane.xlu1 %4045  ;;  %v4147_v52 = vsel %vm4146_vm14, %v4145_v40, %v4140_v1 }
 0x3d7   :  { %v4152_v26 = vrot.slane %v4065_v21, %v4151_v56  ;;  %v4068_v13 = vsub.f32 0.0, %v4046_v59 }
 0x3d9   :  { %v4154_v50 = vsel %vm4153_vm11, %v4152_v26, %v4147_v52  ;;  %v4173_v27 = vrot.slane %v4068_v13, %v4172_v60 }
 0x3da   :  { %v4161_v44 = vsel %vm4160_vm12, %v4159_v38, %v4154_v50 }
 0x3e1   :  { %v4043_v25 = vpop.xlane.xlu0 %4042 }
 0x3e2   :  { %v4067_v47 = vsub.f32 0.0, %v4043_v25 }
 0x3e4   :  { %v4166_v43 = vrot.slane %v4067_v47, %v4165_v48 }
 0x3e5   :  { %v4049_v11 = vpop.xlane.xlu0 %4048 }
 0x3e6   :  { %v4069_v31 = vsub.f32 0.0, %v4049_v11  ;;  %v4168_v15 = vsel %vm4167_vm13, %v4166_v43, %v4161_v44 }
 0x3e7   :  { %v4175_v36 = vsel %vm4174_vm15, %v4173_v27, %v4168_v15 }
 0x3e8   :  { %v4180_v42 = vrot.slane %v4069_v31, %v4179_v39 }
 0x3e9   :  { %v4055_v32 = vpop.xlane.xlu0 %4054 }
 0x3ea   :  { %v4071_v33 = vsub.f32 0.0, %v4055_v32  ;;  %v4182_v62 = vsel %vm4181_vm1, %v4180_v42, %v4175_v36 }
 0x3ec   :  { %v4194_v2 = vrot.slane %v4071_v33, %v4193_v16 }
 0x403   :  { %v4052_v19 = vpop.xlane.xlu1 %4051 }
 0x404   :  { %v4070_v22 = vsub.f32 0.0, %v4052_v19 }
 0x406   :  { %v4187_v61 = vrot.slane %v4070_v22, %v4186_v55 }
 0x408   :  { %v4189_v54 = vsel %vm4188_vm2, %v4187_v61, %v4182_v62 }
 0x409   :  { %v4196_v51 = vsel %vm4195_vm4, %v4194_v2, %v4189_v54 }
 0x40a   :  { %4198 = vst [vmem:[#allocation2] sm:$0x1] %v4196_v51 }
 0x40b   :  { %4827 = shalt.err (!%p4824_p4)
}
 0x40c   :  { %s4828_s17 = scalar_lea.hbm %s7362_s4, 16 }
 0x40d   :  { %p4829_p5 = scmp.ne.s32.totalorder %s7362_s4, %s4828_s17  ;;  %p4832_p6 = scmp.lt.u32.totalorder %s4828_s17, %s7362_s4 }
 0x40f   :  { %p4834_p7 = pnand %p4832_p6, %p4829_p5 }
 0x411   :  { %4837 = shalt.err (!%p4834_p7)
}
 0x412   :  { %4208 = dma.vmem_to_hbm [thread:$0]  %s4206_s2, 16, %s7362_s4, [#allocation3]  }
 0x413   :  { %4838 = dma.done.wait [#allocation3], 16  }
 0x414   :  { %4839 = vsyncadd [#allocation3], 4294967280 }
 0x415   :  { %4212 = vsyncpa [#allocation3], 1 }

</bundles_post_ra>
